<compile_context>
chip_gen: v6e
topology: v6e:2x2x1
jax: 0.10.0
libtpu: 0.0.40
codegen_flags: <defaults>
</compile_context>

<pallas_src>
import functools

import jax
import jax.numpy as jnp
from jax.experimental import pallas as pl
from jax.experimental.pallas import tpu as pltpu


def _round_up(x, m):
    return ((x + m - 1) // m) * m


_VMEM_LIMIT = 32 * 1024 * 1024  # safe on v5e/v6e/v7x scoped-VMEM budgets


# ----------------------------------------------------------------------------
# Tiled fused matmul + bias (+ ReLU) kernel: bf16 operands, f32 accumulation.
# ----------------------------------------------------------------------------
def _matmul_bias_act_kernel(x_ref, w_ref, b_ref, o_ref, acc_ref, *, apply_relu):
    k = pl.program_id(2)

    @pl.when(k == 0)
    def _init():
        acc_ref[...] = jnp.zeros_like(acc_ref)

    acc_ref[...] += jnp.dot(x_ref[...], w_ref[...],
                            preferred_element_type=jnp.float32)

    @pl.when(k == pl.num_programs(2) - 1)
    def _finalize():
        acc = acc_ref[...] + b_ref[...]          # bias added once per output tile (f32)
        if apply_relu:
            acc = jnp.maximum(acc, 0.0)
        o_ref[...] = acc.astype(o_ref.dtype)


def matmul_bias_act(x, w, b, *, apply_relu, out_dtype):
    """Fused (x @ w + b) [+ ReLU]. x:[M,K], w:[K,N], b:[N]."""
    M, K = x.shape
    K2, N = w.shape
    assert K == K2

    # Tile choices: sublane-aligned M, lane-dense N (128 for v5e MXU, 256 when it
    # divides evenly for v6e/v7x), K capped at 512 so double-buffered bf16 blocks
    # stay far under the 16/32 MiB scoped-VMEM defaults.
    tm = min(256, _round_up(M, 8))
    rn = _round_up(N, 128)
    tn = 256 if rn % 256 == 0 else 128
    tk = min(512, _round_up(K, 128))
    Mp, Np, Kp = _round_up(M, tm), _round_up(N, tn), _round_up(K, tk)

    xq = x.astype(jnp.bfloat16)
    wq = w.astype(jnp.bfloat16)
    bq = b.astype(jnp.float32).reshape(1, N)
    if (Mp, Kp) != (M, K):
        xq = jnp.pad(xq, ((0, Mp - M), (0, Kp - K)))
    if (Kp, Np) != (K, N):
        wq = jnp.pad(wq, ((0, Kp - K), (0, Np - N)))
    if Np != N:
        bq = jnp.pad(bq, ((0, 0), (0, Np - N)))

    grid = (Mp // tm, Np // tn, Kp // tk)
    out = pl.pallas_call(
        functools.partial(_matmul_bias_act_kernel, apply_relu=apply_relu),
        out_shape=jax.ShapeDtypeStruct((Mp, Np), out_dtype),
        grid=grid,
        in_specs=[
            pl.BlockSpec((tm, tk), lambda i, j, k: (i, k)),
            pl.BlockSpec((tk, tn), lambda i, j, k: (k, j)),
            pl.BlockSpec((1, tn), lambda i, j, k: (0, j)),
        ],
        out_specs=pl.BlockSpec((tm, tn), lambda i, j, k: (i, j)),
        scratch_shapes=[pltpu.VMEM((tm, tn), jnp.float32)],
        compiler_params=pltpu.CompilerParams(
            dimension_semantics=("parallel", "parallel", "arbitrary"),
            vmem_limit_bytes=_VMEM_LIMIT,
        ),
    )(xq, wq, bq)

    if (Mp, Np) != (M, N):
        out = out[:M, :N]
    return out


# ----------------------------------------------------------------------------
# Fused 3-layer FC head: one pallas_call, all weights VMEM-resident.
# ----------------------------------------------------------------------------
def _fc_head_kernel(x_ref, w1_ref, b1_ref, w2_ref, b2_ref, w3_ref, b3_ref, o_ref):
    h = jnp.dot(x_ref[...], w1_ref[...], preferred_element_type=jnp.float32)
    h = jnp.maximum(h + b1_ref[...], 0.0)
    h = jnp.dot(h.astype(jnp.bfloat16), w2_ref[...], preferred_element_type=jnp.float32)
    h = jnp.maximum(h + b2_ref[...], 0.0)
    h = jnp.dot(h.astype(jnp.bfloat16), w3_ref[...], preferred_element_type=jnp.float32)
    o_ref[...] = (h + b3_ref[...]).astype(o_ref.dtype)


def _full_block(shape):
    return pl.BlockSpec(shape, lambda i: (0,) * len(shape))


def fc_head(x, params):
    """x: [M, 256] -> logits [M, num_class]. Dropout is an eval-mode identity."""
    M, D = x.shape
    num_class = params["fc3_w"].shape[1]
    Mp = _round_up(M, 8)          # sublane-dense rows
    Npad = 128                    # lane-dense final output (sliced to num_class after)

    xq = x.astype(jnp.bfloat16)
    if Mp != M:
        xq = jnp.pad(xq, ((0, Mp - M), (0, 0)))
    w1 = params["fc1_w"].astype(jnp.bfloat16)
    b1 = params["fc1_b"].reshape(1, -1).astype(jnp.float32)
    w2 = params["fc2_w"].astype(jnp.bfloat16)
    b2 = params["fc2_b"].reshape(1, -1).astype(jnp.float32)
    w3 = jnp.pad(params["fc3_w"], ((0, 0), (0, Npad - num_class))).astype(jnp.bfloat16)
    b3 = jnp.pad(params["fc3_b"], (0, Npad - num_class)).reshape(1, -1).astype(jnp.float32)

    args = (xq, w1, b1, w2, b2, w3, b3)
    out = pl.pallas_call(
        _fc_head_kernel,
        out_shape=jax.ShapeDtypeStruct((Mp, Npad), jnp.float32),
        grid=(1,),
        in_specs=[_full_block(a.shape) for a in args],
        out_specs=_full_block((Mp, Npad)),
        compiler_params=pltpu.CompilerParams(
            dimension_semantics=("arbitrary",),
            vmem_limit_bytes=_VMEM_LIMIT,
        ),
    )(*args)
    return out[:M, :num_class]


# ----------------------------------------------------------------------------
# Conv as im2col (bf16 glue) + tiled Pallas fused matmul.
# ----------------------------------------------------------------------------
def conv2d_relu(x, w, b, stride, padding):
    """x: [B,H,W,Cin] (NHWC, bf16), w: [Cout,Cin,KH,KW] (PyTorch layout), b: [Cout]."""
    B, H, W, Cin = x.shape
    Cout, _, KH, KW = w.shape
    xp = jnp.pad(x, ((0, 0), (padding, padding), (padding, padding), (0, 0)))
    Hp, Wp = H + 2 * padding, W + 2 * padding
    OH = (Hp - KH) // stride + 1
    OW = (Wp - KW) // stride + 1

    patches = []
    for kh in range(KH):
        for kw in range(KW):
            patches.append(
                xp[:, kh:kh + stride * (OH - 1) + 1:stride,
                      kw:kw + stride * (OW - 1) + 1:stride, :]
            )
    # [B, OH, OW, KH*KW, Cin] -> [B*OH*OW, KH*KW*Cin]   (bf16 -> half the HBM traffic)
    p = jnp.stack(patches, axis=3).reshape(B * OH * OW, KH * KW * Cin)
    # weight -> [KH, KW, Cin, Cout] -> [KH*KW*Cin, Cout] (matches patch ordering)
    wm = jnp.transpose(w, (2, 3, 1, 0)).reshape(KH * KW * Cin, Cout)

    y = matmul_bias_act(p, wm, b, apply_relu=True, out_dtype=jnp.bfloat16)
    return y.reshape(B, OH, OW, Cout)


# ----------------------------------------------------------------------------
# MaxPool2d(kernel_size=3, stride=2): chained max over the 9 taps (XLA fuses this;
# no 9x HBM expansion, no extra kernel launch — per performance review option (b)).
# ----------------------------------------------------------------------------
def maxpool2d_3x3_s2(x):
    B, H, W, C = x.shape
    OH = (H - 3) // 2 + 1
    OW = (W - 3) // 2 + 1
    out = None
    for dh in range(3):
        for dw in range(3):
            tap = x[:, dh:dh + 2 * (OH - 1) + 1:2, dw:dw + 2 * (OW - 1) + 1:2, :]
            out = tap if out is None else jnp.maximum(out, tap)
    return out


# ----------------------------------------------------------------------------
# Parameter construction (deterministic synthetic weights, no checkpoint)
# ----------------------------------------------------------------------------
def init_params(key, num_class=10):
    def conv_p(key, cout, cin, kh, kw):
        k1, k2 = jax.random.split(key)
        fan_in = cin * kh * kw
        w = jax.random.normal(k1, (cout, cin, kh, kw), jnp.float32) / jnp.sqrt(fan_in)
        b = jax.random.normal(k2, (cout,), jnp.float32) * 0.01
        return w, b

    def fc_p(key, din, dout):
        k1, k2 = jax.random.split(key)
        w = jax.random.normal(k1, (din, dout), jnp.float32) / jnp.sqrt(din)
        b = jax.random.normal(k2, (dout,), jnp.float32) * 0.01
        return w, b

    keys = jax.random.split(key, 8)
    p = {}
    p["conv1_w"], p["conv1_b"] = conv_p(keys[0], 64, 3, 11, 11)
    p["conv2_w"], p["conv2_b"] = conv_p(keys[1], 192, 64, 5, 5)
    p["conv3_w"], p["conv3_b"] = conv_p(keys[2], 384, 192, 3, 3)
    p["conv4_w"], p["conv4_b"] = conv_p(keys[3], 256, 384, 3, 3)
    p["conv5_w"], p["conv5_b"] = conv_p(keys[4], 256, 256, 3, 3)
    p["fc1_w"], p["fc1_b"] = fc_p(keys[5], 256, 128)
    p["fc2_w"], p["fc2_b"] = fc_p(keys[6], 128, 128)
    p["fc3_w"], p["fc3_b"] = fc_p(keys[7], 128, num_class)
    return p


# ----------------------------------------------------------------------------
# Full forward pass (mirrors Alexnet.forward)
# ----------------------------------------------------------------------------
def alexnet_forward(x_nchw, params):
    # NCHW (PyTorch) -> NHWC bf16 (kernel layout)
    x = jnp.transpose(x_nchw, (0, 2, 3, 1)).astype(jnp.bfloat16)

    # torchvision alexnet.features
    x = conv2d_relu(x, params["conv1_w"], params["conv1_b"], stride=4, padding=2)
    x = maxpool2d_3x3_s2(x)
    x = conv2d_relu(x, params["conv2_w"], params["conv2_b"], stride=1, padding=2)
    x = maxpool2d_3x3_s2(x)
    x = conv2d_relu(x, params["conv3_w"], params["conv3_b"], stride=1, padding=1)
    x = conv2d_relu(x, params["conv4_w"], params["conv4_b"], stride=1, padding=1)
    x = conv2d_relu(x, params["conv5_w"], params["conv5_b"], stride=1, padding=1)
    x = maxpool2d_3x3_s2(x)

    # torch.flatten(x, 1) on NCHW ordering; guard that the feature map matches fc1.
    B, H, W, C = x.shape
    feat = H * W * C
    assert feat == params["fc1_w"].shape[0], (
        f"feature map {H}x{W}x{C}={feat} does not match fc1 input "
        f"{params['fc1_w'].shape[0]} (input resolution must yield 1x1x256)")
    x = jnp.transpose(x, (0, 3, 1, 2)).reshape(B, feat)

    # Fused FC head (Dropout = eval-mode identity).
    return fc_head(x, params)


if __name__ == "__main__":
    key = jax.random.PRNGKey(0)
    k_param, k_input = jax.random.split(key)

    params = init_params(k_param, num_class=10)

    # 64x64 input gives a 1x1x256 feature map, matching the fc head's Linear(256, 128).
    x = jax.random.normal(k_input, (2, 3, 64, 64), jnp.float32)

    fwd = jax.jit(alexnet_forward)
    out = fwd(x, params)
    out = jax.block_until_ready(out)

    assert out.shape == (2, 10), out.shape
    print("KERNEL_OK")
</pallas_src>

<mosaic_0001>
module attributes {stable_mosaic.version = 11 : i64} {
  func.func @_matmul_bias_act_kernel(%arg0: i32, %arg1: i32, %arg2: i32, %arg3: memref<256x384xbf16, #tpu.memory_space<vmem>>, %arg4: memref<384x128xbf16, #tpu.memory_space<vmem>>, %arg5: memref<1x128xf32, #tpu.memory_space<vmem>>, %arg6: memref<256x128xbf16, #tpu.memory_space<vmem>>, %arg7: memref<256x128xf32, #tpu.memory_space<vmem>>) attributes {dimension_semantics = [#tpu.dimension_semantics<parallel>, #tpu.dimension_semantics<parallel>, #tpu.dimension_semantics<arbitrary>], iteration_bounds = array<i64: 2, 1, 1>, scalar_prefetch = 0 : i64, scratch_operands = 1 : i64, tpu.core_type = #tpu.core_type<tc>, window_params = [{transform_indices = @transform_0, window_bounds = array<i64: 256, 384>}, {transform_indices = @transform_1, window_bounds = array<i64: 384, 128>}, {transform_indices = @transform_2, window_bounds = array<i64: 1, 128>}, {transform_indices = @transform_3, window_bounds = array<i64: 256, 128>}]} {
    %c0_i32 = arith.constant 0 : i32
    %0 = arith.cmpi eq, %arg2, %c0_i32 : i32
    %1 = arith.extui %0 : i1 to i32
    %c0_i32_0 = arith.constant 0 : i32
    %2 = arith.cmpi ne, %1, %c0_i32_0 : i32
    scf.if %2 {
      %cst_10 = arith.constant 0.000000e+00 : f32
      %12 = vector.broadcast %cst_10 : f32 to vector<256x128xf32>
      %c0_11 = arith.constant 0 : index
      %c0_12 = arith.constant 0 : index
      %13 = vector.load %arg7[%c0_11, %c0_12] : memref<256x128xf32, #tpu.memory_space<vmem>>, vector<256x128xf32>
      tpu.vector_store %arg7[%c0_11, %c0_12], %12 {strides = array<i32>} : memref<256x128xf32, #tpu.memory_space<vmem>>, vector<256x128xf32>,
    } else {
    }
    %c0 = arith.constant 0 : index
    %c0_1 = arith.constant 0 : index
    %3 = vector.load %arg7[%c0, %c0_1] : memref<256x128xf32, #tpu.memory_space<vmem>>, vector<256x128xf32>
    %c0_2 = arith.constant 0 : index
    %c0_3 = arith.constant 0 : index
    %4 = vector.load %arg3[%c0_2, %c0_3] : memref<256x384xbf16, #tpu.memory_space<vmem>>, vector<256x384xbf16>
    %c0_4 = arith.constant 0 : index
    %c0_5 = arith.constant 0 : index
    %5 = vector.load %arg4[%c0_4, %c0_5] : memref<384x128xbf16, #tpu.memory_space<vmem>>, vector<384x128xbf16>
    %cst = arith.constant dense<0.000000e+00> : vector<256x128xf32>
    %6 = tpu.matmul %4, %5, %cst {dimension_numbers = #tpu.dot_dimension_numbers<[1], [0], [0], [1], [0, 0, 1, 1], [], []>} : vector<256x384xbf16>, vector<384x128xbf16>, vector<256x128xf32> -> vector<256x128xf32>
    %7 = arith.addf %3, %6 : vector<256x128xf32>
    %c0_6 = arith.constant 0 : index
    %c0_7 = arith.constant 0 : index
    %8 = vector.load %arg7[%c0_6, %c0_7] : memref<256x128xf32, #tpu.memory_space<vmem>>, vector<256x128xf32>
    tpu.vector_store %arg7[%c0_6, %c0_7], %7 {strides = array<i32>} : memref<256x128xf32, #tpu.memory_space<vmem>>, vector<256x128xf32>,
    %c0_i32_8 = arith.constant 0 : i32
    %9 = arith.cmpi eq, %arg2, %c0_i32_8 : i32
    %10 = arith.extui %9 : i1 to i32
    %c0_i32_9 = arith.constant 0 : i32
    %11 = arith.cmpi ne, %10, %c0_i32_9 : i32
    scf.if %11 {
      %c0_10 = arith.constant 0 : index
      %c0_11 = arith.constant 0 : index
      %12 = vector.load %arg7[%c0_10, %c0_11] : memref<256x128xf32, #tpu.memory_space<vmem>>, vector<256x128xf32>
      %c0_12 = arith.constant 0 : index
      %c0_13 = arith.constant 0 : index
      %13 = vector.load %arg5[%c0_12, %c0_13] : memref<1x128xf32, #tpu.memory_space<vmem>>, vector<1x128xf32>
      %14 = vector.broadcast %13 : vector<1x128xf32> to vector<256x128xf32>
      %15 = arith.addf %12, %14 : vector<256x128xf32>
      %cst_14 = arith.constant 0.000000e+00 : f32
      %16 = vector.broadcast %cst_14 : f32 to vector<256x128xf32>
      %17 = arith.maximumf %15, %16 : vector<256x128xf32>
      %18 = arith.truncf %17 : vector<256x128xf32> to vector<256x128xbf16>
      %c0_15 = arith.constant 0 : index
      %c0_16 = arith.constant 0 : index
      %19 = vector.load %arg6[%c0_15, %c0_16] : memref<256x128xbf16, #tpu.memory_space<vmem>>, vector<256x128xbf16>
      tpu.vector_store %arg6[%c0_15, %c0_16], %18 {strides = array<i32>} : memref<256x128xbf16, #tpu.memory_space<vmem>>, vector<256x128xbf16>,
    } else {
    }
    return
  }
  func.func @transform_0(%arg0: i32, %arg1: i32, %arg2: i32) -> (i32, i32) {
    %c0_i32 = arith.constant 0 : i32
    return %arg0, %arg2 : i32, i32
  }
  func.func @transform_1(%arg0: i32, %arg1: i32, %arg2: i32) -> (i32, i32) {
    %c0_i32 = arith.constant 0 : i32
    return %arg2, %arg1 : i32, i32
  }
  func.func @transform_2(%arg0: i32, %arg1: i32, %arg2: i32) -> (i32, i32) {
    %c0_i32 = arith.constant 0 : i32
    %c0_i32_0 = arith.constant 0 : i32
    return %c0_i32, %arg1 : i32, i32
  }
  func.func @transform_3(%arg0: i32, %arg1: i32, %arg2: i32) -> (i32, i32) {
    %c0_i32 = arith.constant 0 : i32
    return %arg0, %arg1 : i32, i32
  }
}

module attributes {stable_mosaic.version = 11 : i64} {
  func.func @_matmul_bias_act_kernel(%arg0: i32, %arg1: i32, %arg2: i32, %arg3: memref<104x512xbf16, #tpu.memory_space<vmem>>, %arg4: memref<512x256xbf16, #tpu.memory_space<vmem>>, %arg5: memref<1x256xf32, #tpu.memory_space<vmem>>, %arg6: memref<104x256xbf16, #tpu.memory_space<vmem>>, %arg7: memref<104x256xf32, #tpu.memory_space<vmem>>) attributes {dimension_semantics = [#tpu.dimension_semantics<parallel>, #tpu.dimension_semantics<parallel>, #tpu.dimension_semantics<arbitrary>], iteration_bounds = array<i64: 1, 1, 4>, scalar_prefetch = 0 : i64, scratch_operands = 1 : i64, tpu.core_type = #tpu.core_type<tc>, window_params = [{transform_indices = @transform_0, window_bounds = array<i64: 104, 512>}, {transform_indices = @transform_1, window_bounds = array<i64: 512, 256>}, {transform_indices = @transform_2, window_bounds = array<i64: 1, 256>}, {transform_indices = @transform_3, window_bounds = array<i64: 104, 256>}]} {
    %c0_i32 = arith.constant 0 : i32
    %0 = arith.cmpi eq, %arg2, %c0_i32 : i32
    %1 = arith.extui %0 : i1 to i32
    %c0_i32_0 = arith.constant 0 : i32
    %2 = arith.cmpi ne, %1, %c0_i32_0 : i32
    scf.if %2 {
      %cst_9 = arith.constant 0.000000e+00 : f32
      %12 = vector.broadcast %cst_9 : f32 to vector<104x256xf32>
      %c0_10 = arith.constant 0 : index
      %c0_11 = arith.constant 0 : index
      %13 = vector.load %arg7[%c0_10, %c0_11] : memref<104x256xf32, #tpu.memory_space<vmem>>, vector<104x256xf32>
      tpu.vector_store %arg7[%c0_10, %c0_11], %12 {strides = array<i32>} : memref<104x256xf32, #tpu.memory_space<vmem>>, vector<104x256xf32>,
    } else {
    }
    %c0 = arith.constant 0 : index
    %c0_1 = arith.constant 0 : index
    %3 = vector.load %arg7[%c0, %c0_1] : memref<104x256xf32, #tpu.memory_space<vmem>>, vector<104x256xf32>
    %c0_2 = arith.constant 0 : index
    %c0_3 = arith.constant 0 : index
    %4 = vector.load %arg3[%c0_2, %c0_3] : memref<104x512xbf16, #tpu.memory_space<vmem>>, vector<104x512xbf16>
    %c0_4 = arith.constant 0 : index
    %c0_5 = arith.constant 0 : index
    %5 = vector.load %arg4[%c0_4, %c0_5] : memref<512x256xbf16, #tpu.memory_space<vmem>>, vector<512x256xbf16>
    %cst = arith.constant dense<0.000000e+00> : vector<104x256xf32>
    %6 = tpu.matmul %4, %5, %cst {dimension_numbers = #tpu.dot_dimension_numbers<[1], [0], [0], [1], [0, 0, 1, 1], [], []>} : vector<104x512xbf16>, vector<512x256xbf16>, vector<104x256xf32> -> vector<104x256xf32>
    %7 = arith.addf %3, %6 : vector<104x256xf32>
    %c0_6 = arith.constant 0 : index
    %c0_7 = arith.constant 0 : index
    %8 = vector.load %arg7[%c0_6, %c0_7] : memref<104x256xf32, #tpu.memory_space<vmem>>, vector<104x256xf32>
    tpu.vector_store %arg7[%c0_6, %c0_7], %7 {strides = array<i32>} : memref<104x256xf32, #tpu.memory_space<vmem>>, vector<104x256xf32>,
    %c3_i32 = arith.constant 3 : i32
    %9 = arith.cmpi eq, %arg2, %c3_i32 : i32
    %10 = arith.extui %9 : i1 to i32
    %c0_i32_8 = arith.constant 0 : i32
    %11 = arith.cmpi ne, %10, %c0_i32_8 : i32
    scf.if %11 {
      %c0_9 = arith.constant 0 : index
      %c0_10 = arith.constant 0 : index
      %12 = vector.load %arg7[%c0_9, %c0_10] : memref<104x256xf32, #tpu.memory_space<vmem>>, vector<104x256xf32>
      %c0_11 = arith.constant 0 : index
      %c0_12 = arith.constant 0 : index
      %13 = vector.load %arg5[%c0_11, %c0_12] : memref<1x256xf32, #tpu.memory_space<vmem>>, vector<1x256xf32>
      %14 = vector.broadcast %13 : vector<1x256xf32> to vector<104x256xf32>
      %15 = arith.addf %12, %14 : vector<104x256xf32>
      %cst_13 = arith.constant 0.000000e+00 : f32
      %16 = vector.broadcast %cst_13 : f32 to vector<104x256xf32>
      %17 = arith.maximumf %15, %16 : vector<104x256xf32>
      %18 = arith.truncf %17 : vector<104x256xf32> to vector<104x256xbf16>
      %c0_14 = arith.constant 0 : index
      %c0_15 = arith.constant 0 : index
      %19 = vector.load %arg6[%c0_14, %c0_15] : memref<104x256xbf16, #tpu.memory_space<vmem>>, vector<104x256xbf16>
      tpu.vector_store %arg6[%c0_14, %c0_15], %18 {strides = array<i32>} : memref<104x256xbf16, #tpu.memory_space<vmem>>, vector<104x256xbf16>,
    } else {
    }
    return
  }
  func.func @transform_0(%arg0: i32, %arg1: i32, %arg2: i32) -> (i32, i32) {
    %c0_i32 = arith.constant 0 : i32
    return %arg0, %arg2 : i32, i32
  }
  func.func @transform_1(%arg0: i32, %arg1: i32, %arg2: i32) -> (i32, i32) {
    %c0_i32 = arith.constant 0 : i32
    return %arg2, %arg1 : i32, i32
  }
  func.func @transform_2(%arg0: i32, %arg1: i32, %arg2: i32) -> (i32, i32) {
    %c0_i32 = arith.constant 0 : i32
    %c0_i32_0 = arith.constant 0 : i32
    return %c0_i32, %arg1 : i32, i32
  }
  func.func @transform_3(%arg0: i32, %arg1: i32, %arg2: i32) -> (i32, i32) {
    %c0_i32 = arith.constant 0 : i32
    return %arg0, %arg1 : i32, i32
  }
}

module attributes {stable_mosaic.version = 11 : i64} {
  func.func @_matmul_bias_act_kernel(%arg0: i32, %arg1: i32, %arg2: i32, %arg3: memref<24x512xbf16, #tpu.memory_space<vmem>>, %arg4: memref<512x128xbf16, #tpu.memory_space<vmem>>, %arg5: memref<1x128xf32, #tpu.memory_space<vmem>>, %arg6: memref<24x128xbf16, #tpu.memory_space<vmem>>, %arg7: memref<24x128xf32, #tpu.memory_space<vmem>>) attributes {dimension_semantics = [#tpu.dimension_semantics<parallel>, #tpu.dimension_semantics<parallel>, #tpu.dimension_semantics<arbitrary>], iteration_bounds = array<i64: 1, 3, 4>, scalar_prefetch = 0 : i64, scratch_operands = 1 : i64, tpu.core_type = #tpu.core_type<tc>, window_params = [{transform_indices = @transform_0, window_bounds = array<i64: 24, 512>}, {transform_indices = @transform_1, window_bounds = array<i64: 512, 128>}, {transform_indices = @transform_2, window_bounds = array<i64: 1, 128>}, {transform_indices = @transform_3, window_bounds = array<i64: 24, 128>}]} {
    %c0_i32 = arith.constant 0 : i32
    %0 = arith.cmpi eq, %arg2, %c0_i32 : i32
    %1 = arith.extui %0 : i1 to i32
    %c0_i32_0 = arith.constant 0 : i32
    %2 = arith.cmpi ne, %1, %c0_i32_0 : i32
    scf.if %2 {
      %cst_9 = arith.constant 0.000000e+00 : f32
      %12 = vector.broadcast %cst_9 : f32 to vector<24x128xf32>
      %c0_10 = arith.constant 0 : index
      %c0_11 = arith.constant 0 : index
      %13 = vector.load %arg7[%c0_10, %c0_11] : memref<24x128xf32, #tpu.memory_space<vmem>>, vector<24x128xf32>
      tpu.vector_store %arg7[%c0_10, %c0_11], %12 {strides = array<i32>} : memref<24x128xf32, #tpu.memory_space<vmem>>, vector<24x128xf32>,
    } else {
    }
    %c0 = arith.constant 0 : index
    %c0_1 = arith.constant 0 : index
    %3 = vector.load %arg7[%c0, %c0_1] : memref<24x128xf32, #tpu.memory_space<vmem>>, vector<24x128xf32>
    %c0_2 = arith.constant 0 : index
    %c0_3 = arith.constant 0 : index
    %4 = vector.load %arg3[%c0_2, %c0_3] : memref<24x512xbf16, #tpu.memory_space<vmem>>, vector<24x512xbf16>
    %c0_4 = arith.constant 0 : index
    %c0_5 = arith.constant 0 : index
    %5 = vector.load %arg4[%c0_4, %c0_5] : memref<512x128xbf16, #tpu.memory_space<vmem>>, vector<512x128xbf16>
    %cst = arith.constant dense<0.000000e+00> : vector<24x128xf32>
    %6 = tpu.matmul %4, %5, %cst {dimension_numbers = #tpu.dot_dimension_numbers<[1], [0], [0], [1], [0, 0, 1, 1], [], []>} : vector<24x512xbf16>, vector<512x128xbf16>, vector<24x128xf32> -> vector<24x128xf32>
    %7 = arith.addf %3, %6 : vector<24x128xf32>
    %c0_6 = arith.constant 0 : index
    %c0_7 = arith.constant 0 : index
    %8 = vector.load %arg7[%c0_6, %c0_7] : memref<24x128xf32, #tpu.memory_space<vmem>>, vector<24x128xf32>
    tpu.vector_store %arg7[%c0_6, %c0_7], %7 {strides = array<i32>} : memref<24x128xf32, #tpu.memory_space<vmem>>, vector<24x128xf32>,
    %c3_i32 = arith.constant 3 : i32
    %9 = arith.cmpi eq, %arg2, %c3_i32 : i32
    %10 = arith.extui %9 : i1 to i32
    %c0_i32_8 = arith.constant 0 : i32
    %11 = arith.cmpi ne, %10, %c0_i32_8 : i32
    scf.if %11 {
      %c0_9 = arith.constant 0 : index
      %c0_10 = arith.constant 0 : index
      %12 = vector.load %arg7[%c0_9, %c0_10] : memref<24x128xf32, #tpu.memory_space<vmem>>, vector<24x128xf32>
      %c0_11 = arith.constant 0 : index
      %c0_12 = arith.constant 0 : index
      %13 = vector.load %arg5[%c0_11, %c0_12] : memref<1x128xf32, #tpu.memory_space<vmem>>, vector<1x128xf32>
      %14 = vector.broadcast %13 : vector<1x128xf32> to vector<24x128xf32>
      %15 = arith.addf %12, %14 : vector<24x128xf32>
      %cst_13 = arith.constant 0.000000e+00 : f32
      %16 = vector.broadcast %cst_13 : f32 to vector<24x128xf32>
      %17 = arith.maximumf %15, %16 : vector<24x128xf32>
      %18 = arith.truncf %17 : vector<24x128xf32> to vector<24x128xbf16>
      %c0_14 = arith.constant 0 : index
      %c0_15 = arith.constant 0 : index
      %19 = vector.load %arg6[%c0_14, %c0_15] : memref<24x128xbf16, #tpu.memory_space<vmem>>, vector<24x128xbf16>
      tpu.vector_store %arg6[%c0_14, %c0_15], %18 {strides = array<i32>} : memref<24x128xbf16, #tpu.memory_space<vmem>>, vector<24x128xbf16>,
    } else {
    }
    return
  }
  func.func @transform_0(%arg0: i32, %arg1: i32, %arg2: i32) -> (i32, i32) {
    %c0_i32 = arith.constant 0 : i32
    return %arg0, %arg2 : i32, i32
  }
  func.func @transform_1(%arg0: i32, %arg1: i32, %arg2: i32) -> (i32, i32) {
    %c0_i32 = arith.constant 0 : i32
    return %arg2, %arg1 : i32, i32
  }
  func.func @transform_2(%arg0: i32, %arg1: i32, %arg2: i32) -> (i32, i32) {
    %c0_i32 = arith.constant 0 : i32
    %c0_i32_0 = arith.constant 0 : i32
    return %c0_i32, %arg1 : i32, i32
  }
  func.func @transform_3(%arg0: i32, %arg1: i32, %arg2: i32) -> (i32, i32) {
    %c0_i32 = arith.constant 0 : i32
    return %arg0, %arg1 : i32, i32
  }
}

module attributes {stable_mosaic.version = 11 : i64} {
  func.func @_matmul_bias_act_kernel(%arg0: i32, %arg1: i32, %arg2: i32, %arg3: memref<24x512xbf16, #tpu.memory_space<vmem>>, %arg4: memref<512x256xbf16, #tpu.memory_space<vmem>>, %arg5: memref<1x256xf32, #tpu.memory_space<vmem>>, %arg6: memref<24x256xbf16, #tpu.memory_space<vmem>>, %arg7: memref<24x256xf32, #tpu.memory_space<vmem>>) attributes {dimension_semantics = [#tpu.dimension_semantics<parallel>, #tpu.dimension_semantics<parallel>, #tpu.dimension_semantics<arbitrary>], iteration_bounds = array<i64: 1, 1, 7>, scalar_prefetch = 0 : i64, scratch_operands = 1 : i64, tpu.core_type = #tpu.core_type<tc>, window_params = [{transform_indices = @transform_0, window_bounds = array<i64: 24, 512>}, {transform_indices = @transform_1, window_bounds = array<i64: 512, 256>}, {transform_indices = @transform_2, window_bounds = array<i64: 1, 256>}, {transform_indices = @transform_3, window_bounds = array<i64: 24, 256>}]} {
    %c0_i32 = arith.constant 0 : i32
    %0 = arith.cmpi eq, %arg2, %c0_i32 : i32
    %1 = arith.extui %0 : i1 to i32
    %c0_i32_0 = arith.constant 0 : i32
    %2 = arith.cmpi ne, %1, %c0_i32_0 : i32
    scf.if %2 {
      %cst_9 = arith.constant 0.000000e+00 : f32
      %12 = vector.broadcast %cst_9 : f32 to vector<24x256xf32>
      %c0_10 = arith.constant 0 : index
      %c0_11 = arith.constant 0 : index
      %13 = vector.load %arg7[%c0_10, %c0_11] : memref<24x256xf32, #tpu.memory_space<vmem>>, vector<24x256xf32>
      tpu.vector_store %arg7[%c0_10, %c0_11], %12 {strides = array<i32>} : memref<24x256xf32, #tpu.memory_space<vmem>>, vector<24x256xf32>,
    } else {
    }
    %c0 = arith.constant 0 : index
    %c0_1 = arith.constant 0 : index
    %3 = vector.load %arg7[%c0, %c0_1] : memref<24x256xf32, #tpu.memory_space<vmem>>, vector<24x256xf32>
    %c0_2 = arith.constant 0 : index
    %c0_3 = arith.constant 0 : index
    %4 = vector.load %arg3[%c0_2, %c0_3] : memref<24x512xbf16, #tpu.memory_space<vmem>>, vector<24x512xbf16>
    %c0_4 = arith.constant 0 : index
    %c0_5 = arith.constant 0 : index
    %5 = vector.load %arg4[%c0_4, %c0_5] : memref<512x256xbf16, #tpu.memory_space<vmem>>, vector<512x256xbf16>
    %cst = arith.constant dense<0.000000e+00> : vector<24x256xf32>
    %6 = tpu.matmul %4, %5, %cst {dimension_numbers = #tpu.dot_dimension_numbers<[1], [0], [0], [1], [0, 0, 1, 1], [], []>} : vector<24x512xbf16>, vector<512x256xbf16>, vector<24x256xf32> -> vector<24x256xf32>
    %7 = arith.addf %3, %6 : vector<24x256xf32>
    %c0_6 = arith.constant 0 : index
    %c0_7 = arith.constant 0 : index
    %8 = vector.load %arg7[%c0_6, %c0_7] : memref<24x256xf32, #tpu.memory_space<vmem>>, vector<24x256xf32>
    tpu.vector_store %arg7[%c0_6, %c0_7], %7 {strides = array<i32>} : memref<24x256xf32, #tpu.memory_space<vmem>>, vector<24x256xf32>,
    %c6_i32 = arith.constant 6 : i32
    %9 = arith.cmpi eq, %arg2, %c6_i32 : i32
    %10 = arith.extui %9 : i1 to i32
    %c0_i32_8 = arith.constant 0 : i32
    %11 = arith.cmpi ne, %10, %c0_i32_8 : i32
    scf.if %11 {
      %c0_9 = arith.constant 0 : index
      %c0_10 = arith.constant 0 : index
      %12 = vector.load %arg7[%c0_9, %c0_10] : memref<24x256xf32, #tpu.memory_space<vmem>>, vector<24x256xf32>
      %c0_11 = arith.constant 0 : index
      %c0_12 = arith.constant 0 : index
      %13 = vector.load %arg5[%c0_11, %c0_12] : memref<1x256xf32, #tpu.memory_space<vmem>>, vector<1x256xf32>
      %14 = vector.broadcast %13 : vector<1x256xf32> to vector<24x256xf32>
      %15 = arith.addf %12, %14 : vector<24x256xf32>
      %cst_13 = arith.constant 0.000000e+00 : f32
      %16 = vector.broadcast %cst_13 : f32 to vector<24x256xf32>
      %17 = arith.maximumf %15, %16 : vector<24x256xf32>
      %18 = arith.truncf %17 : vector<24x256xf32> to vector<24x256xbf16>
      %c0_14 = arith.constant 0 : index
      %c0_15 = arith.constant 0 : index
      %19 = vector.load %arg6[%c0_14, %c0_15] : memref<24x256xbf16, #tpu.memory_space<vmem>>, vector<24x256xbf16>
      tpu.vector_store %arg6[%c0_14, %c0_15], %18 {strides = array<i32>} : memref<24x256xbf16, #tpu.memory_space<vmem>>, vector<24x256xbf16>,
    } else {
    }
    return
  }
  func.func @transform_0(%arg0: i32, %arg1: i32, %arg2: i32) -> (i32, i32) {
    %c0_i32 = arith.constant 0 : i32
    return %arg0, %arg2 : i32, i32
  }
  func.func @transform_1(%arg0: i32, %arg1: i32, %arg2: i32) -> (i32, i32) {
    %c0_i32 = arith.constant 0 : i32
    return %arg2, %arg1 : i32, i32
  }
  func.func @transform_2(%arg0: i32, %arg1: i32, %arg2: i32) -> (i32, i32) {
    %c0_i32 = arith.constant 0 : i32
    %c0_i32_0 = arith.constant 0 : i32
    return %c0_i32, %arg1 : i32, i32
  }
  func.func @transform_3(%arg0: i32, %arg1: i32, %arg2: i32) -> (i32, i32) {
    %c0_i32 = arith.constant 0 : i32
    return %arg0, %arg1 : i32, i32
  }
}

module attributes {stable_mosaic.version = 11 : i64} {
  func.func @_matmul_bias_act_kernel(%arg0: i32, %arg1: i32, %arg2: i32, %arg3: memref<24x512xbf16, #tpu.memory_space<vmem>>, %arg4: memref<512x256xbf16, #tpu.memory_space<vmem>>, %arg5: memref<1x256xf32, #tpu.memory_space<vmem>>, %arg6: memref<24x256xbf16, #tpu.memory_space<vmem>>, %arg7: memref<24x256xf32, #tpu.memory_space<vmem>>) attributes {dimension_semantics = [#tpu.dimension_semantics<parallel>, #tpu.dimension_semantics<parallel>, #tpu.dimension_semantics<arbitrary>], iteration_bounds = array<i64: 1, 1, 5>, scalar_prefetch = 0 : i64, scratch_operands = 1 : i64, tpu.core_type = #tpu.core_type<tc>, window_params = [{transform_indices = @transform_0, window_bounds = array<i64: 24, 512>}, {transform_indices = @transform_1, window_bounds = array<i64: 512, 256>}, {transform_indices = @transform_2, window_bounds = array<i64: 1, 256>}, {transform_indices = @transform_3, window_bounds = array<i64: 24, 256>}]} {
    %c0_i32 = arith.constant 0 : i32
    %0 = arith.cmpi eq, %arg2, %c0_i32 : i32
    %1 = arith.extui %0 : i1 to i32
    %c0_i32_0 = arith.constant 0 : i32
    %2 = arith.cmpi ne, %1, %c0_i32_0 : i32
    scf.if %2 {
      %cst_9 = arith.constant 0.000000e+00 : f32
      %12 = vector.broadcast %cst_9 : f32 to vector<24x256xf32>
      %c0_10 = arith.constant 0 : index
      %c0_11 = arith.constant 0 : index
      %13 = vector.load %arg7[%c0_10, %c0_11] : memref<24x256xf32, #tpu.memory_space<vmem>>, vector<24x256xf32>
      tpu.vector_store %arg7[%c0_10, %c0_11], %12 {strides = array<i32>} : memref<24x256xf32, #tpu.memory_space<vmem>>, vector<24x256xf32>,
    } else {
    }
    %c0 = arith.constant 0 : index
    %c0_1 = arith.constant 0 : index
    %3 = vector.load %arg7[%c0, %c0_1] : memref<24x256xf32, #tpu.memory_space<vmem>>, vector<24x256xf32>
    %c0_2 = arith.constant 0 : index
    %c0_3 = arith.constant 0 : index
    %4 = vector.load %arg3[%c0_2, %c0_3] : memref<24x512xbf16, #tpu.memory_space<vmem>>, vector<24x512xbf16>
    %c0_4 = arith.constant 0 : index
    %c0_5 = arith.constant 0 : index
    %5 = vector.load %arg4[%c0_4, %c0_5] : memref<512x256xbf16, #tpu.memory_space<vmem>>, vector<512x256xbf16>
    %cst = arith.constant dense<0.000000e+00> : vector<24x256xf32>
    %6 = tpu.matmul %4, %5, %cst {dimension_numbers = #tpu.dot_dimension_numbers<[1], [0], [0], [1], [0, 0, 1, 1], [], []>} : vector<24x512xbf16>, vector<512x256xbf16>, vector<24x256xf32> -> vector<24x256xf32>
    %7 = arith.addf %3, %6 : vector<24x256xf32>
    %c0_6 = arith.constant 0 : index
    %c0_7 = arith.constant 0 : index
    %8 = vector.load %arg7[%c0_6, %c0_7] : memref<24x256xf32, #tpu.memory_space<vmem>>, vector<24x256xf32>
    tpu.vector_store %arg7[%c0_6, %c0_7], %7 {strides = array<i32>} : memref<24x256xf32, #tpu.memory_space<vmem>>, vector<24x256xf32>,
    %c4_i32 = arith.constant 4 : i32
    %9 = arith.cmpi eq, %arg2, %c4_i32 : i32
    %10 = arith.extui %9 : i1 to i32
    %c0_i32_8 = arith.constant 0 : i32
    %11 = arith.cmpi ne, %10, %c0_i32_8 : i32
    scf.if %11 {
      %c0_9 = arith.constant 0 : index
      %c0_10 = arith.constant 0 : index
      %12 = vector.load %arg7[%c0_9, %c0_10] : memref<24x256xf32, #tpu.memory_space<vmem>>, vector<24x256xf32>
      %c0_11 = arith.constant 0 : index
      %c0_12 = arith.constant 0 : index
      %13 = vector.load %arg5[%c0_11, %c0_12] : memref<1x256xf32, #tpu.memory_space<vmem>>, vector<1x256xf32>
      %14 = vector.broadcast %13 : vector<1x256xf32> to vector<24x256xf32>
      %15 = arith.addf %12, %14 : vector<24x256xf32>
      %cst_13 = arith.constant 0.000000e+00 : f32
      %16 = vector.broadcast %cst_13 : f32 to vector<24x256xf32>
      %17 = arith.maximumf %15, %16 : vector<24x256xf32>
      %18 = arith.truncf %17 : vector<24x256xf32> to vector<24x256xbf16>
      %c0_14 = arith.constant 0 : index
      %c0_15 = arith.constant 0 : index
      %19 = vector.load %arg6[%c0_14, %c0_15] : memref<24x256xbf16, #tpu.memory_space<vmem>>, vector<24x256xbf16>
      tpu.vector_store %arg6[%c0_14, %c0_15], %18 {strides = array<i32>} : memref<24x256xbf16, #tpu.memory_space<vmem>>, vector<24x256xbf16>,
    } else {
    }
    return
  }
  func.func @transform_0(%arg0: i32, %arg1: i32, %arg2: i32) -> (i32, i32) {
    %c0_i32 = arith.constant 0 : i32
    return %arg0, %arg2 : i32, i32
  }
  func.func @transform_1(%arg0: i32, %arg1: i32, %arg2: i32) -> (i32, i32) {
    %c0_i32 = arith.constant 0 : i32
    return %arg2, %arg1 : i32, i32
  }
  func.func @transform_2(%arg0: i32, %arg1: i32, %arg2: i32) -> (i32, i32) {
    %c0_i32 = arith.constant 0 : i32
    %c0_i32_0 = arith.constant 0 : i32
    return %c0_i32, %arg1 : i32, i32
  }
  func.func @transform_3(%arg0: i32, %arg1: i32, %arg2: i32) -> (i32, i32) {
    %c0_i32 = arith.constant 0 : i32
    return %arg0, %arg1 : i32, i32
  }
}

module attributes {stable_mosaic.version = 11 : i64} {
  func.func @_fc_head_kernel(%arg0: i32, %arg1: memref<8x256xbf16, #tpu.memory_space<vmem>>, %arg2: memref<256x128xbf16, #tpu.memory_space<vmem>>, %arg3: memref<1x128xf32, #tpu.memory_space<vmem>>, %arg4: memref<128x128xbf16, #tpu.memory_space<vmem>>, %arg5: memref<1x128xf32, #tpu.memory_space<vmem>>, %arg6: memref<128x128xbf16, #tpu.memory_space<vmem>>, %arg7: memref<1x128xf32, #tpu.memory_space<vmem>>, %arg8: memref<8x128xf32, #tpu.memory_space<vmem>>) attributes {dimension_semantics = [#tpu.dimension_semantics<arbitrary>], iteration_bounds = array<i64: 1>, scalar_prefetch = 0 : i64, scratch_operands = 0 : i64, tpu.core_type = #tpu.core_type<tc>, window_params = [{pipeline_mode = #tpu.pipeline_mode<synchronous>, transform_indices = @transform_0, window_bounds = array<i64: 8, 256>}, {pipeline_mode = #tpu.pipeline_mode<synchronous>, transform_indices = @transform_1, window_bounds = array<i64: 256, 128>}, {pipeline_mode = #tpu.pipeline_mode<synchronous>, transform_indices = @transform_2, window_bounds = array<i64: 1, 128>}, {pipeline_mode = #tpu.pipeline_mode<synchronous>, transform_indices = @transform_3, window_bounds = array<i64: 128, 128>}, {pipeline_mode = #tpu.pipeline_mode<synchronous>, transform_indices = @transform_4, window_bounds = array<i64: 1, 128>}, {pipeline_mode = #tpu.pipeline_mode<synchronous>, transform_indices = @transform_5, window_bounds = array<i64: 128, 128>}, {pipeline_mode = #tpu.pipeline_mode<synchronous>, transform_indices = @transform_6, window_bounds = array<i64: 1, 128>}, {pipeline_mode = #tpu.pipeline_mode<synchronous>, transform_indices = @transform_7, window_bounds = array<i64: 8, 128>}]} {
    %c0 = arith.constant 0 : index
    %c0_0 = arith.constant 0 : index
    %0 = vector.load %arg1[%c0, %c0_0] : memref<8x256xbf16, #tpu.memory_space<vmem>>, vector<8x256xbf16>
    %c0_1 = arith.constant 0 : index
    %c0_2 = arith.constant 0 : index
    %1 = vector.load %arg2[%c0_1, %c0_2] : memref<256x128xbf16, #tpu.memory_space<vmem>>, vector<256x128xbf16>
    %cst = arith.constant dense<0.000000e+00> : vector<8x128xf32>
    %2 = tpu.matmul %0, %1, %cst {dimension_numbers = #tpu.dot_dimension_numbers<[1], [0], [0], [1], [0, 0, 1, 1], [], []>} : vector<8x256xbf16>, vector<256x128xbf16>, vector<8x128xf32> -> vector<8x128xf32>
    %c0_3 = arith.constant 0 : index
    %c0_4 = arith.constant 0 : index
    %3 = vector.load %arg3[%c0_3, %c0_4] : memref<1x128xf32, #tpu.memory_space<vmem>>, vector<1x128xf32>
    %4 = vector.broadcast %3 : vector<1x128xf32> to vector<8x128xf32>
    %5 = arith.addf %2, %4 : vector<8x128xf32>
    %cst_5 = arith.constant 0.000000e+00 : f32
    %6 = vector.broadcast %cst_5 : f32 to vector<8x128xf32>
    %7 = arith.maximumf %5, %6 : vector<8x128xf32>
    %8 = arith.truncf %7 : vector<8x128xf32> to vector<8x128xbf16>
    %c0_6 = arith.constant 0 : index
    %c0_7 = arith.constant 0 : index
    %9 = vector.load %arg4[%c0_6, %c0_7] : memref<128x128xbf16, #tpu.memory_space<vmem>>, vector<128x128xbf16>
    %cst_8 = arith.constant dense<0.000000e+00> : vector<8x128xf32>
    %10 = tpu.matmul %8, %9, %cst_8 {dimension_numbers = #tpu.dot_dimension_numbers<[1], [0], [0], [1], [0, 0, 1, 1], [], []>} : vector<8x128xbf16>, vector<128x128xbf16>, vector<8x128xf32> -> vector<8x128xf32>
    %c0_9 = arith.constant 0 : index
    %c0_10 = arith.constant 0 : index
    %11 = vector.load %arg5[%c0_9, %c0_10] : memref<1x128xf32, #tpu.memory_space<vmem>>, vector<1x128xf32>
    %12 = vector.broadcast %11 : vector<1x128xf32> to vector<8x128xf32>
    %13 = arith.addf %10, %12 : vector<8x128xf32>
    %cst_11 = arith.constant 0.000000e+00 : f32
    %14 = vector.broadcast %cst_11 : f32 to vector<8x128xf32>
    %15 = arith.maximumf %13, %14 : vector<8x128xf32>
    %16 = arith.truncf %15 : vector<8x128xf32> to vector<8x128xbf16>
    %c0_12 = arith.constant 0 : index
    %c0_13 = arith.constant 0 : index
    %17 = vector.load %arg6[%c0_12, %c0_13] : memref<128x128xbf16, #tpu.memory_space<vmem>>, vector<128x128xbf16>
    %cst_14 = arith.constant dense<0.000000e+00> : vector<8x128xf32>
    %18 = tpu.matmul %16, %17, %cst_14 {dimension_numbers = #tpu.dot_dimension_numbers<[1], [0], [0], [1], [0, 0, 1, 1], [], []>} : vector<8x128xbf16>, vector<128x128xbf16>, vector<8x128xf32> -> vector<8x128xf32>
    %c0_15 = arith.constant 0 : index
    %c0_16 = arith.constant 0 : index
    %19 = vector.load %arg7[%c0_15, %c0_16] : memref<1x128xf32, #tpu.memory_space<vmem>>, vector<1x128xf32>
    %20 = vector.broadcast %19 : vector<1x128xf32> to vector<8x128xf32>
    %21 = arith.addf %18, %20 : vector<8x128xf32>
    %c0_17 = arith.constant 0 : index
    %c0_18 = arith.constant 0 : index
    %22 = vector.load %arg8[%c0_17, %c0_18] : memref<8x128xf32, #tpu.memory_space<vmem>>, vector<8x128xf32>
    tpu.vector_store %arg8[%c0_17, %c0_18], %21 {strides = array<i32>} : memref<8x128xf32, #tpu.memory_space<vmem>>, vector<8x128xf32>,
    return
  }
  func.func @transform_0(%arg0: i32) -> (i32, i32) {
    %c0_i32 = arith.constant 0 : i32
    %c0_i32_0 = arith.constant 0 : i32
    %c0_i32_1 = arith.constant 0 : i32
    return %c0_i32, %c0_i32_0 : i32, i32
  }
  func.func @transform_1(%arg0: i32) -> (i32, i32) {
    %c0_i32 = arith.constant 0 : i32
    %c0_i32_0 = arith.constant 0 : i32
    %c0_i32_1 = arith.constant 0 : i32
    return %c0_i32, %c0_i32_0 : i32, i32
  }
  func.func @transform_2(%arg0: i32) -> (i32, i32) {
    %c0_i32 = arith.constant 0 : i32
    %c0_i32_0 = arith.constant 0 : i32
    %c0_i32_1 = arith.constant 0 : i32
    return %c0_i32, %c0_i32_0 : i32, i32
  }
  func.func @transform_3(%arg0: i32) -> (i32, i32) {
    %c0_i32 = arith.constant 0 : i32
    %c0_i32_0 = arith.constant 0 : i32
    %c0_i32_1 = arith.constant 0 : i32
    return %c0_i32, %c0_i32_0 : i32, i32
  }
  func.func @transform_4(%arg0: i32) -> (i32, i32) {
    %c0_i32 = arith.constant 0 : i32
    %c0_i32_0 = arith.constant 0 : i32
    %c0_i32_1 = arith.constant 0 : i32
    return %c0_i32, %c0_i32_0 : i32, i32
  }
  func.func @transform_5(%arg0: i32) -> (i32, i32) {
    %c0_i32 = arith.constant 0 : i32
    %c0_i32_0 = arith.constant 0 : i32
    %c0_i32_1 = arith.constant 0 : i32
    return %c0_i32, %c0_i32_0 : i32, i32
  }
  func.func @transform_6(%arg0: i32) -> (i32, i32) {
    %c0_i32 = arith.constant 0 : i32
    %c0_i32_0 = arith.constant 0 : i32
    %c0_i32_1 = arith.constant 0 : i32
    return %c0_i32, %c0_i32_0 : i32, i32
  }
  func.func @transform_7(%arg0: i32) -> (i32, i32) {
    %c0_i32 = arith.constant 0 : i32
    %c0_i32_0 = arith.constant 0 : i32
    %c0_i32_1 = arith.constant 0 : i32
    return %c0_i32, %c0_i32_0 : i32, i32
  }
}

</mosaic_0001>

<bundles_post_ra>
// kernel: alexnet_forward.6
= control target key start
LH: loop header
LB: loop body
LE: loop exit
PB: predicated region body
PF: predicated region fallthrough
CT: control target
= control target key end

     0   :  { %s2216_s12 = smov 0   ;;  %s2218_s13 = smov 0   ;;  %s2463_s0 = inlined_call_operand.vmem [shape: bf16[512,384], index: 0, kind: input, shape index: {}]   ;;  %s2464_s1 = inlined_call_operand.vmem [shape: bf16[384,128], index: 1, kind: input, shape index: {}]   ;;  %s2465_s2 = inlined_call_operand.vmem [shape: f32[1,128], index: 2, kind: input, shape index: {}]   ;;  %s2466_s3 = inlined_call_operand.vmem [shape: bf16[512,128], index: 3, kind: output, shape index: {}]  }
   0x1   :  { %s2220_s14 = smov 0  }
   0x2 LB: > { %s32_s15 = sadd.s32 1, %s2190_s13  ;;  %p1620_p0 = scmp.ge.s32.totalorder %s2194_s14, 1  ;;  %s2194_s14 = sphi %s2220_s14, %s13_s14   ;;  %s2190_s13 = sphi %s2218_s13, %s2468_s13   ;;  %s2186_s12 = sphi %s2216_s12, %s2467_s12  }
   0x3   : > { %p34_p1 = scmp.ge.s32.totalorder %s32_s15, 2  ;;  %p191_p2 = scmp.lt.s32.totalorder %s2194_s14, 3 }
   0x5   : > { %s2470_s15 = smov (%p34_p1, %s32_s15), 0  ;;  %p192_p3 = pnand %p1620_p0, %p191_p2 }
   0x6   : > { %s1621_s18 = sshll.u32 (!%p192_p3), %s2186_s12, 5 }
   0x7   : > { %195 = sbr.rel (%p192_p3) target bundleno = 343 (0x157), region = 32  ;;  %p236_p4 = scmp.lt.s32.totalorder (!%p192_p3), %s1621_s18, 63 }
   0xc   : > { %v2084_v0 = vld [vmem:[%s2464_s1 + $0x78] sm:$0xff]   ;;  %v2086_v2 = vld [vmem:[%s2464_s1 + $0x70] sm:$0xff]   ;;  %v2088_v4 = vld [vmem:[%s2464_s1 + $0x68] sm:$0xff]   ;;  %s2472_s18 = smov (!%p236_p4, %s1621_s18), 63 }
   0xd   : > { %v2085_v1 = vld [vmem:[%s2464_s1 + $0x38] sm:$0xff]   ;;  %1859 = vmatprep.subr.bf16.mxu0 %v2084_v0  ;;  %2043 = vmatprep.subr.bf16.mxu1 %v2084_v0  ;;  %v2087_v3 = vld [vmem:[%s2464_s1 + $0x30] sm:$0xff]   ;;  %v2089_v5 = vld [vmem:[%s2464_s1 + $0x28] sm:$0xff]   ;;  %s2059_s4 = smul.u32 12, %s2472_s18  ;;  %s1624_s25 = sshll.u32 %s2472_s18, 2 }
   0xe   : > { %1860 = vmatpush3.bf16.msra.mxu0 %v2085_v1  ;;  %2051 = vmatpush3.bf16.msra.mxu1 %v2085_v1  ;;  %v2090_v6 = vld [vmem:[%s2464_s1 + $0x60] sm:$0xff]   ;;  %v2092_v8 = vld [vmem:[%s2464_s1 + $0x58] sm:$0xff]   ;;  %v2094_v10 = vld [vmem:[%s2464_s1 + $0x50] sm:$0xff]   ;;  %s2393_s28 = scalar_lea.vmem %s2466_s3, %s1624_s25 }
   0xf   : > { %1861 = vmatprep.subr.bf16.mxu0 %v2086_v2  ;;  %2044 = vmatprep.subr.bf16.mxu1 %v2086_v2  ;;  %v2091_v7 = vld [vmem:[%s2464_s1 + $0x20] sm:$0xff]   ;;  %s2267_s11 = scalar_lea.vmem %s2463_s0, %s2059_s4  ;;  %v2093_v9 = vld [vmem:[%s2464_s1 + $0x18] sm:$0xff]   ;;  %v2095_v13 = vld [vmem:[%s2464_s1 + $0x10] sm:$0xff]  }
  0x10   : > { %v2102_v11 = vld [vmem:[%s2267_s11 + $0x4] ss:$12 sps:$4 sm:$0xff]   ;;  %v2096_v14 = vld [vmem:[%s2464_s1 + $0x48] sm:$0xff]   ;;  %v2106_v18 = vld [vmem:[%s2464_s1 + $0xb8] sm:$0xff]  }
  0x11   : > { %v2105_v12 = vld [vmem:[%s2267_s11 + $0x124] ss:$12 sps:$4 sm:$0xff]   ;;  %880 = vmatprep.mubr.bf16.mxu0 %v2102_v11  ;;  %v2097_v15 = vld [vmem:[%s2464_s1 + $0x8] sm:$0xff]   ;;  %v2116_v28 = vld [vmem:[%s2267_s11 + $0x34] ss:$12 sps:$4 sm:$0xff]  }
  0x12   : > { %1862 = vmatpush3.bf16.msra.mxu0 %v2087_v3  ;;  %2052 = vmatpush3.bf16.msra.mxu1 %v2087_v3  ;;  %v2098_v16 = vld [vmem:[%s2464_s1 + $0x40] sm:$0xff]   ;;  %v2108_v21 = vld [vmem:[%s2267_s11 + $0x1c] ss:$12 sps:$4 sm:$0xff]   ;;  %v2107_v22 = vld [vmem:[%s2464_s1 + $0xb0] sm:$0xff]  }
  0x13   : > { %1863 = vmatprep.subr.bf16.mxu0 %v2088_v4  ;;  %2045 = vmatprep.subr.bf16.mxu1 %v2088_v4  ;;  %v2099_v17 = vld [vmem:[%s2464_s1] sm:$0xff]   ;;  %v2110_v23 = vld [vmem:[%s2267_s11 + $0x13c] ss:$12 sps:$4 sm:$0xff]   ;;  %v2123_v33 = vld [vmem:[%s2464_s1 + $0x90] sm:$0xff]  }
  0x14   : > { %976 = vmatprep.mubr.bf16.mxu1 %v2105_v12  ;;  %v2100_v19 = vld [vmem:[%s2267_s11] ss:$12 sps:$4 sm:$0xff]   ;;  %v2112_v24 = vld [vmem:[%s2267_s11 + $0x18] ss:$12 sps:$4 sm:$0xff]   ;;  %v2120_v31 = vld [vmem:[%s2267_s11 + $0x30] ss:$12 sps:$4 sm:$0xff]  }
  0x15   : > { %v2103_v20 = vld [vmem:[%s2267_s11 + $0x120] ss:$12 sps:$4 sm:$0xff]   ;;  %v2113_v26 = vld [vmem:[%s2267_s11 + $0x138] ss:$12 sps:$4 sm:$0xff]   ;;  %v2121_v32 = vld [vmem:[%s2267_s11 + $0x150] ss:$12 sps:$4 sm:$0xff]  }
  0x16   : > { %1864 = vmatpush3.bf16.msra.mxu0 %v2089_v5  ;;  %2053 = vmatpush3.bf16.msra.mxu1 %v2089_v5  ;;  %v2114_v25 = vld [vmem:[%s2464_s1 + $0xa8] sm:$0xff]   ;;  %v2115_v27 = vld [vmem:[%s2464_s1 + $0xa0] sm:$0xff]   ;;  %v2122_v30 = vld [vmem:[%s2464_s1 + $0x98] sm:$0xff]  }
  0x17   : > { %1865 = vmatprep.subr.bf16.mxu0 %v2090_v6  ;;  %2046 = vmatprep.subr.bf16.mxu1 %v2090_v6  ;;  %v2118_v29 = vld [vmem:[%s2267_s11 + $0x154] ss:$12 sps:$4 sm:$0xff]   ;;  %v2124_v34 = vld [vmem:[%s2267_s11 + $0x4c] ss:$12 sps:$4 sm:$0xff]   ;;  %v2132_v39 = vld [vmem:[%s2267_s11 + $0x64] ss:$12 sps:$4 sm:$0xff]  }
  0x18   : > { %v2126_v35 = vld [vmem:[%s2267_s11 + $0x16c] ss:$12 sps:$4 sm:$0xff]   ;;  %v2128_v37 = vld [vmem:[%s2267_s11 + $0x48] ss:$12 sps:$4 sm:$0xff]   ;;  %v2131_v40 = vld [vmem:[%s2464_s1 + $0x80] sm:$0xff]  }
  0x19   : > { %v2130_v36 = vld [vmem:[%s2464_s1 + $0x88] sm:$0xff]   ;;  %v2139_v45 = vld [vmem:[%s2267_s11 + $0x38] ss:$12 sps:$4 sm:$0xff]   ;;  %v2141_v47 = vld [vmem:[%s2267_s11 + $0x50] ss:$12 sps:$4 sm:$0xff]  }
  0x1a   : > { %1866 = vmatpush3.bf16.msra.mxu0 %v2091_v7  ;;  %2054 = vmatpush3.bf16.msra.mxu1 %v2091_v7  ;;  %v2129_v38 = vld [vmem:[%s2267_s11 + $0x168] ss:$12 sps:$4 sm:$0xff]   ;;  %v2135_v42 = vld [vmem:[%s2267_s11 + $0x60] ss:$12 sps:$4 sm:$0xff]   ;;  %v2140_v46 = vld [vmem:[%s2267_s11 + $0x78] ss:$12 sps:$4 sm:$0xff]  }
  0x1b   : > { %1867 = vmatprep.subr.bf16.mxu0 %v2092_v8  ;;  %2047 = vmatprep.subr.bf16.mxu1 %v2092_v8  ;;  %v2134_v41 = vld [vmem:[%s2267_s11 + $0x8] ss:$12 sps:$4 sm:$0xff]   ;;  %v2136_v43 = vld [vmem:[%s2267_s11 + $0x20] ss:$12 sps:$4 sm:$0xff]   ;;  %v2145_v50 = vld [vmem:[%s2267_s11 + $0x90] ss:$12 sps:$4 sm:$0xff]  }
  0x1c   : > { %v2137_v44 = vld [vmem:[%s2267_s11 + $0x7c] ss:$12 sps:$4 sm:$0xff]   ;;  %v2142_v48 = vld [vmem:[%s2267_s11 + $0x94] ss:$12 sps:$4 sm:$0xff]   ;;  %v2147_v52 = vld [vmem:[%s2267_s11 + $0xac] ss:$12 sps:$4 sm:$0xff]  }
  0x1d   : > { %v2144_v49 = vld [vmem:[%s2267_s11 + $0x68] ss:$12 sps:$4 sm:$0xff]   ;;  %v2146_v51 = vld [vmem:[%s2267_s11 + $0x80] ss:$12 sps:$4 sm:$0xff]   ;;  %v2149_v53 = vld [vmem:[%s2267_s11 + $0x98] ss:$12 sps:$4 sm:$0xff]  }
  0x1e   : > { %1868 = vmatpush3.bf16.msra.mxu0 %v2093_v9  ;;  %2055 = vmatpush3.bf16.msra.mxu1 %v2093_v9  ;;  %v2150_v54 = vld [vmem:[%s2267_s11 + $0xa8] ss:$12 sps:$4 sm:$0xff]   ;;  %v2151_v55 = vld [vmem:[%s2267_s11 + $0xb0] ss:$12 sps:$4 sm:$0xff]   ;;  %v2155_v58 = vld [vmem:[%s2267_s11 + $0xc0] ss:$12 sps:$4 sm:$0xff]  }
  0x1f   : > { %1869 = vmatprep.subr.bf16.mxu0 %v2094_v10  ;;  %2048 = vmatprep.subr.bf16.mxu1 %v2094_v10  ;;  %v2152_v56 = vld [vmem:[%s2267_s11 + $0xc4] ss:$12 sps:$4 sm:$0xff]   ;;  %v2154_v57 = vld [vmem:[%s2267_s11 + $0xc8] ss:$12 sps:$4 sm:$0xff]   ;;  %v2156_v59 = vld [vmem:[%s2267_s11 + $0xe0] ss:$12 sps:$4 sm:$0xff]  }
  0x20   : > { %v2157_v60 = vld [vmem:[%s2267_s11 + $0xdc] ss:$12 sps:$4 sm:$0xff]   ;;  %v2159_v61 = vld [vmem:[%s2267_s11 + $0xf8] ss:$12 sps:$4 sm:$0xff]   ;;  %v2162_v0 = vld [vmem:[%s2267_s11 + $0xf4] ss:$12 sps:$4 sm:$0xff]  }
  0x21   : > { %v2160_v62 = vld [vmem:[%s2267_s11 + $0xd8] ss:$12 sps:$4 sm:$0xff]   ;;  %v2161_v63 = vld [vmem:[%s2267_s11 + $0x110] ss:$12 sps:$4 sm:$0xff]   ;;  %v2164_v1 = vld [vmem:[%s2267_s11 + $0x128] ss:$12 sps:$4 sm:$0xff]  }
  0x22   : > { %1870 = vmatpush3.bf16.msra.mxu0 %v2095_v13  ;;  %2056 = vmatpush3.bf16.msra.mxu1 %v2095_v13  ;;  %v2165_v2 = vld [vmem:[%s2267_s11 + $0xf0] ss:$12 sps:$4 sm:$0xff]   ;;  %v2166_v3 = vld [vmem:[%s2267_s11 + $0x140] ss:$12 sps:$4 sm:$0xff]   ;;  %v2169_v5 = vld [vmem:[%s2267_s11 + $0x158] ss:$12 sps:$4 sm:$0xff]  }
  0x23   : > { %1871 = vmatprep.subr.bf16.mxu0 %v2096_v14  ;;  %2049 = vmatprep.subr.bf16.mxu1 %v2096_v14  ;;  %v2167_v4 = vld [vmem:[%s2267_s11 + $0x10c] ss:$12 sps:$4 sm:$0xff]   ;;  %v2170_v6 = vld [vmem:[%s2267_s11 + $0x108] ss:$12 sps:$4 sm:$0xff]   ;;  %v2171_v7 = vld [vmem:[%s2267_s11 + $0x170] ss:$12 sps:$4 sm:$0xff]  }
  0x26   : > { %1872 = vmatpush3.bf16.msra.mxu0 %v2097_v15  ;;  %2057 = vmatpush3.bf16.msra.mxu1 %v2097_v15 }
  0x27   : > { %1873 = vmatprep.subr.bf16.mxu0 %v2098_v16  ;;  %2050 = vmatprep.subr.bf16.mxu1 %v2098_v16 }
  0x2a   : > { %1874 = vmatpush3.bf16.msra.mxu0 %v2099_v17  ;;  %2058 = vmatpush3.bf16.msra.mxu1 %v2099_v17 }
  0x2b   : > { %1995 = vmatprep.subr.bf16.mxu1 %v2106_v18 }
  0x2d   : > { %881 = vmatmul.mubr.bf16.vlgmr.msra.gmra.mxu0 %v2100_v19  ;;  %977 = vmatmul.mubr.bf16.vlgmr.msra.gmra.mxu1 %v2103_v20 }
  0x2e   : > { %1996 = vmatpush3.bf16.msra.mxu1 %v2106_v18  ;;  %888 = vmatprep.mubr.bf16.mxu0 %v2108_v21 }
  0x2f   : > { %1997 = vmatprep.subr.bf16.mxu1 %v2107_v22  ;;  %984 = vmatprep.mubr.bf16.mxu1 %v2110_v23 }
  0x32   : > { %1998 = vmatpush3.bf16.msra.mxu1 %v2107_v22 }
  0x33   : > { %1999 = vmatprep.subr.bf16.mxu1 %v2114_v25 }
  0x35   : > { %889 = vmatmul.mubr.bf16.gmra.mxu0 %v2112_v24  ;;  %985 = vmatmul.mubr.bf16.gmra.mxu1 %v2113_v26 }
  0x36   : > { %2000 = vmatpush3.bf16.msra.mxu1 %v2114_v25  ;;  %896 = vmatprep.mubr.bf16.mxu0 %v2116_v28 }
  0x37   : > { %2001 = vmatprep.subr.bf16.mxu1 %v2115_v27  ;;  %992 = vmatprep.mubr.bf16.mxu1 %v2118_v29 }
  0x3a   : > { %2002 = vmatpush3.bf16.msra.mxu1 %v2115_v27 }
  0x3b   : > { %2003 = vmatprep.subr.bf16.mxu1 %v2122_v30 }
  0x3d   : > { %897 = vmatmul.mubr.bf16.gmra.mxu0 %v2120_v31  ;;  %993 = vmatmul.mubr.bf16.gmra.mxu1 %v2121_v32 }
  0x3e   : > { %2004 = vmatpush3.bf16.msra.mxu1 %v2122_v30  ;;  %904 = vmatprep.mubr.bf16.mxu0 %v2124_v34 }
  0x3f   : > { %2005 = vmatprep.subr.bf16.mxu1 %v2123_v33  ;;  %1000 = vmatprep.mubr.bf16.mxu1 %v2126_v35 }
  0x42   : > { %2006 = vmatpush3.bf16.msra.mxu1 %v2123_v33 }
  0x43   : > { %2007 = vmatprep.subr.bf16.mxu1 %v2130_v36 }
  0x45   : > { %905 = vmatmul.mubr.bf16.gmra.mxu0 %v2128_v37  ;;  %1001 = vmatmul.mubr.bf16.gmra.mxu1 %v2129_v38 }
  0x46   : > { %2008 = vmatpush3.bf16.msra.mxu1 %v2130_v36  ;;  %912 = vmatprep.mubr.bf16.mxu0 %v2132_v39 }
  0x47   : > { %2009 = vmatprep.subr.bf16.mxu1 %v2131_v40  ;;  %2011 = vmatprep.mubr.bf16.mxu1 %v2134_v41 }
  0x4a   : > { %2010 = vmatpush3.bf16.msra.mxu1 %v2131_v40 }
  0x4d   : > { %913 = vmatmul.mubr.bf16.gmra.mxu0 %v2135_v42  ;;  %2012 = vmatmul.mubr.bf16.vlgmr.msra.gmra.mxu1 %v2136_v43 }
  0x4e   : > { %920 = vmatprep.mubr.bf16.mxu0 %v2137_v44  ;;  %2015 = vmatprep.mubr.bf16.mxu1 %v2139_v45 }
  0x55   : > { %921 = vmatmul.mubr.bf16.gmra.mxu0 %v2140_v46  ;;  %2016 = vmatmul.mubr.bf16.gmra.mxu1 %v2141_v47 }
  0x56   : > { %928 = vmatprep.mubr.bf16.mxu0 %v2142_v48  ;;  %2019 = vmatprep.mubr.bf16.mxu1 %v2144_v49 }
  0x5d   : > { %929 = vmatmul.mubr.bf16.gmra.mxu0 %v2145_v50  ;;  %2020 = vmatmul.mubr.bf16.gmra.mxu1 %v2146_v51 }
  0x5e   : > { %936 = vmatprep.mubr.bf16.mxu0 %v2147_v52  ;;  %2023 = vmatprep.mubr.bf16.mxu1 %v2149_v53  ;;  %v2383_v52 = vld [vmem:[%s2465_s2] ss:$0 sm:$0xff] }
  0x65   : > { %937 = vmatmul.mubr.bf16.gmra.mxu0 %v2150_v54  ;;  %2024 = vmatmul.mubr.bf16.gmra.mxu1 %v2151_v55 }
  0x66   : > { %944 = vmatprep.mubr.bf16.mxu0 %v2152_v56  ;;  %2027 = vmatprep.mubr.bf16.mxu1 %v2154_v57 }
  0x6d   : > { %945 = vmatmul.mubr.bf16.gmra.mxu0 %v2155_v58  ;;  %2028 = vmatmul.mubr.bf16.gmra.mxu1 %v2156_v59 }
  0x6e   : > { %952 = vmatprep.mubr.bf16.mxu0 %v2157_v60  ;;  %2031 = vmatprep.mubr.bf16.mxu1 %v2159_v61 }
  0x75   : > { %953 = vmatmul.mubr.bf16.gmra.mxu0 %v2160_v62  ;;  %2032 = vmatmul.mubr.bf16.gmra.mxu1 %v2161_v63 }
  0x76   : > { %960 = vmatprep.mubr.bf16.mxu0 %v2162_v0  ;;  %2035 = vmatprep.mubr.bf16.mxu1 %v2164_v1 }
  0x7d   : > { %961 = vmatmul.mubr.bf16.gmra.mxu0 %v2165_v2  ;;  %2036 = vmatmul.mubr.bf16.gmra.mxu1 %v2166_v3 }
  0x7e   : > { %968 = vmatprep.mubr.bf16.mxu0 %v2167_v4  ;;  %2039 = vmatprep.mubr.bf16.mxu1 %v2169_v5 }
  0x85   : > { %969 = vmatmul.mubr.bf16.gmra.mxu0 %v2170_v6  ;;  %2040 = vmatmul.mubr.bf16.gmra.mxu1 %v2171_v7 }
  0xed   : > { %v1875_v8 = vpop.f32.mrf.mxu0  ;;  %v1947_v9 = vpop.f32.mrf.mxu1 }
  0xef   : > { %v1876_v10 = vpop.f32.mrf.mxu0  ;;  %v1948_v11 = vpop.f32.mrf.mxu1 }
  0xf0   : > { %v2362_v12 = vadd.f32 %v1948_v11, %v1947_v9  ;;  %v1877_v50 = vadd.f32 %v1876_v10, %v1875_v8 }
  0xf1   : > { %v1878_v13 = vpop.f32.mrf.mxu0  ;;  %v1950_v14 = vpop.f32.mrf.mxu1 }
  0xf3   : > { %v1879_v15 = vpop.f32.mrf.mxu0  ;;  %v1951_v16 = vpop.f32.mrf.mxu1 }
  0xf4   : > { %v2364_v17 = vadd.f32 %v1951_v16, %v1950_v14  ;;  %v1880_v59 = vadd.f32 %v1879_v15, %v1878_v13 }
  0xf5   : > { %v1881_v18 = vpop.f32.mrf.mxu0  ;;  %v1953_v19 = vpop.f32.mrf.mxu1 }
  0xf7   : > { %v1882_v20 = vpop.f32.mrf.mxu0  ;;  %v1954_v21 = vpop.f32.mrf.mxu1 }
  0xf8   : > { %v2366_v22 = vadd.f32 %v1954_v21, %v1953_v19  ;;  %v1883_v47 = vadd.f32 %v1882_v20, %v1881_v18 }
  0xf9   : > { %v1884_v23 = vpop.f32.mrf.mxu0  ;;  %v1956_v24 = vpop.f32.mrf.mxu1 }
  0xfb   : > { %v1885_v25 = vpop.f32.mrf.mxu0  ;;  %v1957_v26 = vpop.f32.mrf.mxu1 }
  0xfc   : > { %v2368_v27 = vadd.f32 %v1957_v26, %v1956_v24  ;;  %v1886_v55 = vadd.f32 %v1885_v25, %v1884_v23 }
  0xfd   : > { %v1887_v28 = vpop.f32.mrf.mxu0  ;;  %v1959_v29 = vpop.f32.mrf.mxu1 }
  0xff   : > { %v1888_v30 = vpop.f32.mrf.mxu0  ;;  %v1960_v31 = vpop.f32.mrf.mxu1 }
 0x100   : > { %v2370_v32 = vadd.f32 %v1960_v31, %v1959_v29  ;;  %v1889_v10 = vadd.f32 %v1888_v30, %v1887_v28 }
 0x101   : > { %v1890_v33 = vpop.f32.mrf.mxu0  ;;  %v1962_v34 = vpop.f32.mrf.mxu1 }
 0x103   : > { %v1891_v35 = vpop.f32.mrf.mxu0  ;;  %v1963_v36 = vpop.f32.mrf.mxu1 }
 0x104   : > { %v2372_v37 = vadd.f32 %v1963_v36, %v1962_v34  ;;  %v1892_v23 = vadd.f32 %v1891_v35, %v1890_v33 }
 0x105   : > { %v1893_v38 = vpop.f32.mrf.mxu0  ;;  %v1965_v39 = vpop.f32.mrf.mxu1 }
 0x107   : > { %v1894_v40 = vpop.f32.mrf.mxu0  ;;  %v1966_v41 = vpop.f32.mrf.mxu1 }
 0x108   : > { %v2374_v42 = vadd.f32 %v1966_v41, %v1965_v39  ;;  %v1895_v0 = vadd.f32 %v1894_v40, %v1893_v38 }
 0x109   : > { %v1896_v43 = vpop.f32.mrf.mxu0  ;;  %v2376_v44 = vpop.f32.mrf.mxu1 }
 0x10b   : > { %v1897_v45 = vpop.f32.mrf.mxu0  ;;  %v2378_v46 = vpop.f32.mrf.mxu1 }
 0x10c   : > { %v1898_v14 = vadd.f32 %v1897_v45, %v1896_v43 }
 0x10d   : > { %v1899_v48 = vpop.f32.mrf.mxu0  ;;  %v2013_v49 = vpop.f32.mrf.mxu1 }
 0x10e   : > { %v1052_v51 = vadd.f32 %v2013_v49, %v1883_v47 }
 0x10f   : > { %v1900_v53 = vpop.f32.mrf.mxu0  ;;  %v1043_v54 = vpop.f32.mrf.mxu1 }
 0x110   : > { %v1044_v56 = vadd.f32 %v1877_v50, %v1043_v54  ;;  %v1278_v60 = vadd.f32 %v2383_v52, %v1052_v51  ;;  %v1901_v43 = vadd.f32 %v1900_v53, %v1899_v48 }
 0x111   : > { %v1902_v57 = vpop.f32.mrf.mxu0  ;;  %v2014_v58 = vpop.f32.mrf.mxu1 }
 0x112   : > { %v1055_v61 = vadd.f32 %v2014_v58, %v1886_v55  ;;  %v1276_v1 = vadd.f32 %v2383_v52, %v1044_v56  ;;  %v1310_v6 = vmax.f32 %v1278_v60, 0.0 }
 0x113   : > { %v1903_v62 = vpop.f32.mrf.mxu0  ;;  %v1046_v63 = vpop.f32.mrf.mxu1 }
 0x114   : > { %v1279_v2 = vadd.f32 %v2383_v52, %v1055_v61  ;;  %v1047_v3 = vadd.f32 %v1880_v59, %v1046_v63  ;;  %v1308_v15 = vmax.f32 %v1276_v1, 0.0  ;;  %v1904_v59 = vadd.f32 %v1903_v62, %v1902_v57 }
 0x115   : > { %v1905_v4 = vpop.f32.mrf.mxu0  ;;  %v2017_v5 = vpop.f32.mrf.mxu1 }
 0x116   : > { %v1311_v7 = vmax.f32 %v1279_v2, 0.0  ;;  %v1277_v8 = vadd.f32 %v2383_v52, %v1047_v3  ;;  %v1068_v9 = vadd.f32 %v2017_v5, %v1895_v0 }
 0x117   : > { %v1906_v11 = vpop.f32.mrf.mxu0  ;;  %v1059_v13 = vpop.f32.mrf.mxu1 }
 0x118   : > { %v1772_v16 = vpack.c.bf16 %v1311_v7, %v1310_v6  ;;  %v1309_v18 = vmax.f32 %v1277_v8, 0.0  ;;  %v1060_v19 = vadd.f32 %v1889_v10, %v1059_v13  ;;  %v1282_v25 = vadd.f32 %v2383_v52, %v1068_v9 }
 0x119   : > { %v1908_v20 = vpop.f32.mrf.mxu0  ;;  %v2018_v21 = vpop.f32.mrf.mxu1  ;;  %v1907_v30 = vadd.f32 %v1906_v11, %v1905_v4 }
 0x11a   : > { %1844 = vst [vmem:[%s2393_s28 + $0x8] sm:$0xff] %v1772_v16   ;;  %v1767_v24 = vpack.c.bf16 %v1309_v18, %v1308_v15  ;;  %v1071_v26 = vadd.f32 %v2018_v21, %v1898_v14  ;;  %v1280_v31 = vadd.f32 %v2383_v52, %v1060_v19  ;;  %v1314_v40 = vmax.f32 %v1282_v25, 0.0 }
 0x11b   : > { %v1909_v28 = vpop.f32.mrf.mxu0  ;;  %v1062_v29 = vpop.f32.mrf.mxu1 }
 0x11c   : > { %1768 = vst [vmem:[%s2393_s28] sm:$0xff] %v1767_v24   ;;  %v1283_v34 = vadd.f32 %v2383_v52, %v1071_v26  ;;  %v1063_v36 = vadd.f32 %v1892_v23, %v1062_v29  ;;  %v1312_v49 = vmax.f32 %v1280_v31, 0.0  ;;  %v1910_v51 = vadd.f32 %v1909_v28, %v1908_v20 }
 0x11d   : > { %v1911_v38 = vpop.f32.mrf.mxu0  ;;  %v2021_v39 = vpop.f32.mrf.mxu1 }
 0x11e   : > { %v1315_v41 = vmax.f32 %v1283_v34, 0.0  ;;  %v1281_v33 = vadd.f32 %v2383_v52, %v1063_v36  ;;  %v1084_v35 = vadd.f32 %v2021_v39, %v1907_v30 }
 0x11f   : > { %v1912_v45 = vpop.f32.mrf.mxu0  ;;  %v1075_v47 = vpop.f32.mrf.mxu1 }
 0x120   : > { %v1782_v50 = vpack.c.bf16 %v1315_v41, %v1314_v40  ;;  %v1313_v54 = vmax.f32 %v1281_v33, 0.0  ;;  %v1076_v55 = vadd.f32 %v1901_v43, %v1075_v47  ;;  %v1286_v61 = vadd.f32 %v2383_v52, %v1084_v35 }
 0x121   : > { %v1914_v56 = vpop.f32.mrf.mxu0  ;;  %v2022_v58 = vpop.f32.mrf.mxu1  ;;  %v1913_v6 = vadd.f32 %v1912_v45, %v1911_v38 }
 0x122   : > { %1846 = vst [vmem:[%s2393_s28 + $0x18] sm:$0xff] %v1782_v50   ;;  %v1777_v60 = vpack.c.bf16 %v1313_v54, %v1312_v49  ;;  %v1087_v63 = vadd.f32 %v2022_v58, %v1910_v51  ;;  %v1284_v0 = vadd.f32 %v2383_v52, %v1076_v55  ;;  %v1318_v5 = vmax.f32 %v1286_v61, 0.0 }
 0x123   : > { %v1915_v1 = vpop.f32.mrf.mxu0  ;;  %v1078_v48 = vpop.f32.mrf.mxu1 }
 0x124   : > { %1845 = vst [vmem:[%s2393_s28 + $0x10] sm:$0xff] %v1777_v60   ;;  %v1287_v53 = vadd.f32 %v2383_v52, %v1087_v63  ;;  %v1079_v2 = vadd.f32 %v1904_v59, %v1078_v48  ;;  %v1316_v62 = vmax.f32 %v1284_v0, 0.0  ;;  %v1916_v18 = vadd.f32 %v1915_v1, %v1914_v56 }
 0x125   : > { %v1917_v3 = vpop.f32.mrf.mxu0  ;;  %v2025_v4 = vpop.f32.mrf.mxu1 }
 0x126   : > { %v1319_v7 = vmax.f32 %v1287_v53, 0.0  ;;  %v1285_v57 = vadd.f32 %v2383_v52, %v1079_v2 }
 0x127   : > { %v1918_v8 = vpop.f32.mrf.mxu0  ;;  %v1091_v9 = vpop.f32.mrf.mxu1 }
 0x128   : > { %v1792_v10 = vpack.c.bf16 %v1319_v7, %v1318_v5  ;;  %v1317_v11 = vmax.f32 %v1285_v57, 0.0  ;;  %v1919_v13 = vadd.f32 %v1918_v8, %v1917_v3  ;;  %v1092_v14 = vadd.f32 %v1913_v6, %v1091_v9 }
 0x129   : > { %v1920_v15 = vpop.f32.mrf.mxu0  ;;  %v2026_v16 = vpop.f32.mrf.mxu1 }
 0x12a   : > { %1848 = vst [vmem:[%s2393_s28 + $0x28] sm:$0xff] %v1792_v10   ;;  %v1787_v19 = vpack.c.bf16 %v1317_v11, %v1316_v62  ;;  %v1100_v20 = vadd.f32 %v2025_v4, %v1919_v13  ;;  %v1288_v24 = vadd.f32 %v2383_v52, %v1092_v14 }
 0x12b   : > { %v1921_v21 = vpop.f32.mrf.mxu0  ;;  %v1094_v23 = vpop.f32.mrf.mxu1 }
 0x12c   : > { %1847 = vst [vmem:[%s2393_s28 + $0x20] sm:$0xff] %v1787_v19   ;;  %v1922_v25 = vadd.f32 %v1921_v21, %v1920_v15  ;;  %v1095_v26 = vadd.f32 %v1916_v18, %v1094_v23  ;;  %v1290_v30 = vadd.f32 %v2383_v52, %v1100_v20  ;;  %v1320_v39 = vmax.f32 %v1288_v24, 0.0 }
 0x12d   : > { %v1923_v28 = vpop.f32.mrf.mxu0  ;;  %v2029_v29 = vpop.f32.mrf.mxu1 }
 0x12e   : > { %v1103_v31 = vadd.f32 %v2026_v16, %v1922_v25  ;;  %v1289_v34 = vadd.f32 %v2383_v52, %v1095_v26  ;;  %v1322_v45 = vmax.f32 %v1290_v30, 0.0 }
 0x12f   : > { %v1924_v36 = vpop.f32.mrf.mxu0  ;;  %v1107_v38 = vpop.f32.mrf.mxu1 }
 0x130   : > { %v1291_v40 = vadd.f32 %v2383_v52, %v1103_v31  ;;  %v1321_v41 = vmax.f32 %v1289_v34, 0.0  ;;  %v1925_v33 = vadd.f32 %v1924_v36, %v1923_v28 }
 0x131   : > { %v1926_v35 = vpop.f32.mrf.mxu0  ;;  %v2030_v43 = vpop.f32.mrf.mxu1 }
 0x132   : > { %v1323_v47 = vmax.f32 %v1291_v40, 0.0  ;;  %v1797_v49 = vpack.c.bf16 %v1321_v41, %v1320_v39  ;;  %v1108_v50 = vadd.f32 %v1925_v33, %v1107_v38 }
 0x133   : > { %v1927_v51 = vpop.f32.mrf.mxu0  ;;  %v1110_v54 = vpop.f32.mrf.mxu1 }
 0x134   : > { %v1802_v55 = vpack.c.bf16 %v1323_v47, %v1322_v45  ;;  %1849 = vst [vmem:[%s2393_s28 + $0x30] sm:$0xff] %v1797_v49   ;;  %v1928_v56 = vadd.f32 %v1927_v51, %v1926_v35  ;;  %v1292_v60 = vadd.f32 %v2383_v52, %v1108_v50  ;;  %v1970_v49 = vadd.f32 %v2378_v46, %v2376_v44 }
 0x135   : > { %v1929_v58 = vpop.f32.mrf.mxu0  ;;  %v2414_v59 = vpop.f32.mrf.mxu1 }
 0x136   : > { %1850 = vst [vmem:[%s2393_s28 + $0x38] sm:$0xff] %v1802_v55   ;;  %v1111_v61 = vadd.f32 %v1928_v56, %v1110_v54  ;;  %v1324_v3 = vmax.f32 %v1292_v60, 0.0 }
 0x137   : > { %v1930_v63 = vpop.f32.mrf.mxu0  ;;  %v1123_v0 = vpop.f32.mrf.mxu1 }
 0x138   : > { %v1293_v1 = vadd.f32 %v2383_v52, %v1111_v61  ;;  %v1931_v48 = vadd.f32 %v1930_v63, %v1929_v58 }
 0x139   : > { %v1932_v53 = vpop.f32.mrf.mxu0  ;;  %v2419_v2 = vpop.f32.mrf.mxu1 }
 0x13a   : > { %v1325_v4 = vmax.f32 %v1293_v1, 0.0  ;;  %v1116_v5 = vadd.f32 %v2029_v29, %v1931_v48 }
 0x13b   : > { %v1933_v6 = vpop.f32.mrf.mxu0  ;;  %v1126_v7 = vpop.f32.mrf.mxu1 }
 0x13c   : > { %v1807_v57 = vpack.c.bf16 %v1325_v4, %v1324_v3  ;;  %v1934_v62 = vadd.f32 %v1933_v6, %v1932_v53  ;;  %v1294_v10 = vadd.f32 %v2383_v52, %v1116_v5 }
 0x13d   : > { %v1935_v8 = vpop.f32.mrf.mxu0  ;;  %v2037_v9 = vpop.f32.mrf.mxu1 }
 0x13e   : > { %1851 = vst [vmem:[%s2393_s28 + $0x40] sm:$0xff] %v1807_v57   ;;  %v1119_v11 = vadd.f32 %v2030_v43, %v1934_v62  ;;  %v1148_v13 = vadd.f32 %v2037_v9, %v2366_v22  ;;  %v1326_v23 = vmax.f32 %v1294_v10, 0.0 }
 0x13f   : > { %v1936_v14 = vpop.f32.mrf.mxu0  ;;  %v1139_v15 = vpop.f32.mrf.mxu1 }
 0x140   : > { %v1295_v16 = vadd.f32 %v2383_v52, %v1119_v11  ;;  %v1937_v18 = vadd.f32 %v1936_v14, %v1935_v8  ;;  %v1140_v19 = vadd.f32 %v2362_v12, %v1139_v15  ;;  %v1302_v26 = vadd.f32 %v2383_v52, %v1148_v13 }
 0x141   : > { %v1938_v20 = vpop.f32.mrf.mxu0  ;;  %v2038_v21 = vpop.f32.mrf.mxu1 }
 0x142   : > { %v1327_v24 = vmax.f32 %v1295_v16, 0.0  ;;  %v1124_v25 = vadd.f32 %v1937_v18, %v1123_v0  ;;  %v1151_v28 = vadd.f32 %v2038_v21, %v2368_v27  ;;  %v1300_v34 = vadd.f32 %v2383_v52, %v1140_v19 }
 0x143   : > { %v1939_v29 = vpop.f32.mrf.mxu0  ;;  %v1142_v30 = vpop.f32.mrf.mxu1  ;;  %v1334_v33 = vmax.f32 %v1302_v26, 0.0 }
 0x144   : > { %v1812_v22 = vpack.c.bf16 %v1327_v24, %v1326_v23  ;;  %v1940_v31 = vadd.f32 %v1939_v29, %v1938_v20  ;;  %v1303_v36 = vadd.f32 %v2383_v52, %v1151_v28  ;;  %v1143_v12 = vadd.f32 %v2364_v17, %v1142_v30 }
 0x145   : > { %v1941_v38 = vpop.f32.mrf.mxu0  ;;  %v2041_v39 = vpop.f32.mrf.mxu1  ;;  %v1296_v40 = vadd.f32 %v2383_v52, %v1124_v25  ;;  %v1332_v51 = vmax.f32 %v1300_v34, 0.0 }
 0x146   : > { %1852 = vst [vmem:[%s2393_s28 + $0x48] sm:$0xff] %v1812_v22   ;;  %v1127_v41 = vadd.f32 %v1940_v31, %v1126_v7  ;;  %v1335_v35 = vmax.f32 %v1303_v36, 0.0  ;;  %v1301_v27 = vadd.f32 %v2383_v52, %v1143_v12  ;;  %v1164_v43 = vadd.f32 %v2041_v39, %v2374_v42 }
 0x147   : > { %v1942_v45 = vpop.f32.mrf.mxu0  ;;  %v1155_v47 = vpop.f32.mrf.mxu1  ;;  %v1328_v61 = vmax.f32 %v1296_v40, 0.0 }
 0x148   : > { %v1297_v17 = vadd.f32 %v2383_v52, %v1127_v41  ;;  %v1943_v50 = vadd.f32 %v1942_v45, %v1941_v38  ;;  %v1832_v54 = vpack.c.bf16 %v1335_v35, %v1334_v33  ;;  %v1333_v55 = vmax.f32 %v1301_v27, 0.0 }
 0x149   : > { %v1156_v56 = vadd.f32 %v2370_v32, %v1155_v47  ;;  %v1944_v58 = vpop.f32.mrf.mxu0  ;;  %v2042_v60 = vpop.f32.mrf.mxu1  ;;  %v1306_v44 = vadd.f32 %v2383_v52, %v1164_v43 }
 0x14a   : > { %v1329_v63 = vmax.f32 %v1297_v17, 0.0  ;;  %v1132_v42 = vadd.f32 %v2414_v59, %v1943_v50  ;;  %1856 = vst [vmem:[%s2393_s28 + $0x68] sm:$0xff] %v1832_v54   ;;  %v1827_v0 = vpack.c.bf16 %v1333_v55, %v1332_v51  ;;  %v1167_v46 = vadd.f32 %v2042_v60, %v1970_v49 }
 0x14b   : > { %v1945_v1 = vpop.f32.mrf.mxu0  ;;  %v1158_v48 = vpop.f32.mrf.mxu1  ;;  %v1304_v32 = vadd.f32 %v2383_v52, %v1156_v56  ;;  %v1338_v7 = vmax.f32 %v1306_v44, 0.0 }
 0x14c   : > { %v1817_v53 = vpack.c.bf16 %v1329_v63, %v1328_v61  ;;  %v1946_v3 = vadd.f32 %v1945_v1, %v1944_v58  ;;  %1855 = vst [vmem:[%s2393_s28 + $0x60] sm:$0xff] %v1827_v0   ;;  %v1307_v4 = vadd.f32 %v2383_v52, %v1167_v46  ;;  %v1159_v5 = vadd.f32 %v2372_v37, %v1158_v48 }
 0x14d   : > { %v1298_v59 = vadd.f32 %v2383_v52, %v1132_v42  ;;  %v1336_v9 = vmax.f32 %v1304_v32, 0.0 }
 0x14e   : > { %1853 = vst [vmem:[%s2393_s28 + $0x50] sm:$0xff] %v1817_v53   ;;  %v1135_v6 = vadd.f32 %v2419_v2, %v1946_v3  ;;  %v1339_v57 = vmax.f32 %v1307_v4, 0.0  ;;  %v1305_v62 = vadd.f32 %v2383_v52, %v1159_v5 }
 0x14f   : > { %v1330_v13 = vmax.f32 %v1298_v59, 0.0 }
 0x150   : > { %v1299_v8 = vadd.f32 %v2383_v52, %v1135_v6  ;;  %v1842_v10 = vpack.c.bf16 %v1339_v57, %v1338_v7  ;;  %v1337_v11 = vmax.f32 %v1305_v62, 0.0 }
 0x152   : > { %v1331_v14 = vmax.f32 %v1299_v8, 0.0  ;;  %1858 = vst [vmem:[%s2393_s28 + $0x78] sm:$0xff] %v1842_v10   ;;  %v1837_v37 = vpack.c.bf16 %v1337_v11, %v1336_v9 }
 0x154   : > { %v1822_v15 = vpack.c.bf16 %v1331_v14, %v1330_v13  ;;  %1857 = vst [vmem:[%s2393_s28 + $0x70] sm:$0xff] %v1837_v37  }
 0x156   : > { %1854 = vst [vmem:[%s2393_s28 + $0x58] sm:$0xff] %v1822_v15  }
 0x157 PF: > { %s13_s14 = sadd.s32 1, %s2194_s14   ;;  %s2467_s12 = smov %s2190_s13 }
 0x158   : > { %p10_p5 = scmp.ge.s32.totalorder %s13_s14, 4   ;;  %s2468_s13 = smov %s2470_s15 }
 0x15a   :  { %12 = sbr.rel (!%p10_p5) target bundleno = 2 (0x2), region = 76 }

// kernel: alexnet_forward.7
= control target key start
LH: loop header
LB: loop body
LE: loop exit
PB: predicated region body
PF: predicated region fallthrough
CT: control target
= control target key end

     0   :  { %s1881_s12 = smov 0   ;;  %s1883_s13 = smov 0   ;;  %s2170_s0 = inlined_call_operand.vmem [shape: bf16[104,2048], index: 0, kind: input, shape index: {}]   ;;  %s2171_s1 = inlined_call_operand.vmem [shape: bf16[2048,256], index: 1, kind: input, shape index: {}]   ;;  %s2172_s2 = inlined_call_operand.vmem [shape: f32[1,256], index: 2, kind: input, shape index: {}]   ;;  %s2173_s3 = inlined_call_operand.vmem [shape: bf16[104,256], index: 3, kind: output, shape index: {}]  }
   0x1   :  { %s1885_s14 = smov 0   ;;  %s1887_s15 = smov 0  }
   0x2   :  { %s1889_s16 = smov 0  }
   0x3 LB: > { %s25_s17 = sadd.s32 1, %s1854_s15  ;;  %p48_p1 = scmp.ne.s32.totalorder %s1846_s13, %s1842_s12  ;;  %s1858_s16 = sphi %s1889_s16, %s13_s16   ;;  %s1854_s15 = sphi %s1887_s15, %s2177_s15   ;;  %s1850_s14 = sphi %s1885_s14, %s2176_s14   ;;  %s1846_s13 = sphi %s1883_s13, %s2175_s13   ;;  %s1842_s12 = sphi %s1881_s12, %s2174_s12  }
   0x4   : > { %p26_p0 = scmp.ge.s32.totalorder %s25_s17, 4  ;;  %p49_p2 = scmp.eq.s32.totalorder %s1858_s16, 0 }
   0x5   : > { %s41_s19 = sadd.s32 1, %s1846_s13  ;;  %p1508_p5 = scmp.ge.s32.totalorder %s1858_s16, 4 }
   0x6   : > { %s2179_s17 = smov (%p26_p0, %s25_s17), 0  ;;  %p50_p3 = por %p49_p2, %p48_p1 }
   0x7   : > { %s37_s18 = ssub.s32 %s1854_s15, %s2179_s17  ;;  %164 = sbr.rel (%p1508_p5) target bundleno = 29 (0x1d), region = 20 }
   0x8   : > { %p39_p4 = scmp.eq.s32.totalorder %s37_s18, 0 }
   0xa   : > { %s1916_s20 = scalar_select %p39_p4, %s1846_s13, %s41_s19  }
   0xc   : > { %167 = sbr.rel (!%p50_p3) target bundleno = 29 (0x1d), region = 24  ;;  %s169_s21 = sand.u32 (%p50_p3), 1, %s1846_s13  }
   0xd   : > { %s1626_s22 = sshll.u32 (%p50_p3), %s1854_s15, 4  ;;  %s1641_s23 = smul.u32 (%p50_p3), 208, %s169_s21 }
   0xe   : > { %s1924_s26 = scalar_lea.vmem (%p50_p3), %s2170_s0, %s1626_s22 }
   0xf   : > { %v190_v0 = vld [vmem:[%s1924_s26] sm:$0xff] (%p50_p3)  ;;  %v192_v1 = vld [vmem:[%s1924_s26 + $0x8] sm:$0xff] (%p50_p3)  ;;  %s1932_s27 = scalar_lea.vmem (%p50_p3), [#allocation3], %s1641_s23 }
  0x10   : > { %v194_v2 = vld [vmem:[%s1924_s26 + $0x40] sm:$0xff] (%p50_p3)  ;;  %v196_v3 = vld [vmem:[%s1924_s26 + $0x48] sm:$0xff] (%p50_p3)  ;;  %191 = vst [vmem:[%s1932_s27] sm:$0xff] (%p50_p3), %v190_v0  ;;  %193 = vst [vmem:[%s1932_s27 + $0x8] sm:$0xff] (%p50_p3), %v192_v1 }
  0x11   : > { %v198_v4 = vld [vmem:[%s1924_s26 + $0x80] sm:$0xff]  ;;  %v200_v5 = vld [vmem:[%s1924_s26 + $0x88] sm:$0xff]  ;;  %195 = vst [vmem:[%s1932_s27 + $0x10] sm:$0xff] %v194_v2  ;;  %197 = vst [vmem:[%s1932_s27 + $0x18] sm:$0xff] %v196_v3 }
  0x12   : > { %199 = vst [vmem:[%s1932_s27 + $0x20] sm:$0xff] %v198_v4  ;;  %201 = vst [vmem:[%s1932_s27 + $0x28] sm:$0xff] %v200_v5  ;;  %v202_v6 = vld [vmem:[%s1924_s26 + $0xc0] sm:$0xff]  ;;  %v204_v7 = vld [vmem:[%s1924_s26 + $0xc8] sm:$0xff] }
  0x13   : > { %v206_v8 = vld [vmem:[%s1924_s26 + $0x100] sm:$0xff]  ;;  %203 = vst [vmem:[%s1932_s27 + $0x30] sm:$0xff] %v202_v6  ;;  %205 = vst [vmem:[%s1932_s27 + $0x38] sm:$0xff] %v204_v7  ;;  %v208_v9 = vld [vmem:[%s1924_s26 + $0x108] sm:$0xff] }
  0x14   : > { %207 = vst [vmem:[%s1932_s27 + $0x40] sm:$0xff] %v206_v8  ;;  %v210_v10 = vld [vmem:[%s1924_s26 + $0x140] sm:$0xff]  ;;  %v212_v11 = vld [vmem:[%s1924_s26 + $0x148] sm:$0xff]  ;;  %209 = vst [vmem:[%s1932_s27 + $0x48] sm:$0xff] %v208_v9 }
  0x15   : > { %211 = vst [vmem:[%s1932_s27 + $0x50] sm:$0xff] %v210_v10  ;;  %213 = vst [vmem:[%s1932_s27 + $0x58] sm:$0xff] %v212_v11  ;;  %v214_v12 = vld [vmem:[%s1924_s26 + $0x180] sm:$0xff]  ;;  %v216_v13 = vld [vmem:[%s1924_s26 + $0x188] sm:$0xff] }
  0x16   : > { %v218_v14 = vld [vmem:[%s1924_s26 + $0x1c0] sm:$0xff]  ;;  %215 = vst [vmem:[%s1932_s27 + $0x60] sm:$0xff] %v214_v12  ;;  %217 = vst [vmem:[%s1932_s27 + $0x68] sm:$0xff] %v216_v13  ;;  %v220_v15 = vld [vmem:[%s1924_s26 + $0x1c8] sm:$0xff] }
  0x17   : > { %219 = vst [vmem:[%s1932_s27 + $0x70] sm:$0xff] %v218_v14  ;;  %v222_v16 = vld [vmem:[%s1924_s26 + $0x200] sm:$0xff]  ;;  %v224_v17 = vld [vmem:[%s1924_s26 + $0x208] sm:$0xff]  ;;  %221 = vst [vmem:[%s1932_s27 + $0x78] sm:$0xff] %v220_v15 }
  0x18   : > { %223 = vst [vmem:[%s1932_s27 + $0x80] sm:$0xff] %v222_v16  ;;  %225 = vst [vmem:[%s1932_s27 + $0x88] sm:$0xff] %v224_v17  ;;  %v226_v18 = vld [vmem:[%s1924_s26 + $0x240] sm:$0xff]  ;;  %v228_v19 = vld [vmem:[%s1924_s26 + $0x248] sm:$0xff] }
  0x19   : > { %v230_v20 = vld [vmem:[%s1924_s26 + $0x280] sm:$0xff]  ;;  %227 = vst [vmem:[%s1932_s27 + $0x90] sm:$0xff] %v226_v18  ;;  %229 = vst [vmem:[%s1932_s27 + $0x98] sm:$0xff] %v228_v19  ;;  %v232_v21 = vld [vmem:[%s1924_s26 + $0x288] sm:$0xff] }
  0x1a   : > { %231 = vst [vmem:[%s1932_s27 + $0xa0] sm:$0xff] %v230_v20  ;;  %v234_v22 = vld [vmem:[%s1924_s26 + $0x2c0] sm:$0xff]  ;;  %v236_v23 = vld [vmem:[%s1924_s26 + $0x2c8] sm:$0xff]  ;;  %233 = vst [vmem:[%s1932_s27 + $0xa8] sm:$0xff] %v232_v21 }
  0x1b   : > { %235 = vst [vmem:[%s1932_s27 + $0xb0] sm:$0xff] %v234_v22  ;;  %237 = vst [vmem:[%s1932_s27 + $0xb8] sm:$0xff] %v236_v23  ;;  %v238_v24 = vld [vmem:[%s1924_s26 + $0x300] sm:$0xff]  ;;  %v240_v25 = vld [vmem:[%s1924_s26 + $0x308] sm:$0xff] }
  0x1c   : > { %239 = vst [vmem:[%s1932_s27 + $0xc0] sm:$0xff] %v238_v24  ;;  %241 = vst [vmem:[%s1932_s27 + $0xc8] sm:$0xff] %v240_v25 }
  0x1d PF: > { %p1511_p6 = scmp.ge.s32.totalorder %s1858_s16, 1  ;;  %p261_p7 = scmp.lt.s32.totalorder %s1858_s16, 5 }
  0x1f   : > { %p262_p8 = pnand %p1511_p6, %p261_p7 }
  0x20   : > { %s268_s28 = sand.u32 (!%p262_p8), 1, %s1842_s12   ;;  %s1512_s29 = sshll.u32 (!%p262_p8), %s1850_s14, 6 }
  0x21   : > { %265 = sbr.rel (%p262_p8) target bundleno = 400 (0x190), region = 51  ;;  %p314_p9 = scmp.lt.s32.totalorder (!%p262_p8), %s1512_s29, 255 }
  0x22   : > { %s1642_s30 = smul.u32 (!%p262_p8), 208, %s268_s28  ;;  %p1515_p10 = scmp.ne.s32.totalorder (!%p262_p8), %s1850_s14, 0 }
  0x24   : > { %s1989_s8 = scalar_lea.vmem (!%p262_p8), [#allocation3], %s1642_s30 }
  0x26   : > { %s2181_s29 = smov (!%p314_p9, %s1512_s29), 255  ;;  %344 = sbr.rel (%p1515_p10) target bundleno = 57 (0x39), region = 59 }
  0x27   : > { %s1627_s4 = sshll.u32 %s2181_s29, 3 }
  0x28   : > { %s1987_s7 = scalar_lea.vmem %s2171_s1, %s1627_s4 }
  0x2b   : > { %v1860_v26 = vmov 0.0  }
  0x2c   : > { %345 = vst [vmem:[#allocation2 + $0xb0] sm:$0xff] %v1860_v26  ;;  %346 = vst [vmem:[#allocation2] sm:$0xff] %v1860_v26 }
  0x2d   : > { %347 = vst [vmem:[#allocation2 + $0x10] sm:$0xff] %v1860_v26  ;;  %348 = vst [vmem:[#allocation2 + $0x48] sm:$0xff] %v1860_v26 }
  0x2e   : > { %349 = vst [vmem:[#allocation2 + $0x60] sm:$0xff] %v1860_v26  ;;  %350 = vst [vmem:[#allocation2 + $0x28] sm:$0xff] %v1860_v26 }
  0x2f   : > { %351 = vst [vmem:[#allocation2 + $0x40] sm:$0xff] %v1860_v26  ;;  %352 = vst [vmem:[#allocation2 + $0x78] sm:$0xff] %v1860_v26 }
  0x30   : > { %353 = vst [vmem:[#allocation2 + $0x80] sm:$0xff] %v1860_v26  ;;  %354 = vst [vmem:[#allocation2 + $0xa8] sm:$0xff] %v1860_v26 }
  0x31   : > { %355 = vst [vmem:[#allocation2 + $0x50] sm:$0xff] %v1860_v26  ;;  %356 = vst [vmem:[#allocation2 + $0x30] sm:$0xff] %v1860_v26 }
  0x32   : > { %357 = vst [vmem:[#allocation2 + $0x88] sm:$0xff] %v1860_v26  ;;  %358 = vst [vmem:[#allocation2 + $0x70] sm:$0xff] %v1860_v26 }
  0x33   : > { %359 = vst [vmem:[#allocation2 + $0x8] sm:$0xff] %v1860_v26  ;;  %360 = vst [vmem:[#allocation2 + $0x38] sm:$0xff] %v1860_v26 }
  0x34   : > { %361 = vst [vmem:[#allocation2 + $0x20] sm:$0xff] %v1860_v26  ;;  %362 = vst [vmem:[#allocation2 + $0xb8] sm:$0xff] %v1860_v26 }
  0x35   : > { %363 = vst [vmem:[#allocation2 + $0x58] sm:$0xff] %v1860_v26  ;;  %364 = vst [vmem:[#allocation2 + $0xc8] sm:$0xff] %v1860_v26 }
  0x36   : > { %365 = vst [vmem:[#allocation2 + $0xa0] sm:$0xff] %v1860_v26  ;;  %366 = vst [vmem:[#allocation2 + $0x90] sm:$0xff] %v1860_v26 }
  0x37   : > { %367 = vst [vmem:[#allocation2 + $0x98] sm:$0xff] %v1860_v26  ;;  %368 = vst [vmem:[#allocation2 + $0x18] sm:$0xff] %v1860_v26 }
  0x38   : > { %369 = vst [vmem:[#allocation2 + $0xc0] sm:$0xff] %v1860_v26  ;;  %370 = vst [vmem:[#allocation2 + $0x68] sm:$0xff] %v1860_v26 }
  0x39 PF: > { %v1684_v27 = vld [vmem:[%s1987_s7 + $0x74] ss:$8 sps:$4 sm:$0xff]   ;;  %v1688_v29 = vld [vmem:[%s1987_s7 + $0x70] ss:$8 sps:$4 sm:$0xff]   ;;  %v1690_v31 = vld [vmem:[%s1987_s7 + $0x64] ss:$8 sps:$4 sm:$0xff]  }
  0x3a   : > { %v1686_v28 = vld [vmem:[%s1987_s7 + $0x174] ss:$8 sps:$4 sm:$0xff]   ;;  %941 = vmatprep.subr.bf16.mxu0 %v1684_v27  ;;  %v1689_v30 = vld [vmem:[%s1987_s7 + $0x170] ss:$8 sps:$4 sm:$0xff]   ;;  %v1692_v32 = vld [vmem:[%s1987_s7 + $0x164] ss:$8 sps:$4 sm:$0xff]  }
  0x3b   : > { %1042 = vmatprep.subr.bf16.mxu1 %v1686_v28  ;;  %942 = vmatpush1.bf16.msra.mxu0 %v1688_v29  ;;  %v1694_v33 = vld [vmem:[%s1987_s7 + $0x60] ss:$8 sps:$4 sm:$0xff]   ;;  %v1696_v35 = vld [vmem:[%s1987_s7 + $0x54] ss:$8 sps:$4 sm:$0xff]   ;;  %v1700_v37 = vld [vmem:[%s1987_s7 + $0x50] ss:$8 sps:$4 sm:$0xff]  }
  0x3c   : > { %1043 = vmatpush1.bf16.msra.mxu1 %v1689_v30  ;;  %943 = vmatprep.subr.bf16.mxu0 %v1690_v31  ;;  %v1695_v34 = vld [vmem:[%s1987_s7 + $0x160] ss:$8 sps:$4 sm:$0xff]   ;;  %v1698_v36 = vld [vmem:[%s1987_s7 + $0x154] ss:$8 sps:$4 sm:$0xff]   ;;  %v1701_v38 = vld [vmem:[%s1987_s7 + $0x150] ss:$8 sps:$4 sm:$0xff]  }
  0x3d   : > { %1044 = vmatprep.subr.bf16.mxu1 %v1692_v32  ;;  %v1702_v39 = vld [vmem:[%s1987_s7 + $0x44] ss:$8 sps:$4 sm:$0xff]   ;;  %v1706_v41 = vld [vmem:[%s1987_s7 + $0x40] ss:$8 sps:$4 sm:$0xff]   ;;  %v1708_v43 = vld [vmem:[%s1987_s7 + $0x34] ss:$8 sps:$4 sm:$0xff]  }
  0x3e   : > { %v1704_v40 = vld [vmem:[%s1987_s7 + $0x144] ss:$8 sps:$4 sm:$0xff]   ;;  %v1707_v42 = vld [vmem:[%s1987_s7 + $0x140] ss:$8 sps:$4 sm:$0xff]   ;;  %v1710_v44 = vld [vmem:[%s1987_s7 + $0x134] ss:$8 sps:$4 sm:$0xff]  }
  0x3f   : > { %944 = vmatpush1.bf16.msra.mxu0 %v1694_v33  ;;  %v1712_v45 = vld [vmem:[%s1987_s7 + $0x30] ss:$8 sps:$4 sm:$0xff]   ;;  %v1714_v47 = vld [vmem:[%s1987_s7 + $0x24] ss:$8 sps:$4 sm:$0xff]   ;;  %v1718_v49 = vld [vmem:[%s1987_s7 + $0x20] ss:$8 sps:$4 sm:$0xff]  }
  0x40   : > { %1045 = vmatpush1.bf16.msra.mxu1 %v1695_v34  ;;  %945 = vmatprep.subr.bf16.mxu0 %v1696_v35  ;;  %v1713_v46 = vld [vmem:[%s1987_s7 + $0x130] ss:$8 sps:$4 sm:$0xff]   ;;  %v1716_v48 = vld [vmem:[%s1987_s7 + $0x124] ss:$8 sps:$4 sm:$0xff]   ;;  %v1719_v50 = vld [vmem:[%s1987_s7 + $0x120] ss:$8 sps:$4 sm:$0xff]  }
  0x41   : > { %1046 = vmatprep.subr.bf16.mxu1 %v1698_v36  ;;  %v1720_v51 = vld [vmem:[%s1987_s7 + $0x14] ss:$8 sps:$4 sm:$0xff]   ;;  %v1724_v53 = vld [vmem:[%s1987_s7 + $0x10] ss:$8 sps:$4 sm:$0xff]   ;;  %v1726_v55 = vld [vmem:[%s1987_s7 + $0x4] ss:$8 sps:$4 sm:$0xff]  }
  0x42   : > { %v1722_v52 = vld [vmem:[%s1987_s7 + $0x114] ss:$8 sps:$4 sm:$0xff]   ;;  %v1725_v54 = vld [vmem:[%s1987_s7 + $0x110] ss:$8 sps:$4 sm:$0xff]   ;;  %v1728_v56 = vld [vmem:[%s1987_s7 + $0x104] ss:$8 sps:$4 sm:$0xff]  }
  0x43   : > { %946 = vmatpush1.bf16.msra.mxu0 %v1700_v37  ;;  %v1730_v57 = vld [vmem:[%s1987_s7] ss:$8 sps:$4 sm:$0xff]   ;;  %v1732_v59 = vld [vmem:[%s1987_s7 + $0xf4] ss:$8 sps:$4 sm:$0xff]   ;;  %v1736_v61 = vld [vmem:[%s1987_s7 + $0xf0] ss:$8 sps:$4 sm:$0xff]  }
  0x44   : > { %1047 = vmatpush1.bf16.msra.mxu1 %v1701_v38  ;;  %947 = vmatprep.subr.bf16.mxu0 %v1702_v39  ;;  %v1731_v58 = vld [vmem:[%s1987_s7 + $0x100] ss:$8 sps:$4 sm:$0xff]   ;;  %v1734_v60 = vld [vmem:[%s1987_s7 + $0x1f4] ss:$8 sps:$4 sm:$0xff]   ;;  %v1737_v62 = vld [vmem:[%s1987_s7 + $0x1f0] ss:$8 sps:$4 sm:$0xff]  }
  0x45   : > { %1048 = vmatprep.subr.bf16.mxu1 %v1704_v40  ;;  %v1738_v63 = vld [vmem:[%s1987_s7 + $0xe4] ss:$8 sps:$4 sm:$0xff]   ;;  %v1742_v1 = vld [vmem:[%s1987_s7 + $0xe0] ss:$8 sps:$4 sm:$0xff]   ;;  %v1744_v3 = vld [vmem:[%s1987_s7 + $0xd4] ss:$8 sps:$4 sm:$0xff]  }
  0x46   : > { %v1740_v0 = vld [vmem:[%s1987_s7 + $0x1e4] ss:$8 sps:$4 sm:$0xff]   ;;  %v1743_v2 = vld [vmem:[%s1987_s7 + $0x1e0] ss:$8 sps:$4 sm:$0xff]   ;;  %v1746_v4 = vld [vmem:[%s1987_s7 + $0x1d4] ss:$8 sps:$4 sm:$0xff]  }
  0x47   : > { %948 = vmatpush1.bf16.msra.mxu0 %v1706_v41  ;;  %v1748_v5 = vld [vmem:[%s1987_s7 + $0xd0] ss:$8 sps:$4 sm:$0xff]   ;;  %v1750_v7 = vld [vmem:[%s1987_s7 + $0xc4] ss:$8 sps:$4 sm:$0xff]   ;;  %v1754_v9 = vld [vmem:[%s1987_s7 + $0xc0] ss:$8 sps:$4 sm:$0xff]  }
  0x48   : > { %1049 = vmatpush1.bf16.msra.mxu1 %v1707_v42  ;;  %949 = vmatprep.subr.bf16.mxu0 %v1708_v43  ;;  %v1749_v6 = vld [vmem:[%s1987_s7 + $0x1d0] ss:$8 sps:$4 sm:$0xff]   ;;  %v1752_v8 = vld [vmem:[%s1987_s7 + $0x1c4] ss:$8 sps:$4 sm:$0xff]   ;;  %v1755_v10 = vld [vmem:[%s1987_s7 + $0x1c0] ss:$8 sps:$4 sm:$0xff]  }
  0x49   : > { %1050 = vmatprep.subr.bf16.mxu1 %v1710_v44  ;;  %v1756_v11 = vld [vmem:[%s1987_s7 + $0xb4] ss:$8 sps:$4 sm:$0xff]   ;;  %v1760_v15 = vld [vmem:[%s1987_s7 + $0xb0] ss:$8 sps:$4 sm:$0xff]   ;;  %v1762_v17 = vld [vmem:[%s1987_s7 + $0xa4] ss:$8 sps:$4 sm:$0xff]  }
  0x4a   : > { %v1782_v12 = vld [vmem:[%s1989_s8 + $0x4] ss:$16 sps:$4 sm:$0xff]   ;;  %v1785_v14 = vld [vmem:[%s1989_s8 + $0xc] ss:$16 sps:$4 sm:$0xff]   ;;  %v1761_v16 = vld [vmem:[%s1987_s7 + $0x1b0] ss:$8 sps:$4 sm:$0xff]  }
  0x4b   : > { %950 = vmatpush1.bf16.msra.mxu0 %v1712_v45  ;;  %v1758_v13 = vld [vmem:[%s1987_s7 + $0x1b4] ss:$8 sps:$4 sm:$0xff]   ;;  %973 = vmatprep.mubr.bf16.mxu0 %v1782_v12  ;;  %v1764_v18 = vld [vmem:[%s1987_s7 + $0x1a4] ss:$8 sps:$4 sm:$0xff]   ;;  %v1766_v19 = vld [vmem:[%s1987_s7 + $0xa0] ss:$8 sps:$4 sm:$0xff]  }
  0x4c   : > { %1051 = vmatpush1.bf16.msra.mxu1 %v1713_v46  ;;  %951 = vmatprep.subr.bf16.mxu0 %v1714_v47  ;;  %v1767_v20 = vld [vmem:[%s1987_s7 + $0x1a0] ss:$8 sps:$4 sm:$0xff]   ;;  %v1768_v21 = vld [vmem:[%s1987_s7 + $0x94] ss:$8 sps:$4 sm:$0xff]   ;;  %v1772_v23 = vld [vmem:[%s1987_s7 + $0x90] ss:$8 sps:$4 sm:$0xff]  }
  0x4d   : > { %1052 = vmatprep.subr.bf16.mxu1 %v1716_v48  ;;  %1074 = vmatprep.mubr.bf16.mxu1 %v1785_v14  ;;  %v1770_v22 = vld [vmem:[%s1987_s7 + $0x194] ss:$8 sps:$4 sm:$0xff]   ;;  %v1773_v24 = vld [vmem:[%s1987_s7 + $0x190] ss:$8 sps:$4 sm:$0xff]   ;;  %v1774_v25 = vld [vmem:[%s1987_s7 + $0x84] ss:$8 sps:$4 sm:$0xff]  }
  0x4e   : > { %v1776_v26 = vld [vmem:[%s1987_s7 + $0x184] ss:$8 sps:$4 sm:$0xff]   ;;  %v1778_v27 = vld [vmem:[%s1987_s7 + $0x80] ss:$8 sps:$4 sm:$0xff]   ;;  %p1608_p11 = scmp.ne.s32.totalorder %s1850_s14, 3 }
  0x4f   : > { %952 = vmatpush1.bf16.msra.mxu0 %v1718_v49  ;;  %v1779_v28 = vld [vmem:[%s1987_s7 + $0x180] ss:$8 sps:$4 sm:$0xff]   ;;  %v1786_v31 = vld [vmem:[%s1989_s8 + $0x24] ss:$16 sps:$4 sm:$0xff]   ;;  %v1788_v32 = vld [vmem:[%s1989_s8 + $0x2c] ss:$16 sps:$4 sm:$0xff]  }
  0x50   : > { %1053 = vmatpush1.bf16.msra.mxu1 %v1719_v50  ;;  %953 = vmatprep.subr.bf16.mxu0 %v1720_v51  ;;  %v1780_v29 = vld [vmem:[%s1989_s8] ss:$16 sps:$4 sm:$0xff]   ;;  %v1783_v30 = vld [vmem:[%s1989_s8 + $0x8] ss:$16 sps:$4 sm:$0xff]   ;;  %v1792_v35 = vld [vmem:[%s1989_s8 + $0x44] ss:$16 sps:$4 sm:$0xff]  }
  0x51   : > { %1054 = vmatprep.subr.bf16.mxu1 %v1722_v52  ;;  %v1790_v33 = vld [vmem:[%s1989_s8 + $0x20] ss:$16 sps:$4 sm:$0xff]   ;;  %v1791_v34 = vld [vmem:[%s1989_s8 + $0x28] ss:$16 sps:$4 sm:$0xff]   ;;  %v1794_v36 = vld [vmem:[%s1989_s8 + $0x4c] ss:$16 sps:$4 sm:$0xff]  }
  0x52   : > { %v1796_v37 = vld [vmem:[%s1989_s8 + $0x40] ss:$16 sps:$4 sm:$0xff]   ;;  %v1797_v38 = vld [vmem:[%s1989_s8 + $0x48] ss:$16 sps:$4 sm:$0xff]   ;;  %v1798_v39 = vld [vmem:[%s1989_s8 + $0x64] ss:$16 sps:$4 sm:$0xff]  }
  0x53   : > { %954 = vmatpush1.bf16.msra.mxu0 %v1724_v53  ;;  %v1800_v40 = vld [vmem:[%s1989_s8 + $0x6c] ss:$16 sps:$4 sm:$0xff]   ;;  %v1802_v41 = vld [vmem:[%s1989_s8 + $0x60] ss:$16 sps:$4 sm:$0xff]   ;;  %v1803_v42 = vld [vmem:[%s1989_s8 + $0x68] ss:$16 sps:$4 sm:$0xff]  }
  0x54   : > { %1055 = vmatpush1.bf16.msra.mxu1 %v1725_v54  ;;  %955 = vmatprep.subr.bf16.mxu0 %v1726_v55  ;;  %v1804_v43 = vld [vmem:[%s1989_s8 + $0x84] ss:$16 sps:$4 sm:$0xff]   ;;  %v1806_v44 = vld [vmem:[%s1989_s8 + $0x8c] ss:$16 sps:$4 sm:$0xff]   ;;  %v1808_v45 = vld [vmem:[%s1989_s8 + $0x80] ss:$16 sps:$4 sm:$0xff]  }
  0x55   : > { %1056 = vmatprep.subr.bf16.mxu1 %v1728_v56  ;;  %v1809_v46 = vld [vmem:[%s1989_s8 + $0x88] ss:$16 sps:$4 sm:$0xff]   ;;  %v1810_v47 = vld [vmem:[%s1989_s8 + $0xa4] ss:$16 sps:$4 sm:$0xff]   ;;  %v1812_v48 = vld [vmem:[%s1989_s8 + $0xac] ss:$16 sps:$4 sm:$0xff]  }
  0x56   : > { %v421_v49 = vld [vmem:[%s1989_s8 + $0xc0] sm:$0xff]  ;;  %v422_v50 = vld [vmem:[%s1989_s8 + $0xc8] sm:$0xff] }
  0x57   : > { %956 = vmatpush1.bf16.msra.mxu0 %v1730_v57  ;;  %v1814_v51 = vld [vmem:[%s1989_s8 + $0xa0] ss:$16 sps:$4 sm:$0xff]   ;;  %v1815_v52 = vld [vmem:[%s1989_s8 + $0xa8] ss:$16 sps:$4 sm:$0xff]   ;;  %v1541_v53 = vcombine.high %v421_v49, %v421_v49  ;;  %v1543_v54 = vcombine.high %v422_v50, %v422_v50  ;;  %v1540_v55 = vcombine.low %v421_v49, %v421_v49  ;;  %v1542_v56 = vcombine.low %v422_v50, %v422_v50 }
  0x58   : > { %1057 = vmatpush1.bf16.msra.mxu1 %v1731_v58  ;;  %957 = vmatprep.subr.bf16.mxu0 %v1732_v59  ;;  %v371_v58 = vld [vmem:[#allocation2 + $0xb0] sm:$0xff] }
  0x59   : > { %1058 = vmatprep.subr.bf16.mxu1 %v1734_v60 }
  0x5b   : > { %958 = vmatpush2.bf16.msra.mxu0 %v1736_v61 }
  0x5c   : > { %1059 = vmatpush2.bf16.msra.mxu1 %v1737_v62  ;;  %959 = vmatprep.subr.bf16.mxu0 %v1738_v63  ;;  %v372_v62 = vld [vmem:[#allocation2] sm:$0xff] }
  0x5d   : > { %1060 = vmatprep.subr.bf16.mxu1 %v1740_v0 }
  0x5f   : > { %960 = vmatpush2.bf16.msra.mxu0 %v1742_v1 }
  0x60   : > { %1061 = vmatpush2.bf16.msra.mxu1 %v1743_v2  ;;  %961 = vmatprep.subr.bf16.mxu0 %v1744_v3  ;;  %v373_v3 = vld [vmem:[#allocation2 + $0x10] sm:$0xff] }
  0x61   : > { %1062 = vmatprep.subr.bf16.mxu1 %v1746_v4 }
  0x63   : > { %962 = vmatpush2.bf16.msra.mxu0 %v1748_v5 }
  0x64   : > { %1063 = vmatpush2.bf16.msra.mxu1 %v1749_v6  ;;  %963 = vmatprep.subr.bf16.mxu0 %v1750_v7 }
  0x65   : > { %1064 = vmatprep.subr.bf16.mxu1 %v1752_v8  ;;  %v374_v8 = vld [vmem:[#allocation2 + $0x48] sm:$0xff] }
  0x67   : > { %964 = vmatpush2.bf16.msra.mxu0 %v1754_v9 }
  0x68   : > { %1065 = vmatpush2.bf16.msra.mxu1 %v1755_v10  ;;  %965 = vmatprep.subr.bf16.mxu0 %v1756_v11 }
  0x69   : > { %1066 = vmatprep.subr.bf16.mxu1 %v1758_v13  ;;  %v375_v13 = vld [vmem:[#allocation2 + $0x60] sm:$0xff] }
  0x6b   : > { %966 = vmatpush2.bf16.msra.mxu0 %v1760_v15 }
  0x6c   : > { %1067 = vmatpush2.bf16.msra.mxu1 %v1761_v16  ;;  %967 = vmatprep.subr.bf16.mxu0 %v1762_v17 }
  0x6d   : > { %1068 = vmatprep.subr.bf16.mxu1 %v1764_v18  ;;  %v376_v18 = vld [vmem:[#allocation2 + $0x28] sm:$0xff] }
  0x6f   : > { %968 = vmatpush2.bf16.msra.mxu0 %v1766_v19 }
  0x70   : > { %1069 = vmatpush2.bf16.msra.mxu1 %v1767_v20  ;;  %969 = vmatprep.subr.bf16.mxu0 %v1768_v21 }
  0x71   : > { %1070 = vmatprep.subr.bf16.mxu1 %v1770_v22 }
  0x73   : > { %970 = vmatpush2.bf16.msra.mxu0 %v1772_v23  ;;  %v377_v23 = vld [vmem:[#allocation2 + $0x40] sm:$0xff] }
  0x74   : > { %1071 = vmatpush2.bf16.msra.mxu1 %v1773_v24  ;;  %971 = vmatprep.subr.bf16.mxu0 %v1774_v25 }
  0x75   : > { %1072 = vmatprep.subr.bf16.mxu1 %v1776_v26 }
  0x77   : > { %972 = vmatpush2.bf16.msra.mxu0 %v1778_v27 }
  0x78   : > { %1073 = vmatpush2.bf16.msra.mxu1 %v1779_v28  ;;  %v378_v28 = vld [vmem:[#allocation2 + $0x78] sm:$0xff] }
  0x7a   : > { %974 = vmatmul.mubr.bf16.vlgmr.msra.gmra.mxu0 %v1780_v29 }
  0x7b   : > { %1075 = vmatmul.mubr.bf16.vlgmr.msra.gmra.mxu1 %v1783_v30  ;;  %983 = vmatprep.mubr.bf16.mxu0 %v1786_v31 }
  0x7c   : > { %1084 = vmatprep.mubr.bf16.mxu1 %v1788_v32 }
  0x82   : > { %984 = vmatmul.mubr.bf16.gmra.mxu0 %v1790_v33  ;;  %v379_v33 = vld [vmem:[#allocation2 + $0x80] sm:$0xff] }
  0x83   : > { %1085 = vmatmul.mubr.bf16.gmra.mxu1 %v1791_v34  ;;  %993 = vmatprep.mubr.bf16.mxu0 %v1792_v35 }
  0x84   : > { %1094 = vmatprep.mubr.bf16.mxu1 %v1794_v36 }
  0x8a   : > { %994 = vmatmul.mubr.bf16.gmra.mxu0 %v1796_v37 }
  0x8b   : > { %1095 = vmatmul.mubr.bf16.gmra.mxu1 %v1797_v38  ;;  %1003 = vmatprep.mubr.bf16.mxu0 %v1798_v39  ;;  %v380_v38 = vld [vmem:[#allocation2 + $0xa8] sm:$0xff] }
  0x8c   : > { %1104 = vmatprep.mubr.bf16.mxu1 %v1800_v40 }
  0x92   : > { %1004 = vmatmul.mubr.bf16.gmra.mxu0 %v1802_v41 }
  0x93   : > { %1105 = vmatmul.mubr.bf16.gmra.mxu1 %v1803_v42  ;;  %1013 = vmatprep.mubr.bf16.mxu0 %v1804_v43  ;;  %v381_v43 = vld [vmem:[#allocation2 + $0x50] sm:$0xff] }
  0x94   : > { %1114 = vmatprep.mubr.bf16.mxu1 %v1806_v44 }
  0x9a   : > { %1014 = vmatmul.mubr.bf16.gmra.mxu0 %v1808_v45 }
  0x9b   : > { %1115 = vmatmul.mubr.bf16.gmra.mxu1 %v1809_v46  ;;  %1023 = vmatprep.mubr.bf16.mxu0 %v1810_v47 }
  0x9c   : > { %1124 = vmatprep.mubr.bf16.mxu1 %v1812_v48  ;;  %v382_v48 = vld [vmem:[#allocation2 + $0x30] sm:$0xff] }
  0xa2   : > { %1024 = vmatmul.mubr.bf16.gmra.mxu0 %v1814_v51 }
  0xa3   : > { %1125 = vmatmul.mubr.bf16.gmra.mxu1 %v1815_v52  ;;  %1033 = vmatprep.mubr.bf16.mxu0 %v1541_v53  ;;  %v383_v53 = vld [vmem:[#allocation2 + $0x88] sm:$0xff] }
  0xa4   : > { %1134 = vmatprep.mubr.bf16.mxu1 %v1543_v54 }
  0xaa   : > { %1034 = vmatmul.mubr.bf16.gmra.mxu0 %v1540_v55 }
  0xab   : > { %1135 = vmatmul.mubr.bf16.gmra.mxu1 %v1542_v56 }
 0x13a   : > { %v975_v57 = vpop.f32.mrf.mxu0 }
 0x13b   : > { %v1076_v59 = vpop.f32.mrf.mxu1 }
 0x13c   : > { %v1077_v60 = vadd.f32 %v1076_v59, %v975_v57  ;;  %v977_v61 = vpop.f32.mrf.mxu0 }
 0x13d   : > { %v1078_v63 = vpop.f32.mrf.mxu1 }
 0x13e   : > { %v1143_v0 = vadd.f32 %v1077_v60, %v371_v58  ;;  %v1079_v1 = vadd.f32 %v1078_v63, %v977_v61  ;;  %v979_v2 = vpop.f32.mrf.mxu0  ;;  %v384_v58 = vld [vmem:[#allocation2 + $0x70] sm:$0xff]  ;;  %v385_v63 = vld [vmem:[#allocation2 + $0x8] sm:$0xff] }
 0x13f   : > { %v1080_v4 = vpop.f32.mrf.mxu1 }
 0x140   : > { %1169 = vst [vmem:[#allocation2 + $0xb0] sm:$0xff] %v1143_v0  ;;  %v1144_v5 = vadd.f32 %v1079_v1, %v372_v62  ;;  %v1081_v6 = vadd.f32 %v1080_v4, %v979_v2  ;;  %v981_v7 = vpop.f32.mrf.mxu0  ;;  %v386_v4 = vld [vmem:[#allocation2 + $0x38] sm:$0xff] }
 0x141   : > { %v1082_v9 = vpop.f32.mrf.mxu1 }
 0x142   : > { %1170 = vst [vmem:[#allocation2] sm:$0xff] %v1144_v5  ;;  %v1145_v10 = vadd.f32 %v1081_v6, %v373_v3  ;;  %v1083_v11 = vadd.f32 %v1082_v9, %v981_v7  ;;  %v985_v12 = vpop.f32.mrf.mxu0  ;;  %v387_v9 = vld [vmem:[#allocation2 + $0x20] sm:$0xff] }
 0x143   : > { %v1086_v14 = vpop.f32.mrf.mxu1 }
 0x144   : > { %1171 = vst [vmem:[#allocation2 + $0x10] sm:$0xff] %v1145_v10  ;;  %v1146_v15 = vadd.f32 %v1083_v11, %v374_v8  ;;  %v1087_v16 = vadd.f32 %v1086_v14, %v985_v12  ;;  %v987_v17 = vpop.f32.mrf.mxu0  ;;  %v388_v14 = vld [vmem:[#allocation2 + $0xb8] sm:$0xff] }
 0x145   : > { %v1088_v19 = vpop.f32.mrf.mxu1 }
 0x146   : > { %1172 = vst [vmem:[#allocation2 + $0x48] sm:$0xff] %v1146_v15  ;;  %v1147_v20 = vadd.f32 %v1087_v16, %v375_v13  ;;  %v1089_v21 = vadd.f32 %v1088_v19, %v987_v17  ;;  %v989_v22 = vpop.f32.mrf.mxu0  ;;  %v389_v19 = vld [vmem:[#allocation2 + $0x58] sm:$0xff] }
 0x147   : > { %v1090_v24 = vpop.f32.mrf.mxu1 }
 0x148   : > { %1173 = vst [vmem:[#allocation2 + $0x60] sm:$0xff] %v1147_v20  ;;  %v1148_v25 = vadd.f32 %v1089_v21, %v376_v18  ;;  %v1091_v26 = vadd.f32 %v1090_v24, %v989_v22  ;;  %v991_v27 = vpop.f32.mrf.mxu0  ;;  %v390_v24 = vld [vmem:[#allocation2 + $0xc8] sm:$0xff] }
 0x149   : > { %v1092_v29 = vpop.f32.mrf.mxu1 }
 0x14a   : > { %1174 = vst [vmem:[#allocation2 + $0x28] sm:$0xff] %v1148_v25  ;;  %v1149_v30 = vadd.f32 %v1091_v26, %v377_v23  ;;  %v1093_v31 = vadd.f32 %v1092_v29, %v991_v27  ;;  %v995_v32 = vpop.f32.mrf.mxu0  ;;  %v391_v29 = vld [vmem:[#allocation2 + $0xa0] sm:$0xff] }
 0x14b   : > { %v1096_v34 = vpop.f32.mrf.mxu1 }
 0x14c   : > { %1175 = vst [vmem:[#allocation2 + $0x40] sm:$0xff] %v1149_v30  ;;  %v1150_v35 = vadd.f32 %v1093_v31, %v378_v28  ;;  %v1097_v36 = vadd.f32 %v1096_v34, %v995_v32  ;;  %v997_v37 = vpop.f32.mrf.mxu0  ;;  %v392_v34 = vld [vmem:[#allocation2 + $0x90] sm:$0xff] }
 0x14d   : > { %v1098_v39 = vpop.f32.mrf.mxu1 }
 0x14e   : > { %1176 = vst [vmem:[#allocation2 + $0x78] sm:$0xff] %v1150_v35  ;;  %v1151_v40 = vadd.f32 %v1097_v36, %v379_v33  ;;  %v1099_v41 = vadd.f32 %v1098_v39, %v997_v37  ;;  %v999_v42 = vpop.f32.mrf.mxu0  ;;  %v393_v39 = vld [vmem:[#allocation2 + $0x98] sm:$0xff] }
 0x14f   : > { %v1100_v44 = vpop.f32.mrf.mxu1 }
 0x150   : > { %1177 = vst [vmem:[#allocation2 + $0x80] sm:$0xff] %v1151_v40  ;;  %v1152_v45 = vadd.f32 %v1099_v41, %v380_v38  ;;  %v1101_v46 = vadd.f32 %v1100_v44, %v999_v42  ;;  %v1001_v47 = vpop.f32.mrf.mxu0  ;;  %v394_v44 = vld [vmem:[#allocation2 + $0x18] sm:$0xff] }
 0x151   : > { %v1102_v49 = vpop.f32.mrf.mxu1 }
 0x152   : > { %1178 = vst [vmem:[#allocation2 + $0xa8] sm:$0xff] %v1152_v45  ;;  %v1153_v50 = vadd.f32 %v1101_v46, %v381_v43  ;;  %v1103_v51 = vadd.f32 %v1102_v49, %v1001_v47  ;;  %v1005_v52 = vpop.f32.mrf.mxu0  ;;  %v395_v49 = vld [vmem:[#allocation2 + $0xc0] sm:$0xff] }
 0x153   : > { %v1106_v54 = vpop.f32.mrf.mxu1 }
 0x154   : > { %1179 = vst [vmem:[#allocation2 + $0x50] sm:$0xff] %v1153_v50  ;;  %v1154_v55 = vadd.f32 %v1103_v51, %v382_v48  ;;  %v1107_v56 = vadd.f32 %v1106_v54, %v1005_v52  ;;  %v1007_v57 = vpop.f32.mrf.mxu0  ;;  %v396_v54 = vld [vmem:[#allocation2 + $0x68] sm:$0xff] }
 0x155   : > { %v1108_v59 = vpop.f32.mrf.mxu1 }
 0x156   : > { %1180 = vst [vmem:[#allocation2 + $0x30] sm:$0xff] %v1154_v55  ;;  %v1155_v60 = vadd.f32 %v1107_v56, %v383_v53  ;;  %v1109_v61 = vadd.f32 %v1108_v59, %v1007_v57  ;;  %v1009_v62 = vpop.f32.mrf.mxu0 }
 0x157   : > { %v1110_v0 = vpop.f32.mrf.mxu1 }
 0x158   : > { %1181 = vst [vmem:[#allocation2 + $0x88] sm:$0xff] %v1155_v60  ;;  %v1156_v1 = vadd.f32 %v1109_v61, %v384_v58  ;;  %v1111_v2 = vadd.f32 %v1110_v0, %v1009_v62  ;;  %v1011_v3 = vpop.f32.mrf.mxu0 }
 0x159   : > { %v1112_v5 = vpop.f32.mrf.mxu1 }
 0x15a   : > { %1182 = vst [vmem:[#allocation2 + $0x70] sm:$0xff] %v1156_v1  ;;  %v1157_v6 = vadd.f32 %v1111_v2, %v385_v63  ;;  %v1113_v7 = vadd.f32 %v1112_v5, %v1011_v3  ;;  %v1015_v8 = vpop.f32.mrf.mxu0 }
 0x15b   : > { %v1116_v10 = vpop.f32.mrf.mxu1 }
 0x15c   : > { %1183 = vst [vmem:[#allocation2 + $0x8] sm:$0xff] %v1157_v6  ;;  %v1158_v11 = vadd.f32 %v1113_v7, %v386_v4  ;;  %v1117_v12 = vadd.f32 %v1116_v10, %v1015_v8  ;;  %v1017_v13 = vpop.f32.mrf.mxu0 }
 0x15d   : > { %v1118_v15 = vpop.f32.mrf.mxu1 }
 0x15e   : > { %1184 = vst [vmem:[#allocation2 + $0x38] sm:$0xff] %v1158_v11  ;;  %v1159_v16 = vadd.f32 %v1117_v12, %v387_v9  ;;  %v1119_v17 = vadd.f32 %v1118_v15, %v1017_v13  ;;  %v1019_v18 = vpop.f32.mrf.mxu0 }
 0x15f   : > { %v1120_v20 = vpop.f32.mrf.mxu1 }
 0x160   : > { %1185 = vst [vmem:[#allocation2 + $0x20] sm:$0xff] %v1159_v16  ;;  %v1160_v21 = vadd.f32 %v1119_v17, %v388_v14  ;;  %v1121_v22 = vadd.f32 %v1120_v20, %v1019_v18  ;;  %v1021_v23 = vpop.f32.mrf.mxu0 }
 0x161   : > { %v1122_v25 = vpop.f32.mrf.mxu1 }
 0x162   : > { %1186 = vst [vmem:[#allocation2 + $0xb8] sm:$0xff] %v1160_v21  ;;  %v1161_v26 = vadd.f32 %v1121_v22, %v389_v19  ;;  %v1123_v27 = vadd.f32 %v1122_v25, %v1021_v23  ;;  %v1025_v28 = vpop.f32.mrf.mxu0 }
 0x163   : > { %v1126_v30 = vpop.f32.mrf.mxu1 }
 0x164   : > { %1187 = vst [vmem:[#allocation2 + $0x58] sm:$0xff] %v1161_v26  ;;  %v1162_v31 = vadd.f32 %v1123_v27, %v390_v24  ;;  %v1127_v32 = vadd.f32 %v1126_v30, %v1025_v28  ;;  %v1027_v33 = vpop.f32.mrf.mxu0 }
 0x165   : > { %v1128_v35 = vpop.f32.mrf.mxu1 }
 0x166   : > { %1188 = vst [vmem:[#allocation2 + $0xc8] sm:$0xff] %v1162_v31  ;;  %v1163_v36 = vadd.f32 %v1127_v32, %v391_v29  ;;  %v1129_v37 = vadd.f32 %v1128_v35, %v1027_v33  ;;  %v1029_v38 = vpop.f32.mrf.mxu0 }
 0x167   : > { %v1130_v40 = vpop.f32.mrf.mxu1 }
 0x168   : > { %1189 = vst [vmem:[#allocation2 + $0xa0] sm:$0xff] %v1163_v36  ;;  %v1164_v41 = vadd.f32 %v1129_v37, %v392_v34  ;;  %v1131_v42 = vadd.f32 %v1130_v40, %v1029_v38  ;;  %v1031_v43 = vpop.f32.mrf.mxu0 }
 0x169   : > { %v1132_v45 = vpop.f32.mrf.mxu1 }
 0x16a   : > { %1190 = vst [vmem:[#allocation2 + $0x90] sm:$0xff] %v1164_v41  ;;  %v1165_v46 = vadd.f32 %v1131_v42, %v393_v39  ;;  %v1133_v47 = vadd.f32 %v1132_v45, %v1031_v43  ;;  %v1035_v48 = vpop.f32.mrf.mxu0 }
 0x16b   : > { %v1136_v50 = vpop.f32.mrf.mxu1 }
 0x16c   : > { %1191 = vst [vmem:[#allocation2 + $0x98] sm:$0xff] %v1165_v46  ;;  %v1166_v51 = vadd.f32 %v1133_v47, %v394_v44  ;;  %v1137_v52 = vadd.f32 %v1136_v50, %v1035_v48  ;;  %v1037_v53 = vpop.f32.mrf.mxu0 }
 0x16d   : > { %v1138_v55 = vpop.f32.mrf.mxu1 }
 0x16e   : > { %1192 = vst [vmem:[#allocation2 + $0x18] sm:$0xff] %v1166_v51  ;;  %v1167_v56 = vadd.f32 %v1137_v52, %v395_v49  ;;  %v1139_v57 = vadd.f32 %v1138_v55, %v1037_v53  ;;  %v1039_v58 = vpop.f32.mrf.mxu0  ;;  %1198 = sbr.rel (%p1608_p11) target bundleno = 400 (0x190), region = 63 }
 0x16f   : > { %v1140_v59 = vpop.f32.mrf.mxu1 }
 0x170   : > { %1193 = vst [vmem:[#allocation2 + $0xc0] sm:$0xff] %v1167_v56  ;;  %v1168_v60 = vadd.f32 %v1139_v57, %v396_v54  ;;  %v1040_v61 = vpop.f32.mrf.mxu0 }
 0x171   : > { %v1141_v62 = vpop.f32.mrf.mxu1 }
 0x172   : > { %1194 = vst [vmem:[#allocation2 + $0x68] sm:$0xff] %v1168_v60 }
 0x173   : > { %v1227_v63 = vlaneseq  ;;  %v1225_v1 = vld [vmem:[%s2172_s2] sm:$0x3]  ;;  %v1199_v2 = vld [vmem:[#allocation2 + $0xb0] sm:$0xff]  ;;  %v1202_v7 = vld [vmem:[#allocation2 + $0x48] sm:$0xff] }
 0x174   : > { %v1200_v3 = vld [vmem:[#allocation2] sm:$0xff]  ;;  %v1201_v6 = vld [vmem:[#allocation2 + $0x10] sm:$0xff]  ;;  %v1204_v11 = vld [vmem:[#allocation2 + $0x28] sm:$0xff] }
 0x175   : > { %v1228_v0 = vshrl.u32 %v1227_v63, 7  ;;  %v1203_v8 = vld [vmem:[#allocation2 + $0x60] sm:$0xff]  ;;  %v1206_v13 = vld [vmem:[#allocation2 + $0x78] sm:$0xff]  ;;  %v1208_v23 = vld [vmem:[#allocation2 + $0xa8] sm:$0xff] }
 0x176   : > { %v1205_v12 = vld [vmem:[#allocation2 + $0x40] sm:$0xff]  ;;  %v1209_v28 = vld [vmem:[#allocation2 + $0x50] sm:$0xff]  ;;  %v1211_v34 = vld [vmem:[#allocation2 + $0x88] sm:$0xff] }
 0x177   : > { %v1229_v4 = vsub.s32 0, %v1228_v0  ;;  %v1233_v5 = vsub.s32 1, %v1228_v0  ;;  %v1207_v22 = vld [vmem:[#allocation2 + $0x80] sm:$0xff]  ;;  %v1210_v29 = vld [vmem:[#allocation2 + $0x30] sm:$0xff]  ;;  %v1213_v40 = vld [vmem:[#allocation2 + $0x8] sm:$0xff] }
 0x178   : > { %v1212_v35 = vld [vmem:[#allocation2 + $0x70] sm:$0xff]  ;;  %v1214_v41 = vld [vmem:[#allocation2 + $0x38] sm:$0xff]  ;;  %v1215_v46 = vld [vmem:[#allocation2 + $0x20] sm:$0xff] }
 0x179   : > { %v2086_v9 = vrot.slane %v1225_v1, %v1229_v4  ;;  %v2088_v10 = vrot.slane %v1225_v1, %v1233_v5  ;;  %v1216_v51 = vld [vmem:[#allocation2 + $0xb8] sm:$0xff]  ;;  %v1218_v57 = vld [vmem:[#allocation2 + $0xc8] sm:$0xff]  ;;  %v1219_v62 = vld [vmem:[#allocation2 + $0xa0] sm:$0xff] }
 0x17a   : > { %v1217_v56 = vld [vmem:[#allocation2 + $0x58] sm:$0xff]  ;;  %v1220_v63 = vld [vmem:[#allocation2 + $0x90] sm:$0xff] }
 0x17b   : > { %v1237_v14 = vadd.f32 %v2086_v9, %v1199_v2  ;;  %v1238_v15 = vadd.f32 %v2088_v10, %v1200_v3  ;;  %v1239_v16 = vadd.f32 %v2086_v9, %v1201_v6  ;;  %v1240_v17 = vadd.f32 %v2088_v10, %v1202_v7  ;;  %v1221_v4 = vld [vmem:[#allocation2 + $0x98] sm:$0xff] }
 0x17c   : > { %v1241_v18 = vadd.f32 %v2086_v9, %v1203_v8  ;;  %v1242_v19 = vadd.f32 %v2088_v10, %v1204_v11  ;;  %v1243_v20 = vadd.f32 %v2086_v9, %v1205_v12  ;;  %v1244_v21 = vadd.f32 %v2088_v10, %v1206_v13  ;;  %v1222_v5 = vld [vmem:[#allocation2 + $0x18] sm:$0xff]  ;;  %v1223_v12 = vld [vmem:[#allocation2 + $0xc0] sm:$0xff] }
 0x17d   : > { %v1263_v24 = vmax.f32 %v1237_v14, 0.0  ;;  %v1264_v25 = vmax.f32 %v1238_v15, 0.0  ;;  %v1265_v26 = vmax.f32 %v1239_v16, 0.0  ;;  %v1266_v27 = vmax.f32 %v1240_v17, 0.0  ;;  %v1224_v17 = vld [vmem:[#allocation2 + $0x68] sm:$0xff] }
 0x17e   : > { %v1267_v30 = vmax.f32 %v1241_v18, 0.0  ;;  %v1268_v31 = vmax.f32 %v1242_v19, 0.0  ;;  %v1269_v32 = vmax.f32 %v1243_v20, 0.0  ;;  %v1270_v33 = vmax.f32 %v1244_v21, 0.0 }
 0x17f   : > { %v1628_v36 = vpack.c.bf16 %v1264_v25, %v1263_v24  ;;  %v1629_v37 = vpack.c.bf16 %v1266_v27, %v1265_v26  ;;  %v1245_v38 = vadd.f32 %v2086_v9, %v1207_v22  ;;  %v1246_v39 = vadd.f32 %v2088_v10, %v1208_v23 }
 0x180   : > { %v1630_v42 = vpack.c.bf16 %v1268_v31, %v1267_v30  ;;  %v1631_v43 = vpack.c.bf16 %v1270_v33, %v1269_v32  ;;  %v1247_v44 = vadd.f32 %v2086_v9, %v1209_v28  ;;  %v1248_v45 = vadd.f32 %v2088_v10, %v1210_v29 }
 0x181   : > { %1369 = vst [vmem:[%s2173_s3] sm:$0xff] %v1628_v36  ;;  %1370 = vst [vmem:[%s2173_s3 + $0x8] sm:$0xff] %v1629_v37  ;;  %v1271_v47 = vmax.f32 %v1245_v38, 0.0  ;;  %v1272_v48 = vmax.f32 %v1246_v39, 0.0  ;;  %v1249_v49 = vadd.f32 %v2086_v9, %v1211_v34  ;;  %v1250_v50 = vadd.f32 %v2088_v10, %v1212_v35 }
 0x182   : > { %1371 = vst [vmem:[%s2173_s3 + $0x10] sm:$0xff] %v1630_v42  ;;  %1372 = vst [vmem:[%s2173_s3 + $0x18] sm:$0xff] %v1631_v43  ;;  %v1273_v52 = vmax.f32 %v1247_v44, 0.0  ;;  %v1274_v53 = vmax.f32 %v1248_v45, 0.0  ;;  %v1251_v54 = vadd.f32 %v2086_v9, %v1213_v40  ;;  %v1252_v55 = vadd.f32 %v2088_v10, %v1214_v41 }
 0x183   : > { %v1632_v58 = vpack.c.bf16 %v1272_v48, %v1271_v47  ;;  %v1275_v59 = vmax.f32 %v1249_v49, 0.0  ;;  %v1276_v60 = vmax.f32 %v1250_v50, 0.0  ;;  %v1253_v61 = vadd.f32 %v2086_v9, %v1215_v46 }
 0x184   : > { %v1633_v0 = vpack.c.bf16 %v1274_v53, %v1273_v52  ;;  %v1277_v1 = vmax.f32 %v1251_v54, 0.0  ;;  %v1278_v2 = vmax.f32 %v1252_v55, 0.0  ;;  %v1254_v3 = vadd.f32 %v2088_v10, %v1216_v51 }
 0x185   : > { %1373 = vst [vmem:[%s2173_s3 + $0x20] sm:$0xff] %v1632_v58  ;;  %v1634_v6 = vpack.c.bf16 %v1276_v60, %v1275_v59  ;;  %v1279_v7 = vmax.f32 %v1253_v61, 0.0  ;;  %v1255_v8 = vadd.f32 %v2086_v9, %v1217_v56  ;;  %v1256_v11 = vadd.f32 %v2088_v10, %v1218_v57 }
 0x186   : > { %1374 = vst [vmem:[%s2173_s3 + $0x28] sm:$0xff] %v1633_v0  ;;  %v1635_v13 = vpack.c.bf16 %v1278_v2, %v1277_v1  ;;  %v1280_v14 = vmax.f32 %v1254_v3, 0.0  ;;  %v1257_v15 = vadd.f32 %v2086_v9, %v1219_v62  ;;  %v1258_v16 = vadd.f32 %v2088_v10, %v1220_v63 }
 0x187   : > { %1375 = vst [vmem:[%s2173_s3 + $0x30] sm:$0xff] %v1634_v6  ;;  %v1281_v18 = vmax.f32 %v1255_v8, 0.0  ;;  %v1282_v19 = vmax.f32 %v1256_v11, 0.0  ;;  %v1259_v20 = vadd.f32 %v2086_v9, %v1221_v4  ;;  %v1260_v21 = vadd.f32 %v2088_v10, %v1222_v5 }
 0x188   : > { %1376 = vst [vmem:[%s2173_s3 + $0x38] sm:$0xff] %v1635_v13  ;;  %v1636_v22 = vpack.c.bf16 %v1280_v14, %v1279_v7  ;;  %v1283_v23 = vmax.f32 %v1257_v15, 0.0  ;;  %v1284_v24 = vmax.f32 %v1258_v16, 0.0  ;;  %v1261_v25 = vadd.f32 %v2086_v9, %v1223_v12 }
 0x189   : > { %v1637_v26 = vpack.c.bf16 %v1282_v19, %v1281_v18  ;;  %v1285_v27 = vmax.f32 %v1259_v20, 0.0  ;;  %v1286_v28 = vmax.f32 %v1260_v21, 0.0  ;;  %v1262_v29 = vadd.f32 %v2088_v10, %v1224_v17 }
 0x18a   : > { %1377 = vst [vmem:[%s2173_s3 + $0x40] sm:$0xff] %v1636_v22  ;;  %v1638_v30 = vpack.c.bf16 %v1284_v24, %v1283_v23  ;;  %v1287_v31 = vmax.f32 %v1261_v25, 0.0 }
 0x18b   : > { %1378 = vst [vmem:[%s2173_s3 + $0x48] sm:$0xff] %v1637_v26  ;;  %v1639_v32 = vpack.c.bf16 %v1286_v28, %v1285_v27  ;;  %v1288_v33 = vmax.f32 %v1262_v29, 0.0 }
 0x18c   : > { %1379 = vst [vmem:[%s2173_s3 + $0x50] sm:$0xff] %v1638_v30 }
 0x18d   : > { %1380 = vst [vmem:[%s2173_s3 + $0x58] sm:$0xff] %v1639_v32  ;;  %v1640_v9 = vpack.c.bf16 %v1288_v33, %v1287_v31 }
 0x18f   : > { %1381 = vst [vmem:[%s2173_s3 + $0x60] sm:$0xff] %v1640_v9 }
 0x190 PF: > { %s13_s16 = sadd.s32 1, %s1858_s16   ;;  %s2174_s12 = smov %s1846_s13 }
 0x191   : > { %p10_p12 = scmp.ge.s32.totalorder %s13_s16, 6   ;;  %s2175_s13 = smov %s1916_s20 }
 0x192   : > { %s2176_s14 = smov %s1854_s15  ;;  %s2177_s15 = smov %s2179_s17 }
 0x193   :  { %12 = sbr.rel (!%p10_p12) target bundleno = 3 (0x3), region = 104 }

// kernel: alexnet_forward.8
= control target key start
LH: loop header
LB: loop body
LE: loop exit
PB: predicated region body
PF: predicated region fallthrough
CT: control target
= control target key end

     0   :  { %s1894_s0 = inlined_call_operand.vmem [shape: bf16[24,2048], index: 0, kind: input, shape index: {}]   ;;  %s1895_s1 = inlined_call_operand.vmem [shape: bf16[2048,384], index: 1, kind: input, shape index: {}]   ;;  %s1896_s2 = inlined_call_operand.vmem [shape: f32[1,384], index: 2, kind: input, shape index: {}]   ;;  %s1897_s3 = inlined_call_operand.vmem [shape: bf16[24,384], index: 3, kind: output, shape index: {}]  }
   0x1   :  { %1899 = sst [smem:[#allocation7_spill]] %s1894_s0 }
   0x2   :  { %1900 = sst [smem:[#allocation8_spill]] %s1895_s1 }
   0x3   :  { %s1540_s12 = smov 0   ;;  %s1542_s13 = smov 0  }
   0x4   :  { %s1544_s14 = smov 0   ;;  %s1546_s15 = smov 0  }
   0x5   :  { %s1548_s16 = smov 0   ;;  %s1550_s17 = smov 0  }
   0x6   :  { %s1552_s18 = smov 0   ;;  %s1554_s19 = smov 0  }
   0x7   :  { %s1556_s20 = smov 0   ;;  %s1558_s21 = smov 0  }
   0x8   :  { %s1560_s22 = smov 0  }
   0x9 LB: > { %s1170_s23 = sadd.s32 4294967295, %s1517_s22   ;;  %s25_s24 = sadd.s32 1, %s1509_s20  ;;  %s1517_s22 = sphi %s1560_s22, %s13_s22   ;;  %s1513_s21 = sphi %s1558_s21, %s1917_s21   ;;  %s1509_s20 = sphi %s1556_s20, %s1916_s20   ;;  %s1505_s19 = sphi %s1554_s19, %s1915_s19   ;;  %s1501_s18 = sphi %s1552_s18, %s1914_s18   ;;  %s1497_s17 = sphi %s1550_s17, %s1913_s17   ;;  %s1493_s16 = sphi %s1548_s16, %s1912_s16   ;;  %s1489_s15 = sphi %s1546_s15, %s1911_s15   ;;  %s1485_s14 = sphi %s1544_s14, %s1910_s14   ;;  %s1481_s13 = sphi %s1542_s13, %s1909_s13   ;;  %s1477_s12 = sphi %s1540_s12, %s1908_s12  }
   0xa   : > { %p26_p0 = scmp.ge.s32.totalorder %s25_s24, 4  ;;  %s28_s25 = sadd.s32 1, %s1513_s21 }
   0xb   : > { %s41_s26 = sadd.s32 1, %s1497_s17  ;;  %p48_p1 = scmp.ne.s32.totalorder %s1497_s17, %s1493_s16 }
   0xc   : > { %s1919_s24 = smov (%p26_p0, %s25_s24), 0  ;;  %s1921_s25 = smov (!%p26_p0, %s28_s25), %s1513_s21 }
   0xd   : > { %s37_s27 = ssub.s32 %s1509_s20, %s1919_s24  ;;  %p49_p2 = scmp.eq.s32.totalorder %s1517_s22, 0 }
   0xe   : > { %p30_p3 = scmp.ge.s32.totalorder %s1921_s25, 3  ;;  %p39_p4 = scmp.eq.s32.totalorder %s37_s27, 0 }
   0xf   : > { %p1607_p5 = por %p49_p2, %p48_p1  ;;  %s69_s29 = sadd.s32 1, %s1489_s15 }
  0x10   : > { %s1923_s25 = smov (%p30_p3, %s1921_s25), 0  ;;  %p76_p6 = scmp.ne.s32.totalorder %s1489_s15, %s1485_s14 }
  0x11   : > { %1902 = sst [smem:[#allocation6_spill]] %s1923_s25  ;;  %s65_s4 = ssub.s32 %s1513_s21, %s1923_s25 }
  0x12   : > { %s1615_s30 = scalar_select %p39_p4, %s1497_s17, %s41_s26  }
  0x13   : > { %s66_s5 = sor.u32 %s65_s4, %s37_s27  ;;  %p121_p7 = scmp.eq.s32.totalorder %s65_s4, 0 }
  0x14   : > { %p67_p8 = scmp.eq.s32.totalorder %s66_s5, 0  ;;  %p1621_p9 = por %p76_p6, %p49_p2 }
  0x15   : > { %s123_s7 = sadd.s32 1, %s1481_s13  ;;  %p133_p10 = scmp.ne.s32.totalorder %s1481_s13, %s1477_s12 }
  0x16   : > { %s1629_s8 = scalar_select %p67_p8, %s1489_s15, %s69_s29  }
  0x17   : > { %s1632_s9 = scalar_select %p121_p7, %s1481_s13, %s123_s7  }
  0x18   : > { %p134_p11 = scmp.eq.s32.totalorder %s1170_s23, 11  ;;  %p1173_p13 = scmp.ge.s32.totalorder %s1517_s22, 12 }
  0x1a   : > { %p1634_p12 = por %p134_p11, %p133_p10  ;;  %156 = sbr.rel (%p1173_p13) target bundleno = 96 (0x60), region = 16 }
  0x1f   : > { %159 = sbr.rel (!%p1607_p5) target bundleno = 44 (0x2c), region = 20  ;;  %s161_s11 = sand.u32 (%p1607_p5), 1, %s1497_s17  }
  0x20   : > { %s1231_s26 = sshll.u32 (%p1607_p5), %s1509_s20, 4  ;;  %s1296_s27 = smul.u32 (%p1607_p5), 48, %s161_s11 }
  0x21   : > { %s1905_s0 = sld [smem:[#allocation7_spill]] (%p1607_p5) }
  0x22   : > { %s163_s23 = scalar_lea.vmem (%p1607_p5), [#allocation3], %s1296_s27 }
  0x27   : > { %s169_s5 = scalar_lea.vmem %s1905_s0, %s1231_s26 }
  0x28   : > { %v182_v0 = vld [vmem:[%s169_s5] sm:$0xff]  ;;  %v184_v1 = vld [vmem:[%s169_s5 + $0x8] sm:$0xff] }
  0x29   : > { %v186_v2 = vld [vmem:[%s169_s5 + $0x40] sm:$0xff]  ;;  %v188_v3 = vld [vmem:[%s169_s5 + $0x48] sm:$0xff]  ;;  %183 = vst [vmem:[%s163_s23] sm:$0xff] %v182_v0  ;;  %185 = vst [vmem:[%s163_s23 + $0x8] sm:$0xff] %v184_v1 }
  0x2a   : > { %v190_v4 = vld [vmem:[%s169_s5 + $0x80] sm:$0xff]  ;;  %v192_v5 = vld [vmem:[%s169_s5 + $0x88] sm:$0xff]  ;;  %187 = vst [vmem:[%s163_s23 + $0x10] sm:$0xff] %v186_v2  ;;  %189 = vst [vmem:[%s163_s23 + $0x18] sm:$0xff] %v188_v3 }
  0x2b   : > { %191 = vst [vmem:[%s163_s23 + $0x20] sm:$0xff] %v190_v4  ;;  %193 = vst [vmem:[%s163_s23 + $0x28] sm:$0xff] %v192_v5 }
  0x2c PF: > { %199 = sbr.rel (!%p1621_p9) target bundleno = 96 (0x60), region = 43  ;;  %s201_s28 = sand.u32 (%p1621_p9), 1, %s1489_s15  }
  0x2d   : > { %s1297_s7 = smul.u32 (%p1621_p9), 192, %s1509_s20  ;;  %s1176_s11 = sshll.u32 (%p1621_p9), %s201_s28, 8 }
  0x2e   : > { %s1906_s1 = sld [smem:[#allocation8_spill]] (%p1621_p9)  ;;  %s1659_s6 = scalar_lea.vmem (%p1621_p9), [#allocation4], %s1176_s11 }
  0x2f   : > { %s206_s26 = sadd.s32 (%p1621_p9), %s1513_s21, %s1297_s7 }
  0x30   : > { %s1179_s29 = sshll.u32 (%p1621_p9), %s206_s26, 2 }
  0x34   : > { %s1654_s5 = scalar_lea.vmem %s1906_s1, %s1179_s29 }
  0x35   : > { %v225_v6 = vld [vmem:[%s1654_s5] sm:$0xf]  ;;  %v227_v7 = vld [vmem:[%s1654_s5 + $0xc] sm:$0xf]  ;;  %v229_v8 = vld [vmem:[%s1654_s5 + $0x18] sm:$0xf] }
  0x36   : > { %226 = vst [vmem:[%s1659_s6] sm:$0xf] %v225_v6  ;;  %228 = vst [vmem:[%s1659_s6 + $0x4] sm:$0xf] %v227_v7  ;;  %v231_v9 = vld [vmem:[%s1654_s5 + $0x24] sm:$0xf] }
  0x37   : > { %230 = vst [vmem:[%s1659_s6 + $0x8] sm:$0xf] %v229_v8  ;;  %v233_v10 = vld [vmem:[%s1654_s5 + $0x30] sm:$0xf]  ;;  %v235_v11 = vld [vmem:[%s1654_s5 + $0x3c] sm:$0xf] }
  0x38   : > { %232 = vst [vmem:[%s1659_s6 + $0xc] sm:$0xf] %v231_v9  ;;  %234 = vst [vmem:[%s1659_s6 + $0x10] sm:$0xf] %v233_v10  ;;  %v237_v12 = vld [vmem:[%s1654_s5 + $0x48] sm:$0xf] }
  0x39   : > { %236 = vst [vmem:[%s1659_s6 + $0x14] sm:$0xf] %v235_v11  ;;  %v239_v13 = vld [vmem:[%s1654_s5 + $0x54] sm:$0xf]  ;;  %v241_v14 = vld [vmem:[%s1654_s5 + $0x60] sm:$0xf] }
  0x3a   : > { %238 = vst [vmem:[%s1659_s6 + $0x18] sm:$0xf] %v237_v12  ;;  %240 = vst [vmem:[%s1659_s6 + $0x1c] sm:$0xf] %v239_v13  ;;  %v243_v15 = vld [vmem:[%s1654_s5 + $0x6c] sm:$0xf] }
  0x3b   : > { %242 = vst [vmem:[%s1659_s6 + $0x20] sm:$0xf] %v241_v14  ;;  %v245_v16 = vld [vmem:[%s1654_s5 + $0x78] sm:$0xf]  ;;  %v247_v17 = vld [vmem:[%s1654_s5 + $0x84] sm:$0xf] }
  0x3c   : > { %244 = vst [vmem:[%s1659_s6 + $0x24] sm:$0xf] %v243_v15  ;;  %246 = vst [vmem:[%s1659_s6 + $0x28] sm:$0xf] %v245_v16  ;;  %v249_v18 = vld [vmem:[%s1654_s5 + $0x90] sm:$0xf] }
  0x3d   : > { %248 = vst [vmem:[%s1659_s6 + $0x2c] sm:$0xf] %v247_v17  ;;  %v251_v19 = vld [vmem:[%s1654_s5 + $0x9c] sm:$0xf]  ;;  %v253_v20 = vld [vmem:[%s1654_s5 + $0xa8] sm:$0xf] }
  0x3e   : > { %250 = vst [vmem:[%s1659_s6 + $0x30] sm:$0xf] %v249_v18  ;;  %252 = vst [vmem:[%s1659_s6 + $0x34] sm:$0xf] %v251_v19  ;;  %v255_v21 = vld [vmem:[%s1654_s5 + $0xb4] sm:$0xf] }
  0x3f   : > { %254 = vst [vmem:[%s1659_s6 + $0x38] sm:$0xf] %v253_v20  ;;  %v257_v22 = vld [vmem:[%s1654_s5 + $0xc0] sm:$0xf]  ;;  %v259_v23 = vld [vmem:[%s1654_s5 + $0xcc] sm:$0xf] }
  0x40   : > { %256 = vst [vmem:[%s1659_s6 + $0x3c] sm:$0xf] %v255_v21  ;;  %258 = vst [vmem:[%s1659_s6 + $0x40] sm:$0xf] %v257_v22  ;;  %v261_v24 = vld [vmem:[%s1654_s5 + $0xd8] sm:$0xf] }
  0x41   : > { %260 = vst [vmem:[%s1659_s6 + $0x44] sm:$0xf] %v259_v23  ;;  %v263_v25 = vld [vmem:[%s1654_s5 + $0xe4] sm:$0xf]  ;;  %v265_v26 = vld [vmem:[%s1654_s5 + $0xf0] sm:$0xf] }
  0x42   : > { %262 = vst [vmem:[%s1659_s6 + $0x48] sm:$0xf] %v261_v24  ;;  %264 = vst [vmem:[%s1659_s6 + $0x4c] sm:$0xf] %v263_v25  ;;  %v267_v27 = vld [vmem:[%s1654_s5 + $0xfc] sm:$0xf] }
  0x43   : > { %266 = vst [vmem:[%s1659_s6 + $0x50] sm:$0xf] %v265_v26  ;;  %v269_v28 = vld [vmem:[%s1654_s5 + $0x108] sm:$0xf]  ;;  %v271_v29 = vld [vmem:[%s1654_s5 + $0x114] sm:$0xf] }
  0x44   : > { %268 = vst [vmem:[%s1659_s6 + $0x54] sm:$0xf] %v267_v27  ;;  %270 = vst [vmem:[%s1659_s6 + $0x58] sm:$0xf] %v269_v28  ;;  %v273_v30 = vld [vmem:[%s1654_s5 + $0x120] sm:$0xf] }
  0x45   : > { %272 = vst [vmem:[%s1659_s6 + $0x5c] sm:$0xf] %v271_v29  ;;  %v275_v31 = vld [vmem:[%s1654_s5 + $0x12c] sm:$0xf]  ;;  %v277_v32 = vld [vmem:[%s1654_s5 + $0x138] sm:$0xf] }
  0x46   : > { %274 = vst [vmem:[%s1659_s6 + $0x60] sm:$0xf] %v273_v30  ;;  %276 = vst [vmem:[%s1659_s6 + $0x64] sm:$0xf] %v275_v31  ;;  %v279_v33 = vld [vmem:[%s1654_s5 + $0x144] sm:$0xf] }
  0x47   : > { %278 = vst [vmem:[%s1659_s6 + $0x68] sm:$0xf] %v277_v32  ;;  %v281_v34 = vld [vmem:[%s1654_s5 + $0x150] sm:$0xf]  ;;  %v283_v35 = vld [vmem:[%s1654_s5 + $0x15c] sm:$0xf] }
  0x48   : > { %280 = vst [vmem:[%s1659_s6 + $0x6c] sm:$0xf] %v279_v33  ;;  %282 = vst [vmem:[%s1659_s6 + $0x70] sm:$0xf] %v281_v34  ;;  %v285_v36 = vld [vmem:[%s1654_s5 + $0x168] sm:$0xf] }
  0x49   : > { %284 = vst [vmem:[%s1659_s6 + $0x74] sm:$0xf] %v283_v35  ;;  %v287_v37 = vld [vmem:[%s1654_s5 + $0x174] sm:$0xf]  ;;  %v289_v38 = vld [vmem:[%s1654_s5 + $0x180] sm:$0xf] }
  0x4a   : > { %286 = vst [vmem:[%s1659_s6 + $0x78] sm:$0xf] %v285_v36  ;;  %288 = vst [vmem:[%s1659_s6 + $0x7c] sm:$0xf] %v287_v37  ;;  %v291_v39 = vld [vmem:[%s1654_s5 + $0x18c] sm:$0xf] }
  0x4b   : > { %290 = vst [vmem:[%s1659_s6 + $0x80] sm:$0xf] %v289_v38  ;;  %v293_v40 = vld [vmem:[%s1654_s5 + $0x198] sm:$0xf]  ;;  %v295_v41 = vld [vmem:[%s1654_s5 + $0x1a4] sm:$0xf] }
  0x4c   : > { %292 = vst [vmem:[%s1659_s6 + $0x84] sm:$0xf] %v291_v39  ;;  %294 = vst [vmem:[%s1659_s6 + $0x88] sm:$0xf] %v293_v40  ;;  %v297_v42 = vld [vmem:[%s1654_s5 + $0x1b0] sm:$0xf] }
  0x4d   : > { %296 = vst [vmem:[%s1659_s6 + $0x8c] sm:$0xf] %v295_v41  ;;  %v299_v43 = vld [vmem:[%s1654_s5 + $0x1bc] sm:$0xf]  ;;  %v301_v44 = vld [vmem:[%s1654_s5 + $0x1c8] sm:$0xf] }
  0x4e   : > { %298 = vst [vmem:[%s1659_s6 + $0x90] sm:$0xf] %v297_v42  ;;  %300 = vst [vmem:[%s1659_s6 + $0x94] sm:$0xf] %v299_v43  ;;  %v303_v45 = vld [vmem:[%s1654_s5 + $0x1d4] sm:$0xf] }
  0x4f   : > { %302 = vst [vmem:[%s1659_s6 + $0x98] sm:$0xf] %v301_v44  ;;  %v305_v46 = vld [vmem:[%s1654_s5 + $0x1e0] sm:$0xf]  ;;  %v307_v47 = vld [vmem:[%s1654_s5 + $0x1ec] sm:$0xf] }
  0x50   : > { %304 = vst [vmem:[%s1659_s6 + $0x9c] sm:$0xf] %v303_v45  ;;  %306 = vst [vmem:[%s1659_s6 + $0xa0] sm:$0xf] %v305_v46  ;;  %v309_v48 = vld [vmem:[%s1654_s5 + $0x1f8] sm:$0xf] }
  0x51   : > { %308 = vst [vmem:[%s1659_s6 + $0xa4] sm:$0xf] %v307_v47  ;;  %v311_v49 = vld [vmem:[%s1654_s5 + $0x204] sm:$0xf]  ;;  %v313_v50 = vld [vmem:[%s1654_s5 + $0x210] sm:$0xf] }
  0x52   : > { %310 = vst [vmem:[%s1659_s6 + $0xa8] sm:$0xf] %v309_v48  ;;  %312 = vst [vmem:[%s1659_s6 + $0xac] sm:$0xf] %v311_v49  ;;  %v315_v51 = vld [vmem:[%s1654_s5 + $0x21c] sm:$0xf] }
  0x53   : > { %314 = vst [vmem:[%s1659_s6 + $0xb0] sm:$0xf] %v313_v50  ;;  %v317_v52 = vld [vmem:[%s1654_s5 + $0x228] sm:$0xf]  ;;  %v319_v53 = vld [vmem:[%s1654_s5 + $0x234] sm:$0xf] }
  0x54   : > { %316 = vst [vmem:[%s1659_s6 + $0xb4] sm:$0xf] %v315_v51  ;;  %318 = vst [vmem:[%s1659_s6 + $0xb8] sm:$0xf] %v317_v52  ;;  %v321_v54 = vld [vmem:[%s1654_s5 + $0x240] sm:$0xf] }
  0x55   : > { %320 = vst [vmem:[%s1659_s6 + $0xbc] sm:$0xf] %v319_v53  ;;  %v323_v55 = vld [vmem:[%s1654_s5 + $0x24c] sm:$0xf]  ;;  %v325_v56 = vld [vmem:[%s1654_s5 + $0x258] sm:$0xf] }
  0x56   : > { %322 = vst [vmem:[%s1659_s6 + $0xc0] sm:$0xf] %v321_v54  ;;  %324 = vst [vmem:[%s1659_s6 + $0xc4] sm:$0xf] %v323_v55  ;;  %v327_v57 = vld [vmem:[%s1654_s5 + $0x264] sm:$0xf] }
  0x57   : > { %326 = vst [vmem:[%s1659_s6 + $0xc8] sm:$0xf] %v325_v56  ;;  %v329_v58 = vld [vmem:[%s1654_s5 + $0x270] sm:$0xf]  ;;  %v331_v59 = vld [vmem:[%s1654_s5 + $0x27c] sm:$0xf] }
  0x58   : > { %328 = vst [vmem:[%s1659_s6 + $0xcc] sm:$0xf] %v327_v57  ;;  %330 = vst [vmem:[%s1659_s6 + $0xd0] sm:$0xf] %v329_v58  ;;  %v333_v60 = vld [vmem:[%s1654_s5 + $0x288] sm:$0xf] }
  0x59   : > { %332 = vst [vmem:[%s1659_s6 + $0xd4] sm:$0xf] %v331_v59  ;;  %v335_v61 = vld [vmem:[%s1654_s5 + $0x294] sm:$0xf]  ;;  %v337_v62 = vld [vmem:[%s1654_s5 + $0x2a0] sm:$0xf] }
  0x5a   : > { %334 = vst [vmem:[%s1659_s6 + $0xd8] sm:$0xf] %v333_v60  ;;  %336 = vst [vmem:[%s1659_s6 + $0xdc] sm:$0xf] %v335_v61  ;;  %v339_v63 = vld [vmem:[%s1654_s5 + $0x2ac] sm:$0xf] }
  0x5b   : > { %338 = vst [vmem:[%s1659_s6 + $0xe0] sm:$0xf] %v337_v62  ;;  %v341_v0 = vld [vmem:[%s1654_s5 + $0x2b8] sm:$0xf]  ;;  %v343_v1 = vld [vmem:[%s1654_s5 + $0x2c4] sm:$0xf] }
  0x5c   : > { %340 = vst [vmem:[%s1659_s6 + $0xe4] sm:$0xf] %v339_v63  ;;  %342 = vst [vmem:[%s1659_s6 + $0xe8] sm:$0xf] %v341_v0  ;;  %v345_v2 = vld [vmem:[%s1654_s5 + $0x2d0] sm:$0xf] }
  0x5d   : > { %344 = vst [vmem:[%s1659_s6 + $0xec] sm:$0xf] %v343_v1  ;;  %v347_v3 = vld [vmem:[%s1654_s5 + $0x2dc] sm:$0xf]  ;;  %v349_v4 = vld [vmem:[%s1654_s5 + $0x2e8] sm:$0xf] }
  0x5e   : > { %346 = vst [vmem:[%s1659_s6 + $0xf0] sm:$0xf] %v345_v2  ;;  %348 = vst [vmem:[%s1659_s6 + $0xf4] sm:$0xf] %v347_v3  ;;  %v351_v5 = vld [vmem:[%s1654_s5 + $0x2f4] sm:$0xf] }
  0x5f   : > { %350 = vst [vmem:[%s1659_s6 + $0xf8] sm:$0xf] %v349_v4  ;;  %352 = vst [vmem:[%s1659_s6 + $0xfc] sm:$0xf] %v351_v5 }
  0x60 PF: > { %p1180_p0 = scmp.ge.s32.totalorder %s1517_s22, 1  ;;  %p509_p1 = scmp.lt.s32.totalorder %s1517_s22, 13 }
  0x62   : > { %p510_p2 = pnand %p1180_p0, %p509_p1 }
  0x63   : > { %s516_s23 = sand.u32 (!%p510_p2), 1, %s1493_s16   ;;  %s523_s28 = sand.u32 (!%p510_p2), 1, %s1485_s14  }
  0x64   : > { %513 = sbr.rel (%p510_p2) target bundleno = 381 (0x17d), region = 88  ;;  %s1181_s11 = sshll.u32 (!%p510_p2), %s523_s28, 8 }
  0x65   : > { %s1298_s7 = smul.u32 (!%p510_p2), 48, %s516_s23  ;;  %s549_s26 = sand.u32 (!%p510_p2), 1, %s1477_s12  }
  0x66   : > { %s1299_s29 = smul.u32 (!%p510_p2), 12, %s549_s26  ;;  %p555_p3 = scmp.lt.s32.totalorder (!%p510_p2), %s1505_s19, 2 }
  0x67   : > { %s1799_s0 = scalar_lea.vmem (!%p510_p2), [#allocation3], %s1298_s7  ;;  %s1801_s1 = scalar_lea.vmem (!%p510_p2), [#allocation4], %s1181_s11 }
  0x68   : > { %s1803_s25 = scalar_lea.vmem (!%p510_p2), [#allocation5], %s1299_s29  ;;  %p1182_p4 = scmp.ne.s32.totalorder (!%p510_p2), %s1501_s18, 0 }
  0x69   : > { %s1793_s4 = scalar_select %p555_p3, %s1505_s19, 2 }
  0x6a   : > { %563 = sbr.rel (%p1182_p4) target bundleno = 114 (0x72), region = 100 }
  0x6b   : > { %s557_s6 = scalar_lea.vmem %s1896_s2, %s1793_s4 }
  0x6f   : > { %v1519_v6 = vmov 0.0  }
  0x70   : > { %564 = vst [vmem:[#allocation2 + $0x10] sm:$0xff] %v1519_v6  ;;  %565 = vst [vmem:[#allocation2] sm:$0xff] %v1519_v6 }
  0x71   : > { %566 = vst [vmem:[#allocation2 + $0x8] sm:$0xff] %v1519_v6 }
  0x72 PF: > { %v1389_v7 = vld [vmem:[%s1801_s1 + $0x78] sm:$0xff]   ;;  %v1393_v11 = vld [vmem:[%s1801_s1 + $0x70] sm:$0xff]   ;;  %v1397_v15 = vld [vmem:[%s1801_s1 + $0x68] sm:$0xff]   ;;  %p1223_p5 = scmp.ne.s32.totalorder %s1501_s18, 3 }
  0x73   : > { %v1390_v8 = vld [vmem:[%s1801_s1 + $0xf8] sm:$0xff]   ;;  %1240 = vmatprep.subr.bf16.mxu0 %v1389_v7  ;;  %v1394_v12 = vld [vmem:[%s1801_s1 + $0xf0] sm:$0xff]   ;;  %v1398_v16 = vld [vmem:[%s1801_s1 + $0xe8] sm:$0xff]  }
  0x74   : > { %v1391_v9 = vld [vmem:[%s1801_s1 + $0x38] sm:$0xff]   ;;  %1268 = vmatprep.subr.bf16.mxu1 %v1390_v8  ;;  %v1395_v13 = vld [vmem:[%s1801_s1 + $0x30] sm:$0xff]   ;;  %v1399_v17 = vld [vmem:[%s1801_s1 + $0x28] sm:$0xff]  }
  0x75   : > { %v1392_v10 = vld [vmem:[%s1801_s1 + $0xb8] sm:$0xff]   ;;  %1241 = vmatpush3.bf16.msra.mxu0 %v1391_v9  ;;  %v1396_v14 = vld [vmem:[%s1801_s1 + $0xb0] sm:$0xff]   ;;  %v1400_v18 = vld [vmem:[%s1801_s1 + $0xa8] sm:$0xff]  }
  0x76   : > { %1269 = vmatpush3.bf16.msra.mxu1 %v1392_v10  ;;  %1242 = vmatprep.subr.bf16.mxu0 %v1393_v11  ;;  %v1401_v19 = vld [vmem:[%s1801_s1 + $0x60] sm:$0xff]   ;;  %v1405_v23 = vld [vmem:[%s1801_s1 + $0x58] sm:$0xff]   ;;  %v1409_v27 = vld [vmem:[%s1801_s1 + $0x50] sm:$0xff]  }
  0x77   : > { %1270 = vmatprep.subr.bf16.mxu1 %v1394_v12  ;;  %v1402_v20 = vld [vmem:[%s1801_s1 + $0xe0] sm:$0xff]   ;;  %v1406_v24 = vld [vmem:[%s1801_s1 + $0xd8] sm:$0xff]   ;;  %v1410_v28 = vld [vmem:[%s1801_s1 + $0xd0] sm:$0xff]  }
  0x78   : > { %v1403_v21 = vld [vmem:[%s1801_s1 + $0x20] sm:$0xff]   ;;  %v1407_v25 = vld [vmem:[%s1801_s1 + $0x18] sm:$0xff]   ;;  %v1411_v29 = vld [vmem:[%s1801_s1 + $0x10] sm:$0xff]  }
  0x79   : > { %1243 = vmatpush3.bf16.msra.mxu0 %v1395_v13  ;;  %v1404_v22 = vld [vmem:[%s1801_s1 + $0xa0] sm:$0xff]   ;;  %v1408_v26 = vld [vmem:[%s1801_s1 + $0x98] sm:$0xff]   ;;  %v1412_v30 = vld [vmem:[%s1801_s1 + $0x90] sm:$0xff]  }
  0x7a   : > { %1271 = vmatpush3.bf16.msra.mxu1 %v1396_v14  ;;  %1244 = vmatprep.subr.bf16.mxu0 %v1397_v15  ;;  %v1413_v31 = vld [vmem:[%s1801_s1 + $0x48] sm:$0xff]   ;;  %v1417_v35 = vld [vmem:[%s1801_s1 + $0x40] sm:$0xff]   ;;  %v567_v56 = vld [vmem:[#allocation2 + $0x10] sm:$0xff] }
  0x7b   : > { %1272 = vmatprep.subr.bf16.mxu1 %v1398_v16  ;;  %v1414_v32 = vld [vmem:[%s1801_s1 + $0xc8] sm:$0xff]   ;;  %v1418_v36 = vld [vmem:[%s1801_s1 + $0xc0] sm:$0xff]   ;;  %v569_v10 = vld [vmem:[#allocation2 + $0x8] sm:$0xff] }
  0x7c   : > { %v1415_v33 = vld [vmem:[%s1801_s1 + $0x8] sm:$0xff]   ;;  %v1419_v37 = vld [vmem:[%s1801_s1] sm:$0xff]  }
  0x7d   : > { %1245 = vmatpush3.bf16.msra.mxu0 %v1399_v17  ;;  %v1416_v34 = vld [vmem:[%s1801_s1 + $0x88] sm:$0xff]   ;;  %v1420_v38 = vld [vmem:[%s1801_s1 + $0x80] sm:$0xff]  }
  0x7e   : > { %1273 = vmatpush3.bf16.msra.mxu1 %v1400_v18  ;;  %1246 = vmatprep.subr.bf16.mxu0 %v1401_v19  ;;  %v1421_v39 = vld [vmem:[%s1799_s0] ss:$16 sps:$4 sm:$0xff]   ;;  %v1423_v40 = vld [vmem:[%s1799_s0 + $0x4] ss:$16 sps:$4 sm:$0xff]   ;;  %v1424_v41 = vld [vmem:[%s1799_s0 + $0x8] ss:$16 sps:$4 sm:$0xff]  }
  0x7f   : > { %1274 = vmatprep.subr.bf16.mxu1 %v1402_v20  ;;  %v1426_v42 = vld [vmem:[%s1799_s0 + $0xc] ss:$16 sps:$4 sm:$0xff]   ;;  %v574_v43 = vld [vmem:[%s1799_s0 + $0x20] sm:$0xff]  ;;  %898 = vmatprep.mubr.bf16.mxu0 %v1423_v40 }
  0x80   : > { %v1188_v44 = vcombine.high %v574_v43, %v574_v43  ;;  %v575_v45 = vld [vmem:[%s1799_s0 + $0x28] sm:$0xff]  ;;  %946 = vmatprep.mubr.bf16.mxu1 %v1426_v42  ;;  %v1187_v47 = vcombine.low %v574_v43, %v574_v43 }
  0x81   : > { %1247 = vmatpush3.bf16.msra.mxu0 %v1403_v21  ;;  %v1190_v46 = vcombine.high %v575_v45, %v575_v45  ;;  %v1189_v48 = vcombine.low %v575_v45, %v575_v45  ;;  %v568_v1 = vld [vmem:[#allocation2] sm:$0xff] }
  0x82   : > { %1275 = vmatpush3.bf16.msra.mxu1 %v1404_v22  ;;  %1248 = vmatprep.subr.bf16.mxu0 %v1405_v23 }
  0x83   : > { %1276 = vmatprep.subr.bf16.mxu1 %v1406_v24 }
  0x85   : > { %1249 = vmatpush3.bf16.msra.mxu0 %v1407_v25 }
  0x86   : > { %1277 = vmatpush3.bf16.msra.mxu1 %v1408_v26  ;;  %1250 = vmatprep.subr.bf16.mxu0 %v1409_v27 }
  0x87   : > { %1278 = vmatprep.subr.bf16.mxu1 %v1410_v28 }
  0x89   : > { %1251 = vmatpush3.bf16.msra.mxu0 %v1411_v29 }
  0x8a   : > { %1279 = vmatpush3.bf16.msra.mxu1 %v1412_v30  ;;  %1252 = vmatprep.subr.bf16.mxu0 %v1413_v31 }
  0x8b   : > { %1280 = vmatprep.subr.bf16.mxu1 %v1414_v32 }
  0x8d   : > { %1253 = vmatpush3.bf16.msra.mxu0 %v1415_v33 }
  0x8e   : > { %1281 = vmatpush3.bf16.msra.mxu1 %v1416_v34  ;;  %1254 = vmatprep.subr.bf16.mxu0 %v1417_v35 }
  0x8f   : > { %1282 = vmatprep.subr.bf16.mxu1 %v1418_v36 }
  0x91   : > { %1255 = vmatpush3.bf16.msra.mxu0 %v1419_v37 }
  0x92   : > { %1283 = vmatpush3.bf16.msra.mxu1 %v1420_v38 }
  0x94   : > { %899 = vmatmul.mubr.bf16.vlgmr.msra.gmra.mxu0 %v1421_v39 }
  0x95   : > { %947 = vmatmul.mubr.bf16.vlgmr.msra.gmra.mxu1 %v1424_v41  ;;  %906 = vmatprep.mubr.bf16.mxu0 %v1188_v44 }
  0x96   : > { %954 = vmatprep.mubr.bf16.mxu1 %v1190_v46 }
  0x9c   : > { %907 = vmatmul.mubr.bf16.gmra.mxu0 %v1187_v47 }
  0x9d   : > { %955 = vmatmul.mubr.bf16.gmra.mxu1 %v1189_v48 }
 0x154   : > { %v1256_v49 = vpop.f32.mrf.mxu0 }
 0x155   : > { %v1284_v50 = vpop.f32.mrf.mxu1 }
 0x156   : > { %v1257_v51 = vpop.f32.mrf.mxu0 }
 0x157   : > { %v1258_v52 = vadd.f32 %v1257_v51, %v1256_v49  ;;  %v1285_v53 = vpop.f32.mrf.mxu1 }
 0x158   : > { %v1286_v54 = vadd.f32 %v1285_v53, %v1284_v50  ;;  %v1259_v55 = vpop.f32.mrf.mxu0 }
 0x159   : > { %v1287_v57 = vpop.f32.mrf.mxu1 }
 0x15a   : > { %v949_v58 = vadd.f32 %v1286_v54, %v1258_v52  ;;  %v1260_v59 = vpop.f32.mrf.mxu0 }
 0x15b   : > { %v1261_v60 = vadd.f32 %v1260_v59, %v1259_v55  ;;  %v1288_v61 = vpop.f32.mrf.mxu1 }
 0x15c   : > { %v962_v62 = vadd.f32 %v949_v58, %v567_v56  ;;  %v1289_v63 = vadd.f32 %v1288_v61, %v1287_v57  ;;  %v1262_v0 = vpop.f32.mrf.mxu0 }
 0x15d   : > { %v1290_v2 = vpop.f32.mrf.mxu1 }
 0x15e   : > { %965 = vst [vmem:[#allocation2 + $0x10] sm:$0xff] %v962_v62  ;;  %v952_v3 = vadd.f32 %v1289_v63, %v1261_v60  ;;  %v1263_v4 = vpop.f32.mrf.mxu0 }
 0x15f   : > { %v1264_v5 = vadd.f32 %v1263_v4, %v1262_v0  ;;  %v1291_v6 = vpop.f32.mrf.mxu1 }
 0x160   : > { %v963_v7 = vadd.f32 %v952_v3, %v568_v1  ;;  %v1292_v8 = vadd.f32 %v1291_v6, %v1290_v2  ;;  %v1265_v9 = vpop.f32.mrf.mxu0 }
 0x161   : > { %v1293_v11 = vpop.f32.mrf.mxu1 }
 0x162   : > { %966 = vst [vmem:[#allocation2] sm:$0xff] %v963_v7  ;;  %v957_v12 = vadd.f32 %v1292_v8, %v1264_v5  ;;  %v1266_v13 = vpop.f32.mrf.mxu0  ;;  %971 = sbr.rel (%p1223_p5) target bundleno = 373 (0x175), region = 104 }
 0x163   : > { %v1294_v14 = vpop.f32.mrf.mxu1 }
 0x164   : > { %v964_v15 = vadd.f32 %v957_v12, %v569_v10 }
 0x166   : > { %967 = vst [vmem:[#allocation2 + $0x8] sm:$0xff] %v964_v15 }
 0x167   : > { %v972_v16 = vld [vmem:[#allocation2 + $0x10] sm:$0xff]  ;;  %v1224_v18 = vld [vmem:[%s557_s6] ss:$0 sm:$0xff] }
 0x168   : > { %v982_v19 = vadd.f32 %v1224_v18, %v972_v16 }
 0x169   : > { %v973_v17 = vld [vmem:[#allocation2] sm:$0xff] }
 0x16a   : > { %v983_v20 = vadd.f32 %v1224_v18, %v973_v17  ;;  %v985_v23 = vmax.f32 %v982_v19, 0.0 }
 0x16c   : > { %v986_v24 = vmax.f32 %v983_v20, 0.0 }
 0x16d   : > { %v974_v21 = vld [vmem:[#allocation2 + $0x8] sm:$0xff] }
 0x16e   : > { %v984_v22 = vadd.f32 %v1224_v18, %v974_v21  ;;  %v1238_v26 = vpack.c.bf16 %v986_v24, %v985_v23 }
 0x170   : > { %v987_v25 = vmax.f32 %v984_v22, 0.0  ;;  %1239 = vst [vmem:[%s1803_s25] sm:$0xff] %v1238_v26  }
 0x172   : > { %v1234_v27 = vpack.c.bf16 %v987_v25, %v987_v25 }
 0x174   : > { %1003 = vst [vmem:[%s1803_s25 + $0x8] sm:$0xf] %v1234_v27 }
 0x175 PF: > { %1010 = sbr.rel (!%p1634_p12) target bundleno = 381 (0x17d), region = 108  ;;  %s1228_s12 = sshll.u32 (%p1634_p12), %s1505_s19, 2 }
 0x176   : > { %s1015_s18 = scalar_lea.vmem (%p1634_p12), %s1897_s3, %s1228_s12 }
 0x177   : > { %v1032_v28 = vld [vmem:[%s1803_s25] sm:$0xf] (%p1634_p12)  ;;  %v1034_v29 = vld [vmem:[%s1803_s25 + $0x4] sm:$0xf] (%p1634_p12) }
 0x178   : > { %1033 = vst [vmem:[%s1015_s18] sm:$0xf] (%p1634_p12), %v1032_v28  ;;  %1035 = vst [vmem:[%s1015_s18 + $0xc] sm:$0xf] (%p1634_p12), %v1034_v29 }
 0x17b   : > { %v1036_v30 = vld [vmem:[%s1803_s25 + $0x8] sm:$0xf] }
 0x17c   : > { %1037 = vst [vmem:[%s1015_s18 + $0x18] sm:$0xf] %v1036_v30 }
 0x17d PF: > { %s13_s22 = sadd.s32 1, %s1517_s22   ;;  %s1907_s10 = sld [smem:[#allocation6_spill]] }
 0x17e   : > { %p10_p6 = scmp.ge.s32.totalorder %s13_s22, 14   ;;  %s1908_s12 = smov %s1481_s13 }
 0x17f   : > { %s1909_s13 = smov %s1632_s9  ;;  %s1910_s14 = smov %s1489_s15 }
 0x180   : > { %s1911_s15 = smov %s1629_s8  ;;  %s1912_s16 = smov %s1497_s17 }
 0x181   : > { %s1913_s17 = smov %s1615_s30  ;;  %s1914_s18 = smov %s1509_s20 }
 0x182   : > { %s1915_s19 = smov %s1513_s21  ;;  %s1916_s20 = smov %s1919_s24 }
 0x183   : > { %s1917_s21 = smov %s1907_s10  ;;  %12 = sbr.rel (!%p10_p6) target bundleno = 9 (0x9), region = 191 }

// kernel: alexnet_forward.9
= control target key start
LH: loop header
LB: loop body
LE: loop exit
PB: predicated region body
PF: predicated region fallthrough
CT: control target
= control target key end

     0   :  { %s1341_s12 = smov 0   ;;  %s1343_s13 = smov 0   ;;  %s1494_s0 = inlined_call_operand.vmem [shape: bf16[24,3584], index: 0, kind: input, shape index: {}]   ;;  %s1495_s1 = inlined_call_operand.vmem [shape: bf16[3584,256], index: 1, kind: input, shape index: {}]   ;;  %s1496_s2 = inlined_call_operand.vmem [shape: f32[1,256], index: 2, kind: input, shape index: {}]   ;;  %s1497_s3 = inlined_call_operand.vmem [shape: bf16[24,256], index: 3, kind: output, shape index: {}]  }
   0x1   :  { %s1345_s14 = smov 0   ;;  %s1347_s15 = smov 0  }
   0x2   :  { %s1349_s16 = smov 0  }
   0x3 LB: > { %s25_s17 = sadd.s32 1, %s1314_s15  ;;  %p48_p1 = scmp.ne.s32.totalorder %s1306_s13, %s1302_s12  ;;  %s1318_s16 = sphi %s1349_s16, %s13_s16   ;;  %s1314_s15 = sphi %s1347_s15, %s1501_s15   ;;  %s1310_s14 = sphi %s1345_s14, %s1500_s14   ;;  %s1306_s13 = sphi %s1343_s13, %s1499_s13   ;;  %s1302_s12 = sphi %s1341_s12, %s1498_s12  }
   0x4   : > { %p26_p0 = scmp.ge.s32.totalorder %s25_s17, 7  ;;  %p49_p2 = scmp.eq.s32.totalorder %s1318_s16, 0 }
   0x5   : > { %s41_s19 = sadd.s32 1, %s1306_s13  ;;  %p1038_p5 = scmp.ge.s32.totalorder %s1318_s16, 7 }
   0x6   : > { %s1503_s17 = smov (%p26_p0, %s25_s17), 0  ;;  %p50_p3 = por %p49_p2, %p48_p1 }
   0x7   : > { %s37_s18 = ssub.s32 %s1314_s15, %s1503_s17  ;;  %164 = sbr.rel (%p1038_p5) target bundleno = 20 (0x14), region = 20 }
   0x8   : > { %p39_p4 = scmp.eq.s32.totalorder %s37_s18, 0 }
   0xa   : > { %s1376_s20 = scalar_select %p39_p4, %s1306_s13, %s41_s19  }
   0xc   : > { %167 = sbr.rel (!%p50_p3) target bundleno = 20 (0x14), region = 24  ;;  %s169_s21 = sand.u32 (%p50_p3), 1, %s1306_s13  }
   0xd   : > { %s1126_s22 = sshll.u32 (%p50_p3), %s1314_s15, 4  ;;  %s1131_s23 = smul.u32 (%p50_p3), 48, %s169_s21 }
   0xe   : > { %s177_s26 = scalar_lea.vmem (%p50_p3), %s1494_s0, %s1126_s22 }
   0xf   : > { %v190_v0 = vld [vmem:[%s177_s26] sm:$0xff] (%p50_p3)  ;;  %v192_v1 = vld [vmem:[%s177_s26 + $0x8] sm:$0xff] (%p50_p3)  ;;  %v194_v2 = vld [vmem:[%s177_s26 + $0x70] sm:$0xff] (%p50_p3)  ;;  %s171_s27 = scalar_lea.vmem (%p50_p3), [#allocation3], %s1131_s23 }
  0x10   : > { %v196_v3 = vld [vmem:[%s177_s26 + $0x78] sm:$0xff] (%p50_p3)  ;;  %v198_v4 = vld [vmem:[%s177_s26 + $0xe0] sm:$0xff] (%p50_p3)  ;;  %v200_v5 = vld [vmem:[%s177_s26 + $0xe8] sm:$0xff] (%p50_p3)  ;;  %191 = vst [vmem:[%s171_s27] sm:$0xff] (%p50_p3), %v190_v0 }
  0x11   : > { %193 = vst [vmem:[%s171_s27 + $0x8] sm:$0xff] %v192_v1  ;;  %195 = vst [vmem:[%s171_s27 + $0x10] sm:$0xff] %v194_v2 }
  0x12   : > { %197 = vst [vmem:[%s171_s27 + $0x18] sm:$0xff] %v196_v3  ;;  %199 = vst [vmem:[%s171_s27 + $0x20] sm:$0xff] %v198_v4 }
  0x13   : > { %201 = vst [vmem:[%s171_s27 + $0x28] sm:$0xff] %v200_v5 }
  0x14 PF: > { %p1041_p6 = scmp.ge.s32.totalorder %s1318_s16, 1  ;;  %p221_p7 = scmp.lt.s32.totalorder %s1318_s16, 8 }
  0x16   : > { %p222_p8 = pnand %p1041_p6, %p221_p7 }
  0x17   : > { %s228_s28 = sand.u32 (!%p222_p8), 1, %s1302_s12   ;;  %s1042_s29 = sshll.u32 (!%p222_p8), %s1310_s14, 6 }
  0x18   : > { %225 = sbr.rel (%p222_p8) target bundleno = 328 (0x148), region = 51  ;;  %p274_p9 = scmp.lt.s32.totalorder (!%p222_p8), %s1042_s29, 447 }
  0x19   : > { %s1132_s30 = smul.u32 (!%p222_p8), 48, %s228_s28  ;;  %p1045_p10 = scmp.ne.s32.totalorder (!%p222_p8), %s1310_s14, 0 }
  0x1b   : > { %s1393_s8 = scalar_lea.vmem (!%p222_p8), [#allocation3], %s1132_s30 }
  0x1d   : > { %s1505_s29 = smov (!%p274_p9, %s1042_s29), 447  ;;  %304 = sbr.rel (%p1045_p10) target bundleno = 38 (0x26), region = 59 }
  0x1e   : > { %s1127_s4 = sshll.u32 %s1505_s29, 3 }
  0x1f   : > { %s1391_s7 = scalar_lea.vmem %s1495_s1, %s1127_s4 }
  0x22   : > { %v1320_v6 = vmov 0.0  }
  0x23   : > { %305 = vst [vmem:[#allocation2 + $0x28] sm:$0xff] %v1320_v6  ;;  %306 = vst [vmem:[#allocation2 + $0x10] sm:$0xff] %v1320_v6 }
  0x24   : > { %307 = vst [vmem:[#allocation2 + $0x8] sm:$0xff] %v1320_v6  ;;  %308 = vst [vmem:[#allocation2] sm:$0xff] %v1320_v6 }
  0x25   : > { %309 = vst [vmem:[#allocation2 + $0x18] sm:$0xff] %v1320_v6  ;;  %310 = vst [vmem:[#allocation2 + $0x20] sm:$0xff] %v1320_v6 }
  0x26 PF: > { %v1174_v7 = vld [vmem:[%s1391_s7 + $0x74] ss:$8 sps:$4 sm:$0xff]   ;;  %v1178_v9 = vld [vmem:[%s1391_s7 + $0x70] ss:$8 sps:$4 sm:$0xff]   ;;  %v1180_v11 = vld [vmem:[%s1391_s7 + $0x64] ss:$8 sps:$4 sm:$0xff]  }
  0x27   : > { %v1176_v8 = vld [vmem:[%s1391_s7 + $0x174] ss:$8 sps:$4 sm:$0xff]   ;;  %741 = vmatprep.subr.bf16.mxu0 %v1174_v7  ;;  %v1179_v10 = vld [vmem:[%s1391_s7 + $0x170] ss:$8 sps:$4 sm:$0xff]   ;;  %v1182_v12 = vld [vmem:[%s1391_s7 + $0x164] ss:$8 sps:$4 sm:$0xff]  }
  0x28   : > { %792 = vmatprep.subr.bf16.mxu1 %v1176_v8  ;;  %742 = vmatpush1.bf16.msra.mxu0 %v1178_v9  ;;  %v1184_v13 = vld [vmem:[%s1391_s7 + $0x60] ss:$8 sps:$4 sm:$0xff]   ;;  %v1186_v15 = vld [vmem:[%s1391_s7 + $0x54] ss:$8 sps:$4 sm:$0xff]   ;;  %v1190_v17 = vld [vmem:[%s1391_s7 + $0x50] ss:$8 sps:$4 sm:$0xff]  }
  0x29   : > { %793 = vmatpush1.bf16.msra.mxu1 %v1179_v10  ;;  %743 = vmatprep.subr.bf16.mxu0 %v1180_v11  ;;  %v1185_v14 = vld [vmem:[%s1391_s7 + $0x160] ss:$8 sps:$4 sm:$0xff]   ;;  %v1188_v16 = vld [vmem:[%s1391_s7 + $0x154] ss:$8 sps:$4 sm:$0xff]   ;;  %v1191_v18 = vld [vmem:[%s1391_s7 + $0x150] ss:$8 sps:$4 sm:$0xff]  }
  0x2a   : > { %794 = vmatprep.subr.bf16.mxu1 %v1182_v12  ;;  %v1192_v19 = vld [vmem:[%s1391_s7 + $0x44] ss:$8 sps:$4 sm:$0xff]   ;;  %v1196_v21 = vld [vmem:[%s1391_s7 + $0x40] ss:$8 sps:$4 sm:$0xff]   ;;  %v1198_v23 = vld [vmem:[%s1391_s7 + $0x34] ss:$8 sps:$4 sm:$0xff]  }
  0x2b   : > { %v1194_v20 = vld [vmem:[%s1391_s7 + $0x144] ss:$8 sps:$4 sm:$0xff]   ;;  %v1197_v22 = vld [vmem:[%s1391_s7 + $0x140] ss:$8 sps:$4 sm:$0xff]   ;;  %v1200_v24 = vld [vmem:[%s1391_s7 + $0x134] ss:$8 sps:$4 sm:$0xff]  }
  0x2c   : > { %744 = vmatpush1.bf16.msra.mxu0 %v1184_v13  ;;  %v1202_v25 = vld [vmem:[%s1391_s7 + $0x30] ss:$8 sps:$4 sm:$0xff]   ;;  %v1204_v27 = vld [vmem:[%s1391_s7 + $0x24] ss:$8 sps:$4 sm:$0xff]   ;;  %v1208_v29 = vld [vmem:[%s1391_s7 + $0x20] ss:$8 sps:$4 sm:$0xff]  }
  0x2d   : > { %795 = vmatpush1.bf16.msra.mxu1 %v1185_v14  ;;  %745 = vmatprep.subr.bf16.mxu0 %v1186_v15  ;;  %v1203_v26 = vld [vmem:[%s1391_s7 + $0x130] ss:$8 sps:$4 sm:$0xff]   ;;  %v1206_v28 = vld [vmem:[%s1391_s7 + $0x124] ss:$8 sps:$4 sm:$0xff]   ;;  %v1209_v30 = vld [vmem:[%s1391_s7 + $0x120] ss:$8 sps:$4 sm:$0xff]  }
  0x2e   : > { %796 = vmatprep.subr.bf16.mxu1 %v1188_v16  ;;  %v1210_v31 = vld [vmem:[%s1391_s7 + $0x14] ss:$8 sps:$4 sm:$0xff]   ;;  %v1214_v33 = vld [vmem:[%s1391_s7 + $0x10] ss:$8 sps:$4 sm:$0xff]   ;;  %v1216_v35 = vld [vmem:[%s1391_s7 + $0x4] ss:$8 sps:$4 sm:$0xff]  }
  0x2f   : > { %v1212_v32 = vld [vmem:[%s1391_s7 + $0x114] ss:$8 sps:$4 sm:$0xff]   ;;  %v1215_v34 = vld [vmem:[%s1391_s7 + $0x110] ss:$8 sps:$4 sm:$0xff]   ;;  %v1218_v36 = vld [vmem:[%s1391_s7 + $0x104] ss:$8 sps:$4 sm:$0xff]  }
  0x30   : > { %746 = vmatpush1.bf16.msra.mxu0 %v1190_v17  ;;  %v1220_v37 = vld [vmem:[%s1391_s7] ss:$8 sps:$4 sm:$0xff]   ;;  %v1222_v39 = vld [vmem:[%s1391_s7 + $0xf4] ss:$8 sps:$4 sm:$0xff]   ;;  %v1226_v41 = vld [vmem:[%s1391_s7 + $0xf0] ss:$8 sps:$4 sm:$0xff]  }
  0x31   : > { %797 = vmatpush1.bf16.msra.mxu1 %v1191_v18  ;;  %747 = vmatprep.subr.bf16.mxu0 %v1192_v19  ;;  %v1221_v38 = vld [vmem:[%s1391_s7 + $0x100] ss:$8 sps:$4 sm:$0xff]   ;;  %v1224_v40 = vld [vmem:[%s1391_s7 + $0x1f4] ss:$8 sps:$4 sm:$0xff]   ;;  %v1227_v42 = vld [vmem:[%s1391_s7 + $0x1f0] ss:$8 sps:$4 sm:$0xff]  }
  0x32   : > { %798 = vmatprep.subr.bf16.mxu1 %v1194_v20  ;;  %v1228_v43 = vld [vmem:[%s1391_s7 + $0xe4] ss:$8 sps:$4 sm:$0xff]   ;;  %v1232_v45 = vld [vmem:[%s1391_s7 + $0xe0] ss:$8 sps:$4 sm:$0xff]   ;;  %v1234_v47 = vld [vmem:[%s1391_s7 + $0xd4] ss:$8 sps:$4 sm:$0xff]  }
  0x33   : > { %v1230_v44 = vld [vmem:[%s1391_s7 + $0x1e4] ss:$8 sps:$4 sm:$0xff]   ;;  %v1233_v46 = vld [vmem:[%s1391_s7 + $0x1e0] ss:$8 sps:$4 sm:$0xff]   ;;  %v1236_v48 = vld [vmem:[%s1391_s7 + $0x1d4] ss:$8 sps:$4 sm:$0xff]  }
  0x34   : > { %748 = vmatpush1.bf16.msra.mxu0 %v1196_v21  ;;  %v1238_v49 = vld [vmem:[%s1391_s7 + $0xd0] ss:$8 sps:$4 sm:$0xff]   ;;  %v1240_v51 = vld [vmem:[%s1391_s7 + $0xc4] ss:$8 sps:$4 sm:$0xff]   ;;  %v1244_v53 = vld [vmem:[%s1391_s7 + $0xc0] ss:$8 sps:$4 sm:$0xff]  }
  0x35   : > { %799 = vmatpush1.bf16.msra.mxu1 %v1197_v22  ;;  %749 = vmatprep.subr.bf16.mxu0 %v1198_v23  ;;  %v1239_v50 = vld [vmem:[%s1391_s7 + $0x1d0] ss:$8 sps:$4 sm:$0xff]   ;;  %v1242_v52 = vld [vmem:[%s1391_s7 + $0x1c4] ss:$8 sps:$4 sm:$0xff]   ;;  %v1245_v55 = vld [vmem:[%s1391_s7 + $0x1c0] ss:$8 sps:$4 sm:$0xff]  }
  0x36   : > { %800 = vmatprep.subr.bf16.mxu1 %v1200_v24  ;;  %v1272_v54 = vld [vmem:[%s1393_s8 + $0x4] ss:$16 sps:$4 sm:$0xff]   ;;  %v1275_v58 = vld [vmem:[%s1393_s8 + $0xc] ss:$16 sps:$4 sm:$0xff]   ;;  %v1250_v59 = vld [vmem:[%s1391_s7 + $0xb0] ss:$8 sps:$4 sm:$0xff]  }
  0x37   : > { %v1246_v56 = vld [vmem:[%s1391_s7 + $0xb4] ss:$8 sps:$4 sm:$0xff]   ;;  %773 = vmatprep.mubr.bf16.mxu0 %v1272_v54  ;;  %824 = vmatprep.mubr.bf16.mxu1 %v1275_v58  ;;  %v1251_v60 = vld [vmem:[%s1391_s7 + $0x1b0] ss:$8 sps:$4 sm:$0xff]   ;;  %v1252_v61 = vld [vmem:[%s1391_s7 + $0xa4] ss:$8 sps:$4 sm:$0xff]  }
  0x38   : > { %750 = vmatpush1.bf16.msra.mxu0 %v1202_v25  ;;  %v1248_v57 = vld [vmem:[%s1391_s7 + $0x1b4] ss:$8 sps:$4 sm:$0xff]   ;;  %v1254_v62 = vld [vmem:[%s1391_s7 + $0x1a4] ss:$8 sps:$4 sm:$0xff]   ;;  %v1256_v63 = vld [vmem:[%s1391_s7 + $0xa0] ss:$8 sps:$4 sm:$0xff]  }
  0x39   : > { %801 = vmatpush1.bf16.msra.mxu1 %v1203_v26  ;;  %751 = vmatprep.subr.bf16.mxu0 %v1204_v27  ;;  %v1257_v0 = vld [vmem:[%s1391_s7 + $0x1a0] ss:$8 sps:$4 sm:$0xff]   ;;  %v1258_v1 = vld [vmem:[%s1391_s7 + $0x94] ss:$8 sps:$4 sm:$0xff]   ;;  %v1262_v3 = vld [vmem:[%s1391_s7 + $0x90] ss:$8 sps:$4 sm:$0xff]  }
  0x3a   : > { %802 = vmatprep.subr.bf16.mxu1 %v1206_v28  ;;  %v1260_v2 = vld [vmem:[%s1391_s7 + $0x194] ss:$8 sps:$4 sm:$0xff]   ;;  %v1263_v4 = vld [vmem:[%s1391_s7 + $0x190] ss:$8 sps:$4 sm:$0xff]   ;;  %v1264_v5 = vld [vmem:[%s1391_s7 + $0x84] ss:$8 sps:$4 sm:$0xff]  }
  0x3b   : > { %v1266_v6 = vld [vmem:[%s1391_s7 + $0x184] ss:$8 sps:$4 sm:$0xff]   ;;  %v1268_v7 = vld [vmem:[%s1391_s7 + $0x80] ss:$8 sps:$4 sm:$0xff]   ;;  %v312_v22 = vld [vmem:[#allocation2 + $0x10] sm:$0xff]  ;;  %p1118_p11 = scmp.ne.s32.totalorder %s1310_s14, 6 }
  0x3c   : > { %752 = vmatpush1.bf16.msra.mxu0 %v1208_v29  ;;  %v1269_v8 = vld [vmem:[%s1391_s7 + $0x180] ss:$8 sps:$4 sm:$0xff]  }
  0x3d   : > { %803 = vmatpush1.bf16.msra.mxu1 %v1209_v30  ;;  %753 = vmatprep.subr.bf16.mxu0 %v1210_v31  ;;  %v321_v9 = vld [vmem:[%s1393_s8 + $0x20] sm:$0xff]  ;;  %v322_v10 = vld [vmem:[%s1393_s8 + $0x28] sm:$0xff] }
  0x3e   : > { %804 = vmatprep.subr.bf16.mxu1 %v1212_v32  ;;  %v1270_v11 = vld [vmem:[%s1393_s8] ss:$16 sps:$4 sm:$0xff]   ;;  %v1273_v12 = vld [vmem:[%s1393_s8 + $0x8] ss:$16 sps:$4 sm:$0xff]   ;;  %v1051_v13 = vcombine.high %v321_v9, %v321_v9  ;;  %v1053_v14 = vcombine.high %v322_v10, %v322_v10  ;;  %v1050_v15 = vcombine.low %v321_v9, %v321_v9  ;;  %v1052_v16 = vcombine.low %v322_v10, %v322_v10 }
  0x3f   : > { %v311_v18 = vld [vmem:[#allocation2 + $0x28] sm:$0xff]  ;;  %v314_v32 = vld [vmem:[#allocation2] sm:$0xff] }
  0x40   : > { %754 = vmatpush1.bf16.msra.mxu0 %v1214_v33  ;;  %v313_v27 = vld [vmem:[#allocation2 + $0x8] sm:$0xff] }
  0x41   : > { %805 = vmatpush1.bf16.msra.mxu1 %v1215_v34  ;;  %755 = vmatprep.subr.bf16.mxu0 %v1216_v35 }
  0x42   : > { %806 = vmatprep.subr.bf16.mxu1 %v1218_v36 }
  0x44   : > { %756 = vmatpush1.bf16.msra.mxu0 %v1220_v37  ;;  %v315_v37 = vld [vmem:[#allocation2 + $0x18] sm:$0xff] }
  0x45   : > { %807 = vmatpush1.bf16.msra.mxu1 %v1221_v38  ;;  %757 = vmatprep.subr.bf16.mxu0 %v1222_v39 }
  0x46   : > { %808 = vmatprep.subr.bf16.mxu1 %v1224_v40 }
  0x48   : > { %758 = vmatpush2.bf16.msra.mxu0 %v1226_v41 }
  0x49   : > { %809 = vmatpush2.bf16.msra.mxu1 %v1227_v42  ;;  %759 = vmatprep.subr.bf16.mxu0 %v1228_v43  ;;  %v316_v42 = vld [vmem:[#allocation2 + $0x20] sm:$0xff] }
  0x4a   : > { %810 = vmatprep.subr.bf16.mxu1 %v1230_v44 }
  0x4c   : > { %760 = vmatpush2.bf16.msra.mxu0 %v1232_v45 }
  0x4d   : > { %811 = vmatpush2.bf16.msra.mxu1 %v1233_v46  ;;  %761 = vmatprep.subr.bf16.mxu0 %v1234_v47 }
  0x4e   : > { %812 = vmatprep.subr.bf16.mxu1 %v1236_v48 }
  0x50   : > { %762 = vmatpush2.bf16.msra.mxu0 %v1238_v49 }
  0x51   : > { %813 = vmatpush2.bf16.msra.mxu1 %v1239_v50  ;;  %763 = vmatprep.subr.bf16.mxu0 %v1240_v51 }
  0x52   : > { %814 = vmatprep.subr.bf16.mxu1 %v1242_v52 }
  0x54   : > { %764 = vmatpush2.bf16.msra.mxu0 %v1244_v53 }
  0x55   : > { %815 = vmatpush2.bf16.msra.mxu1 %v1245_v55  ;;  %765 = vmatprep.subr.bf16.mxu0 %v1246_v56 }
  0x56   : > { %816 = vmatprep.subr.bf16.mxu1 %v1248_v57 }
  0x58   : > { %766 = vmatpush2.bf16.msra.mxu0 %v1250_v59 }
  0x59   : > { %817 = vmatpush2.bf16.msra.mxu1 %v1251_v60  ;;  %767 = vmatprep.subr.bf16.mxu0 %v1252_v61 }
  0x5a   : > { %818 = vmatprep.subr.bf16.mxu1 %v1254_v62 }
  0x5c   : > { %768 = vmatpush2.bf16.msra.mxu0 %v1256_v63 }
  0x5d   : > { %819 = vmatpush2.bf16.msra.mxu1 %v1257_v0  ;;  %769 = vmatprep.subr.bf16.mxu0 %v1258_v1 }
  0x5e   : > { %820 = vmatprep.subr.bf16.mxu1 %v1260_v2 }
  0x60   : > { %770 = vmatpush2.bf16.msra.mxu0 %v1262_v3 }
  0x61   : > { %821 = vmatpush2.bf16.msra.mxu1 %v1263_v4  ;;  %771 = vmatprep.subr.bf16.mxu0 %v1264_v5 }
  0x62   : > { %822 = vmatprep.subr.bf16.mxu1 %v1266_v6 }
  0x64   : > { %772 = vmatpush2.bf16.msra.mxu0 %v1268_v7 }
  0x65   : > { %823 = vmatpush2.bf16.msra.mxu1 %v1269_v8 }
  0x67   : > { %774 = vmatmul.mubr.bf16.vlgmr.msra.gmra.mxu0 %v1270_v11 }
  0x68   : > { %825 = vmatmul.mubr.bf16.vlgmr.msra.gmra.mxu1 %v1273_v12  ;;  %783 = vmatprep.mubr.bf16.mxu0 %v1051_v13 }
  0x69   : > { %834 = vmatprep.mubr.bf16.mxu1 %v1053_v14 }
  0x6f   : > { %784 = vmatmul.mubr.bf16.gmra.mxu0 %v1050_v15 }
  0x70   : > { %835 = vmatmul.mubr.bf16.gmra.mxu1 %v1052_v16 }
 0x127   : > { %v775_v17 = vpop.f32.mrf.mxu0 }
 0x128   : > { %v826_v19 = vpop.f32.mrf.mxu1 }
 0x129   : > { %v827_v20 = vadd.f32 %v826_v19, %v775_v17  ;;  %v777_v21 = vpop.f32.mrf.mxu0 }
 0x12a   : > { %v828_v23 = vpop.f32.mrf.mxu1 }
 0x12b   : > { %v843_v24 = vadd.f32 %v827_v20, %v311_v18  ;;  %v829_v25 = vadd.f32 %v828_v23, %v777_v21  ;;  %v779_v26 = vpop.f32.mrf.mxu0 }
 0x12c   : > { %v830_v28 = vpop.f32.mrf.mxu1 }
 0x12d   : > { %849 = vst [vmem:[#allocation2 + $0x28] sm:$0xff] %v843_v24  ;;  %v844_v29 = vadd.f32 %v829_v25, %v312_v22  ;;  %v831_v30 = vadd.f32 %v830_v28, %v779_v26  ;;  %v781_v31 = vpop.f32.mrf.mxu0 }
 0x12e   : > { %v832_v33 = vpop.f32.mrf.mxu1 }
 0x12f   : > { %850 = vst [vmem:[#allocation2 + $0x10] sm:$0xff] %v844_v29  ;;  %v845_v34 = vadd.f32 %v831_v30, %v313_v27  ;;  %v833_v35 = vadd.f32 %v832_v33, %v781_v31  ;;  %v785_v36 = vpop.f32.mrf.mxu0 }
 0x130   : > { %v836_v38 = vpop.f32.mrf.mxu1 }
 0x131   : > { %851 = vst [vmem:[#allocation2 + $0x8] sm:$0xff] %v845_v34  ;;  %v846_v39 = vadd.f32 %v833_v35, %v314_v32  ;;  %v837_v40 = vadd.f32 %v836_v38, %v785_v36  ;;  %v787_v41 = vpop.f32.mrf.mxu0 }
 0x132   : > { %v838_v43 = vpop.f32.mrf.mxu1 }
 0x133   : > { %852 = vst [vmem:[#allocation2] sm:$0xff] %v846_v39  ;;  %v847_v44 = vadd.f32 %v837_v40, %v315_v37  ;;  %v839_v45 = vadd.f32 %v838_v43, %v787_v41  ;;  %v789_v46 = vpop.f32.mrf.mxu0  ;;  %858 = sbr.rel (%p1118_p11) target bundleno = 328 (0x148), region = 63 }
 0x134   : > { %v840_v47 = vpop.f32.mrf.mxu1 }
 0x135   : > { %853 = vst [vmem:[#allocation2 + $0x18] sm:$0xff] %v847_v44  ;;  %v848_v48 = vadd.f32 %v839_v45, %v316_v42  ;;  %v790_v49 = vpop.f32.mrf.mxu0 }
 0x136   : > { %v841_v50 = vpop.f32.mrf.mxu1 }
 0x137   : > { %854 = vst [vmem:[#allocation2 + $0x20] sm:$0xff] %v848_v48 }
 0x138   : > { %v867_v51 = vlaneseq  ;;  %v865_v53 = vld [vmem:[%s1496_s2] sm:$0x3]  ;;  %v859_v54 = vld [vmem:[#allocation2 + $0x28] sm:$0xff]  ;;  %v860_v57 = vld [vmem:[#allocation2 + $0x10] sm:$0xff] }
 0x139   : > { %v861_v58 = vld [vmem:[#allocation2 + $0x8] sm:$0xff] }
 0x13a   : > { %v868_v52 = vshrl.u32 %v867_v51, 7  ;;  %v862_v59 = vld [vmem:[#allocation2] sm:$0xff] }
 0x13c   : > { %v869_v55 = vsub.s32 0, %v868_v52  ;;  %v873_v56 = vsub.s32 1, %v868_v52  ;;  %v863_v62 = vld [vmem:[#allocation2 + $0x18] sm:$0xff] }
 0x13e   : > { %v870_v60 = vrot.slane %v865_v53, %v869_v55  ;;  %v874_v61 = vrot.slane %v865_v53, %v873_v56  ;;  %v864_v63 = vld [vmem:[#allocation2 + $0x20] sm:$0xff] }
 0x140   : > { %v877_v0 = vadd.f32 %v870_v60, %v859_v54  ;;  %v878_v1 = vadd.f32 %v874_v61, %v860_v57  ;;  %v879_v2 = vadd.f32 %v870_v60, %v861_v58  ;;  %v880_v3 = vadd.f32 %v874_v61, %v862_v59 }
 0x141   : > { %v881_v4 = vadd.f32 %v870_v60, %v863_v62  ;;  %v882_v5 = vadd.f32 %v874_v61, %v864_v63 }
 0x142   : > { %v883_v6 = vmax.f32 %v877_v0, 0.0  ;;  %v884_v7 = vmax.f32 %v878_v1, 0.0  ;;  %v885_v8 = vmax.f32 %v879_v2, 0.0  ;;  %v886_v9 = vmax.f32 %v880_v3, 0.0 }
 0x143   : > { %v887_v10 = vmax.f32 %v881_v4, 0.0  ;;  %v888_v11 = vmax.f32 %v882_v5, 0.0 }
 0x144   : > { %v1128_v12 = vpack.c.bf16 %v884_v7, %v883_v6  ;;  %v1129_v13 = vpack.c.bf16 %v886_v9, %v885_v8 }
 0x145   : > { %v1130_v14 = vpack.c.bf16 %v888_v11, %v887_v10 }
 0x146   : > { %909 = vst [vmem:[%s1497_s3] sm:$0xff] %v1128_v12  ;;  %910 = vst [vmem:[%s1497_s3 + $0x8] sm:$0xff] %v1129_v13 }
 0x147   : > { %911 = vst [vmem:[%s1497_s3 + $0x10] sm:$0xff] %v1130_v14 }
 0x148 PF: > { %s13_s16 = sadd.s32 1, %s1318_s16   ;;  %s1498_s12 = smov %s1306_s13 }
 0x149   : > { %p10_p12 = scmp.ge.s32.totalorder %s13_s16, 9   ;;  %s1499_s13 = smov %s1376_s20 }
 0x14a   : > { %s1500_s14 = smov %s1314_s15  ;;  %s1501_s15 = smov %s1503_s17 }
 0x14b   :  { %12 = sbr.rel (!%p10_p12) target bundleno = 3 (0x3), region = 104 }

// kernel: alexnet_forward.10
= control target key start
LH: loop header
LB: loop body
LE: loop exit
PB: predicated region body
PF: predicated region fallthrough
CT: control target
= control target key end

     0   :  { %s1341_s12 = smov 0   ;;  %s1343_s13 = smov 0   ;;  %s1494_s0 = inlined_call_operand.vmem [shape: bf16[24,2560], index: 0, kind: input, shape index: {}]   ;;  %s1495_s1 = inlined_call_operand.vmem [shape: bf16[2560,256], index: 1, kind: input, shape index: {}]   ;;  %s1496_s2 = inlined_call_operand.vmem [shape: f32[1,256], index: 2, kind: input, shape index: {}]   ;;  %s1497_s3 = inlined_call_operand.vmem [shape: bf16[24,256], index: 3, kind: output, shape index: {}]  }
   0x1   :  { %s1345_s14 = smov 0   ;;  %s1347_s15 = smov 0  }
   0x2   :  { %s1349_s16 = smov 0  }
   0x3 LB: > { %s25_s17 = sadd.s32 1, %s1314_s15  ;;  %p48_p1 = scmp.ne.s32.totalorder %s1306_s13, %s1302_s12  ;;  %s1318_s16 = sphi %s1349_s16, %s13_s16   ;;  %s1314_s15 = sphi %s1347_s15, %s1501_s15   ;;  %s1310_s14 = sphi %s1345_s14, %s1500_s14   ;;  %s1306_s13 = sphi %s1343_s13, %s1499_s13   ;;  %s1302_s12 = sphi %s1341_s12, %s1498_s12  }
   0x4   : > { %p26_p0 = scmp.ge.s32.totalorder %s25_s17, 5  ;;  %p49_p2 = scmp.eq.s32.totalorder %s1318_s16, 0 }
   0x5   : > { %s41_s19 = sadd.s32 1, %s1306_s13  ;;  %p1038_p5 = scmp.ge.s32.totalorder %s1318_s16, 5 }
   0x6   : > { %s1503_s17 = smov (%p26_p0, %s25_s17), 0  ;;  %p50_p3 = por %p49_p2, %p48_p1 }
   0x7   : > { %s37_s18 = ssub.s32 %s1314_s15, %s1503_s17  ;;  %164 = sbr.rel (%p1038_p5) target bundleno = 20 (0x14), region = 20 }
   0x8   : > { %p39_p4 = scmp.eq.s32.totalorder %s37_s18, 0 }
   0xa   : > { %s1376_s20 = scalar_select %p39_p4, %s1306_s13, %s41_s19  }
   0xc   : > { %167 = sbr.rel (!%p50_p3) target bundleno = 20 (0x14), region = 24  ;;  %s169_s21 = sand.u32 (%p50_p3), 1, %s1306_s13  }
   0xd   : > { %s1126_s22 = sshll.u32 (%p50_p3), %s1314_s15, 4  ;;  %s1131_s23 = smul.u32 (%p50_p3), 48, %s169_s21 }
   0xe   : > { %s177_s26 = scalar_lea.vmem (%p50_p3), %s1494_s0, %s1126_s22 }
   0xf   : > { %v190_v0 = vld [vmem:[%s177_s26] sm:$0xff] (%p50_p3)  ;;  %v192_v1 = vld [vmem:[%s177_s26 + $0x8] sm:$0xff] (%p50_p3)  ;;  %v194_v2 = vld [vmem:[%s177_s26 + $0x50] sm:$0xff] (%p50_p3)  ;;  %s171_s27 = scalar_lea.vmem (%p50_p3), [#allocation3], %s1131_s23 }
  0x10   : > { %v196_v3 = vld [vmem:[%s177_s26 + $0x58] sm:$0xff] (%p50_p3)  ;;  %v198_v4 = vld [vmem:[%s177_s26 + $0xa0] sm:$0xff] (%p50_p3)  ;;  %v200_v5 = vld [vmem:[%s177_s26 + $0xa8] sm:$0xff] (%p50_p3)  ;;  %191 = vst [vmem:[%s171_s27] sm:$0xff] (%p50_p3), %v190_v0 }
  0x11   : > { %193 = vst [vmem:[%s171_s27 + $0x8] sm:$0xff] %v192_v1  ;;  %195 = vst [vmem:[%s171_s27 + $0x10] sm:$0xff] %v194_v2 }
  0x12   : > { %197 = vst [vmem:[%s171_s27 + $0x18] sm:$0xff] %v196_v3  ;;  %199 = vst [vmem:[%s171_s27 + $0x20] sm:$0xff] %v198_v4 }
  0x13   : > { %201 = vst [vmem:[%s171_s27 + $0x28] sm:$0xff] %v200_v5 }
  0x14 PF: > { %p1041_p6 = scmp.ge.s32.totalorder %s1318_s16, 1  ;;  %p221_p7 = scmp.lt.s32.totalorder %s1318_s16, 6 }
  0x16   : > { %p222_p8 = pnand %p1041_p6, %p221_p7 }
  0x17   : > { %s228_s28 = sand.u32 (!%p222_p8), 1, %s1302_s12   ;;  %s1042_s29 = sshll.u32 (!%p222_p8), %s1310_s14, 6 }
  0x18   : > { %225 = sbr.rel (%p222_p8) target bundleno = 328 (0x148), region = 51  ;;  %p274_p9 = scmp.lt.s32.totalorder (!%p222_p8), %s1042_s29, 319 }
  0x19   : > { %s1132_s30 = smul.u32 (!%p222_p8), 48, %s228_s28  ;;  %p1045_p10 = scmp.ne.s32.totalorder (!%p222_p8), %s1310_s14, 0 }
  0x1b   : > { %s1393_s8 = scalar_lea.vmem (!%p222_p8), [#allocation3], %s1132_s30 }
  0x1d   : > { %s1505_s29 = smov (!%p274_p9, %s1042_s29), 319  ;;  %304 = sbr.rel (%p1045_p10) target bundleno = 38 (0x26), region = 59 }
  0x1e   : > { %s1127_s4 = sshll.u32 %s1505_s29, 3 }
  0x1f   : > { %s1391_s7 = scalar_lea.vmem %s1495_s1, %s1127_s4 }
  0x22   : > { %v1320_v6 = vmov 0.0  }
  0x23   : > { %305 = vst [vmem:[#allocation2 + $0x28] sm:$0xff] %v1320_v6  ;;  %306 = vst [vmem:[#allocation2 + $0x10] sm:$0xff] %v1320_v6 }
  0x24   : > { %307 = vst [vmem:[#allocation2 + $0x8] sm:$0xff] %v1320_v6  ;;  %308 = vst [vmem:[#allocation2] sm:$0xff] %v1320_v6 }
  0x25   : > { %309 = vst [vmem:[#allocation2 + $0x18] sm:$0xff] %v1320_v6  ;;  %310 = vst [vmem:[#allocation2 + $0x20] sm:$0xff] %v1320_v6 }
  0x26 PF: > { %v1174_v7 = vld [vmem:[%s1391_s7 + $0x74] ss:$8 sps:$4 sm:$0xff]   ;;  %v1178_v9 = vld [vmem:[%s1391_s7 + $0x70] ss:$8 sps:$4 sm:$0xff]   ;;  %v1180_v11 = vld [vmem:[%s1391_s7 + $0x64] ss:$8 sps:$4 sm:$0xff]  }
  0x27   : > { %v1176_v8 = vld [vmem:[%s1391_s7 + $0x174] ss:$8 sps:$4 sm:$0xff]   ;;  %741 = vmatprep.subr.bf16.mxu0 %v1174_v7  ;;  %v1179_v10 = vld [vmem:[%s1391_s7 + $0x170] ss:$8 sps:$4 sm:$0xff]   ;;  %v1182_v12 = vld [vmem:[%s1391_s7 + $0x164] ss:$8 sps:$4 sm:$0xff]  }
  0x28   : > { %792 = vmatprep.subr.bf16.mxu1 %v1176_v8  ;;  %742 = vmatpush1.bf16.msra.mxu0 %v1178_v9  ;;  %v1184_v13 = vld [vmem:[%s1391_s7 + $0x60] ss:$8 sps:$4 sm:$0xff]   ;;  %v1186_v15 = vld [vmem:[%s1391_s7 + $0x54] ss:$8 sps:$4 sm:$0xff]   ;;  %v1190_v17 = vld [vmem:[%s1391_s7 + $0x50] ss:$8 sps:$4 sm:$0xff]  }
  0x29   : > { %793 = vmatpush1.bf16.msra.mxu1 %v1179_v10  ;;  %743 = vmatprep.subr.bf16.mxu0 %v1180_v11  ;;  %v1185_v14 = vld [vmem:[%s1391_s7 + $0x160] ss:$8 sps:$4 sm:$0xff]   ;;  %v1188_v16 = vld [vmem:[%s1391_s7 + $0x154] ss:$8 sps:$4 sm:$0xff]   ;;  %v1191_v18 = vld [vmem:[%s1391_s7 + $0x150] ss:$8 sps:$4 sm:$0xff]  }
  0x2a   : > { %794 = vmatprep.subr.bf16.mxu1 %v1182_v12  ;;  %v1192_v19 = vld [vmem:[%s1391_s7 + $0x44] ss:$8 sps:$4 sm:$0xff]   ;;  %v1196_v21 = vld [vmem:[%s1391_s7 + $0x40] ss:$8 sps:$4 sm:$0xff]   ;;  %v1198_v23 = vld [vmem:[%s1391_s7 + $0x34] ss:$8 sps:$4 sm:$0xff]  }
  0x2b   : > { %v1194_v20 = vld [vmem:[%s1391_s7 + $0x144] ss:$8 sps:$4 sm:$0xff]   ;;  %v1197_v22 = vld [vmem:[%s1391_s7 + $0x140] ss:$8 sps:$4 sm:$0xff]   ;;  %v1200_v24 = vld [vmem:[%s1391_s7 + $0x134] ss:$8 sps:$4 sm:$0xff]  }
  0x2c   : > { %744 = vmatpush1.bf16.msra.mxu0 %v1184_v13  ;;  %v1202_v25 = vld [vmem:[%s1391_s7 + $0x30] ss:$8 sps:$4 sm:$0xff]   ;;  %v1204_v27 = vld [vmem:[%s1391_s7 + $0x24] ss:$8 sps:$4 sm:$0xff]   ;;  %v1208_v29 = vld [vmem:[%s1391_s7 + $0x20] ss:$8 sps:$4 sm:$0xff]  }
  0x2d   : > { %795 = vmatpush1.bf16.msra.mxu1 %v1185_v14  ;;  %745 = vmatprep.subr.bf16.mxu0 %v1186_v15  ;;  %v1203_v26 = vld [vmem:[%s1391_s7 + $0x130] ss:$8 sps:$4 sm:$0xff]   ;;  %v1206_v28 = vld [vmem:[%s1391_s7 + $0x124] ss:$8 sps:$4 sm:$0xff]   ;;  %v1209_v30 = vld [vmem:[%s1391_s7 + $0x120] ss:$8 sps:$4 sm:$0xff]  }
  0x2e   : > { %796 = vmatprep.subr.bf16.mxu1 %v1188_v16  ;;  %v1210_v31 = vld [vmem:[%s1391_s7 + $0x14] ss:$8 sps:$4 sm:$0xff]   ;;  %v1214_v33 = vld [vmem:[%s1391_s7 + $0x10] ss:$8 sps:$4 sm:$0xff]   ;;  %v1216_v35 = vld [vmem:[%s1391_s7 + $0x4] ss:$8 sps:$4 sm:$0xff]  }
  0x2f   : > { %v1212_v32 = vld [vmem:[%s1391_s7 + $0x114] ss:$8 sps:$4 sm:$0xff]   ;;  %v1215_v34 = vld [vmem:[%s1391_s7 + $0x110] ss:$8 sps:$4 sm:$0xff]   ;;  %v1218_v36 = vld [vmem:[%s1391_s7 + $0x104] ss:$8 sps:$4 sm:$0xff]  }
  0x30   : > { %746 = vmatpush1.bf16.msra.mxu0 %v1190_v17  ;;  %v1220_v37 = vld [vmem:[%s1391_s7] ss:$8 sps:$4 sm:$0xff]   ;;  %v1222_v39 = vld [vmem:[%s1391_s7 + $0xf4] ss:$8 sps:$4 sm:$0xff]   ;;  %v1226_v41 = vld [vmem:[%s1391_s7 + $0xf0] ss:$8 sps:$4 sm:$0xff]  }
  0x31   : > { %797 = vmatpush1.bf16.msra.mxu1 %v1191_v18  ;;  %747 = vmatprep.subr.bf16.mxu0 %v1192_v19  ;;  %v1221_v38 = vld [vmem:[%s1391_s7 + $0x100] ss:$8 sps:$4 sm:$0xff]   ;;  %v1224_v40 = vld [vmem:[%s1391_s7 + $0x1f4] ss:$8 sps:$4 sm:$0xff]   ;;  %v1227_v42 = vld [vmem:[%s1391_s7 + $0x1f0] ss:$8 sps:$4 sm:$0xff]  }
  0x32   : > { %798 = vmatprep.subr.bf16.mxu1 %v1194_v20  ;;  %v1228_v43 = vld [vmem:[%s1391_s7 + $0xe4] ss:$8 sps:$4 sm:$0xff]   ;;  %v1232_v45 = vld [vmem:[%s1391_s7 + $0xe0] ss:$8 sps:$4 sm:$0xff]   ;;  %v1234_v47 = vld [vmem:[%s1391_s7 + $0xd4] ss:$8 sps:$4 sm:$0xff]  }
  0x33   : > { %v1230_v44 = vld [vmem:[%s1391_s7 + $0x1e4] ss:$8 sps:$4 sm:$0xff]   ;;  %v1233_v46 = vld [vmem:[%s1391_s7 + $0x1e0] ss:$8 sps:$4 sm:$0xff]   ;;  %v1236_v48 = vld [vmem:[%s1391_s7 + $0x1d4] ss:$8 sps:$4 sm:$0xff]  }
  0x34   : > { %748 = vmatpush1.bf16.msra.mxu0 %v1196_v21  ;;  %v1238_v49 = vld [vmem:[%s1391_s7 + $0xd0] ss:$8 sps:$4 sm:$0xff]   ;;  %v1240_v51 = vld [vmem:[%s1391_s7 + $0xc4] ss:$8 sps:$4 sm:$0xff]   ;;  %v1244_v53 = vld [vmem:[%s1391_s7 + $0xc0] ss:$8 sps:$4 sm:$0xff]  }
  0x35   : > { %799 = vmatpush1.bf16.msra.mxu1 %v1197_v22  ;;  %749 = vmatprep.subr.bf16.mxu0 %v1198_v23  ;;  %v1239_v50 = vld [vmem:[%s1391_s7 + $0x1d0] ss:$8 sps:$4 sm:$0xff]   ;;  %v1242_v52 = vld [vmem:[%s1391_s7 + $0x1c4] ss:$8 sps:$4 sm:$0xff]   ;;  %v1245_v55 = vld [vmem:[%s1391_s7 + $0x1c0] ss:$8 sps:$4 sm:$0xff]  }
  0x36   : > { %800 = vmatprep.subr.bf16.mxu1 %v1200_v24  ;;  %v1272_v54 = vld [vmem:[%s1393_s8 + $0x4] ss:$16 sps:$4 sm:$0xff]   ;;  %v1275_v58 = vld [vmem:[%s1393_s8 + $0xc] ss:$16 sps:$4 sm:$0xff]   ;;  %v1250_v59 = vld [vmem:[%s1391_s7 + $0xb0] ss:$8 sps:$4 sm:$0xff]  }
  0x37   : > { %v1246_v56 = vld [vmem:[%s1391_s7 + $0xb4] ss:$8 sps:$4 sm:$0xff]   ;;  %773 = vmatprep.mubr.bf16.mxu0 %v1272_v54  ;;  %824 = vmatprep.mubr.bf16.mxu1 %v1275_v58  ;;  %v1251_v60 = vld [vmem:[%s1391_s7 + $0x1b0] ss:$8 sps:$4 sm:$0xff]   ;;  %v1252_v61 = vld [vmem:[%s1391_s7 + $0xa4] ss:$8 sps:$4 sm:$0xff]  }
  0x38   : > { %750 = vmatpush1.bf16.msra.mxu0 %v1202_v25  ;;  %v1248_v57 = vld [vmem:[%s1391_s7 + $0x1b4] ss:$8 sps:$4 sm:$0xff]   ;;  %v1254_v62 = vld [vmem:[%s1391_s7 + $0x1a4] ss:$8 sps:$4 sm:$0xff]   ;;  %v1256_v63 = vld [vmem:[%s1391_s7 + $0xa0] ss:$8 sps:$4 sm:$0xff]  }
  0x39   : > { %801 = vmatpush1.bf16.msra.mxu1 %v1203_v26  ;;  %751 = vmatprep.subr.bf16.mxu0 %v1204_v27  ;;  %v1257_v0 = vld [vmem:[%s1391_s7 + $0x1a0] ss:$8 sps:$4 sm:$0xff]   ;;  %v1258_v1 = vld [vmem:[%s1391_s7 + $0x94] ss:$8 sps:$4 sm:$0xff]   ;;  %v1262_v3 = vld [vmem:[%s1391_s7 + $0x90] ss:$8 sps:$4 sm:$0xff]  }
  0x3a   : > { %802 = vmatprep.subr.bf16.mxu1 %v1206_v28  ;;  %v1260_v2 = vld [vmem:[%s1391_s7 + $0x194] ss:$8 sps:$4 sm:$0xff]   ;;  %v1263_v4 = vld [vmem:[%s1391_s7 + $0x190] ss:$8 sps:$4 sm:$0xff]   ;;  %v1264_v5 = vld [vmem:[%s1391_s7 + $0x84] ss:$8 sps:$4 sm:$0xff]  }
  0x3b   : > { %v1266_v6 = vld [vmem:[%s1391_s7 + $0x184] ss:$8 sps:$4 sm:$0xff]   ;;  %v1268_v7 = vld [vmem:[%s1391_s7 + $0x80] ss:$8 sps:$4 sm:$0xff]   ;;  %v312_v22 = vld [vmem:[#allocation2 + $0x10] sm:$0xff]  ;;  %p1118_p11 = scmp.ne.s32.totalorder %s1310_s14, 4 }
  0x3c   : > { %752 = vmatpush1.bf16.msra.mxu0 %v1208_v29  ;;  %v1269_v8 = vld [vmem:[%s1391_s7 + $0x180] ss:$8 sps:$4 sm:$0xff]  }
  0x3d   : > { %803 = vmatpush1.bf16.msra.mxu1 %v1209_v30  ;;  %753 = vmatprep.subr.bf16.mxu0 %v1210_v31  ;;  %v321_v9 = vld [vmem:[%s1393_s8 + $0x20] sm:$0xff]  ;;  %v322_v10 = vld [vmem:[%s1393_s8 + $0x28] sm:$0xff] }
  0x3e   : > { %804 = vmatprep.subr.bf16.mxu1 %v1212_v32  ;;  %v1270_v11 = vld [vmem:[%s1393_s8] ss:$16 sps:$4 sm:$0xff]   ;;  %v1273_v12 = vld [vmem:[%s1393_s8 + $0x8] ss:$16 sps:$4 sm:$0xff]   ;;  %v1051_v13 = vcombine.high %v321_v9, %v321_v9  ;;  %v1053_v14 = vcombine.high %v322_v10, %v322_v10  ;;  %v1050_v15 = vcombine.low %v321_v9, %v321_v9  ;;  %v1052_v16 = vcombine.low %v322_v10, %v322_v10 }
  0x3f   : > { %v311_v18 = vld [vmem:[#allocation2 + $0x28] sm:$0xff]  ;;  %v314_v32 = vld [vmem:[#allocation2] sm:$0xff] }
  0x40   : > { %754 = vmatpush1.bf16.msra.mxu0 %v1214_v33  ;;  %v313_v27 = vld [vmem:[#allocation2 + $0x8] sm:$0xff] }
  0x41   : > { %805 = vmatpush1.bf16.msra.mxu1 %v1215_v34  ;;  %755 = vmatprep.subr.bf16.mxu0 %v1216_v35 }
  0x42   : > { %806 = vmatprep.subr.bf16.mxu1 %v1218_v36 }
  0x44   : > { %756 = vmatpush1.bf16.msra.mxu0 %v1220_v37  ;;  %v315_v37 = vld [vmem:[#allocation2 + $0x18] sm:$0xff] }
  0x45   : > { %807 = vmatpush1.bf16.msra.mxu1 %v1221_v38  ;;  %757 = vmatprep.subr.bf16.mxu0 %v1222_v39 }
  0x46   : > { %808 = vmatprep.subr.bf16.mxu1 %v1224_v40 }
  0x48   : > { %758 = vmatpush2.bf16.msra.mxu0 %v1226_v41 }
  0x49   : > { %809 = vmatpush2.bf16.msra.mxu1 %v1227_v42  ;;  %759 = vmatprep.subr.bf16.mxu0 %v1228_v43  ;;  %v316_v42 = vld [vmem:[#allocation2 + $0x20] sm:$0xff] }
  0x4a   : > { %810 = vmatprep.subr.bf16.mxu1 %v1230_v44 }
  0x4c   : > { %760 = vmatpush2.bf16.msra.mxu0 %v1232_v45 }
  0x4d   : > { %811 = vmatpush2.bf16.msra.mxu1 %v1233_v46  ;;  %761 = vmatprep.subr.bf16.mxu0 %v1234_v47 }
  0x4e   : > { %812 = vmatprep.subr.bf16.mxu1 %v1236_v48 }
  0x50   : > { %762 = vmatpush2.bf16.msra.mxu0 %v1238_v49 }
  0x51   : > { %813 = vmatpush2.bf16.msra.mxu1 %v1239_v50  ;;  %763 = vmatprep.subr.bf16.mxu0 %v1240_v51 }
  0x52   : > { %814 = vmatprep.subr.bf16.mxu1 %v1242_v52 }
  0x54   : > { %764 = vmatpush2.bf16.msra.mxu0 %v1244_v53 }
  0x55   : > { %815 = vmatpush2.bf16.msra.mxu1 %v1245_v55  ;;  %765 = vmatprep.subr.bf16.mxu0 %v1246_v56 }
  0x56   : > { %816 = vmatprep.subr.bf16.mxu1 %v1248_v57 }
  0x58   : > { %766 = vmatpush2.bf16.msra.mxu0 %v1250_v59 }
  0x59   : > { %817 = vmatpush2.bf16.msra.mxu1 %v1251_v60  ;;  %767 = vmatprep.subr.bf16.mxu0 %v1252_v61 }
  0x5a   : > { %818 = vmatprep.subr.bf16.mxu1 %v1254_v62 }
  0x5c   : > { %768 = vmatpush2.bf16.msra.mxu0 %v1256_v63 }
  0x5d   : > { %819 = vmatpush2.bf16.msra.mxu1 %v1257_v0  ;;  %769 = vmatprep.subr.bf16.mxu0 %v1258_v1 }
  0x5e   : > { %820 = vmatprep.subr.bf16.mxu1 %v1260_v2 }
  0x60   : > { %770 = vmatpush2.bf16.msra.mxu0 %v1262_v3 }
  0x61   : > { %821 = vmatpush2.bf16.msra.mxu1 %v1263_v4  ;;  %771 = vmatprep.subr.bf16.mxu0 %v1264_v5 }
  0x62   : > { %822 = vmatprep.subr.bf16.mxu1 %v1266_v6 }
  0x64   : > { %772 = vmatpush2.bf16.msra.mxu0 %v1268_v7 }
  0x65   : > { %823 = vmatpush2.bf16.msra.mxu1 %v1269_v8 }
  0x67   : > { %774 = vmatmul.mubr.bf16.vlgmr.msra.gmra.mxu0 %v1270_v11 }
  0x68   : > { %825 = vmatmul.mubr.bf16.vlgmr.msra.gmra.mxu1 %v1273_v12  ;;  %783 = vmatprep.mubr.bf16.mxu0 %v1051_v13 }
  0x69   : > { %834 = vmatprep.mubr.bf16.mxu1 %v1053_v14 }
  0x6f   : > { %784 = vmatmul.mubr.bf16.gmra.mxu0 %v1050_v15 }
  0x70   : > { %835 = vmatmul.mubr.bf16.gmra.mxu1 %v1052_v16 }
 0x127   : > { %v775_v17 = vpop.f32.mrf.mxu0 }
 0x128   : > { %v826_v19 = vpop.f32.mrf.mxu1 }
 0x129   : > { %v827_v20 = vadd.f32 %v826_v19, %v775_v17  ;;  %v777_v21 = vpop.f32.mrf.mxu0 }
 0x12a   : > { %v828_v23 = vpop.f32.mrf.mxu1 }
 0x12b   : > { %v843_v24 = vadd.f32 %v827_v20, %v311_v18  ;;  %v829_v25 = vadd.f32 %v828_v23, %v777_v21  ;;  %v779_v26 = vpop.f32.mrf.mxu0 }
 0x12c   : > { %v830_v28 = vpop.f32.mrf.mxu1 }
 0x12d   : > { %849 = vst [vmem:[#allocation2 + $0x28] sm:$0xff] %v843_v24  ;;  %v844_v29 = vadd.f32 %v829_v25, %v312_v22  ;;  %v831_v30 = vadd.f32 %v830_v28, %v779_v26  ;;  %v781_v31 = vpop.f32.mrf.mxu0 }
 0x12e   : > { %v832_v33 = vpop.f32.mrf.mxu1 }
 0x12f   : > { %850 = vst [vmem:[#allocation2 + $0x10] sm:$0xff] %v844_v29  ;;  %v845_v34 = vadd.f32 %v831_v30, %v313_v27  ;;  %v833_v35 = vadd.f32 %v832_v33, %v781_v31  ;;  %v785_v36 = vpop.f32.mrf.mxu0 }
 0x130   : > { %v836_v38 = vpop.f32.mrf.mxu1 }
 0x131   : > { %851 = vst [vmem:[#allocation2 + $0x8] sm:$0xff] %v845_v34  ;;  %v846_v39 = vadd.f32 %v833_v35, %v314_v32  ;;  %v837_v40 = vadd.f32 %v836_v38, %v785_v36  ;;  %v787_v41 = vpop.f32.mrf.mxu0 }
 0x132   : > { %v838_v43 = vpop.f32.mrf.mxu1 }
 0x133   : > { %852 = vst [vmem:[#allocation2] sm:$0xff] %v846_v39  ;;  %v847_v44 = vadd.f32 %v837_v40, %v315_v37  ;;  %v839_v45 = vadd.f32 %v838_v43, %v787_v41  ;;  %v789_v46 = vpop.f32.mrf.mxu0  ;;  %858 = sbr.rel (%p1118_p11) target bundleno = 328 (0x148), region = 63 }
 0x134   : > { %v840_v47 = vpop.f32.mrf.mxu1 }
 0x135   : > { %853 = vst [vmem:[#allocation2 + $0x18] sm:$0xff] %v847_v44  ;;  %v848_v48 = vadd.f32 %v839_v45, %v316_v42  ;;  %v790_v49 = vpop.f32.mrf.mxu0 }
 0x136   : > { %v841_v50 = vpop.f32.mrf.mxu1 }
 0x137   : > { %854 = vst [vmem:[#allocation2 + $0x20] sm:$0xff] %v848_v48 }
 0x138   : > { %v867_v51 = vlaneseq  ;;  %v865_v53 = vld [vmem:[%s1496_s2] sm:$0x3]  ;;  %v859_v54 = vld [vmem:[#allocation2 + $0x28] sm:$0xff]  ;;  %v860_v57 = vld [vmem:[#allocation2 + $0x10] sm:$0xff] }
 0x139   : > { %v861_v58 = vld [vmem:[#allocation2 + $0x8] sm:$0xff] }
 0x13a   : > { %v868_v52 = vshrl.u32 %v867_v51, 7  ;;  %v862_v59 = vld [vmem:[#allocation2] sm:$0xff] }
 0x13c   : > { %v869_v55 = vsub.s32 0, %v868_v52  ;;  %v873_v56 = vsub.s32 1, %v868_v52  ;;  %v863_v62 = vld [vmem:[#allocation2 + $0x18] sm:$0xff] }
 0x13e   : > { %v870_v60 = vrot.slane %v865_v53, %v869_v55  ;;  %v874_v61 = vrot.slane %v865_v53, %v873_v56  ;;  %v864_v63 = vld [vmem:[#allocation2 + $0x20] sm:$0xff] }
 0x140   : > { %v877_v0 = vadd.f32 %v870_v60, %v859_v54  ;;  %v878_v1 = vadd.f32 %v874_v61, %v860_v57  ;;  %v879_v2 = vadd.f32 %v870_v60, %v861_v58  ;;  %v880_v3 = vadd.f32 %v874_v61, %v862_v59 }
 0x141   : > { %v881_v4 = vadd.f32 %v870_v60, %v863_v62  ;;  %v882_v5 = vadd.f32 %v874_v61, %v864_v63 }
 0x142   : > { %v883_v6 = vmax.f32 %v877_v0, 0.0  ;;  %v884_v7 = vmax.f32 %v878_v1, 0.0  ;;  %v885_v8 = vmax.f32 %v879_v2, 0.0  ;;  %v886_v9 = vmax.f32 %v880_v3, 0.0 }
 0x143   : > { %v887_v10 = vmax.f32 %v881_v4, 0.0  ;;  %v888_v11 = vmax.f32 %v882_v5, 0.0 }
 0x144   : > { %v1128_v12 = vpack.c.bf16 %v884_v7, %v883_v6  ;;  %v1129_v13 = vpack.c.bf16 %v886_v9, %v885_v8 }
 0x145   : > { %v1130_v14 = vpack.c.bf16 %v888_v11, %v887_v10 }
 0x146   : > { %909 = vst [vmem:[%s1497_s3] sm:$0xff] %v1128_v12  ;;  %910 = vst [vmem:[%s1497_s3 + $0x8] sm:$0xff] %v1129_v13 }
 0x147   : > { %911 = vst [vmem:[%s1497_s3 + $0x10] sm:$0xff] %v1130_v14 }
 0x148 PF: > { %s13_s16 = sadd.s32 1, %s1318_s16   ;;  %s1498_s12 = smov %s1306_s13 }
 0x149   : > { %p10_p12 = scmp.ge.s32.totalorder %s13_s16, 7   ;;  %s1499_s13 = smov %s1376_s20 }
 0x14a   : > { %s1500_s14 = smov %s1314_s15  ;;  %s1501_s15 = smov %s1503_s17 }
 0x14b   :  { %12 = sbr.rel (!%p10_p12) target bundleno = 3 (0x3), region = 104 }

// kernel: alexnet_forward.11
= control target key start
LH: loop header
LB: loop body
LE: loop exit
PB: predicated region body
PF: predicated region fallthrough
CT: control target
= control target key end

     0   :  { %v594_v1 = vmov 0.0   ;;  %vm595_vm0 = vmmov 0   ;;  %s765_s1 = inlined_call_operand.vmem [shape: bf16[256,128], index: 1, kind: input, shape index: {}]   ;;  %s766_s0 = inlined_call_operand.vmem [shape: bf16[8,256], index: 0, kind: input, shape index: {}]   ;;  %s767_s3 = inlined_call_operand.vmem [shape: bf16[128,128], index: 3, kind: input, shape index: {}]   ;;  %s768_s5 = inlined_call_operand.vmem [shape: bf16[128,128], index: 5, kind: input, shape index: {}]   ;;  %s769_s2 = inlined_call_operand.vmem [shape: f32[1,128], index: 2, kind: input, shape index: {}]   ;;  %s770_s4 = inlined_call_operand.vmem [shape: f32[1,128], index: 4, kind: input, shape index: {}]   ;;  %s771_s6 = inlined_call_operand.vmem [shape: f32[1,128], index: 6, kind: input, shape index: {}]   ;;  %s772_s7 = inlined_call_operand.vmem [shape: f32[8,128], index: 7, kind: output, shape index: {}]  }
   0x1   :  { %v560_v0 = vld [vmem:[%s765_s1 + $0x78] sm:$0xff]   ;;  %518 = vmatprep.subr.bf16.mxu1 %v594_v1  ;;  %v562_v3 = vld [vmem:[%s765_s1 + $0x70] sm:$0xff]   ;;  %v564_v5 = vld [vmem:[%s765_s1 + $0x68] sm:$0xff]   ;;  %534 = vmatprep.mubr.msk.bf16.mxu1 %vm595_vm0, %v594_v1 }
   0x2   :  { %v561_v2 = vld [vmem:[%s765_s1 + $0x38] sm:$0xff]   ;;  %478 = vmatprep.subr.bf16.mxu0 %v560_v0  ;;  %v563_v4 = vld [vmem:[%s765_s1 + $0x30] sm:$0xff]   ;;  %v565_v6 = vld [vmem:[%s765_s1 + $0x28] sm:$0xff]  }
   0x3   :  { %479 = vmatpush3.bf16.msra.mxu0 %v561_v2  ;;  %v566_v7 = vld [vmem:[%s765_s1 + $0x60] sm:$0xff]   ;;  %v568_v9 = vld [vmem:[%s765_s1 + $0x58] sm:$0xff]   ;;  %v570_v11 = vld [vmem:[%s765_s1 + $0x50] sm:$0xff]  }
   0x4   :  { %480 = vmatprep.subr.bf16.mxu0 %v562_v3  ;;  %v567_v8 = vld [vmem:[%s765_s1 + $0x20] sm:$0xff]   ;;  %v569_v10 = vld [vmem:[%s765_s1 + $0x18] sm:$0xff]   ;;  %v571_v15 = vld [vmem:[%s765_s1 + $0x10] sm:$0xff]  }
   0x5   :  { %v27_v12 = vld [vmem:[%s766_s0] sm:$0xff]  ;;  %v578_v14 = vld [vmem:[%s767_s3 + $0x38] sm:$0xff]   ;;  %v572_v16 = vld [vmem:[%s765_s1 + $0x48] sm:$0xff]  }
   0x6   :  { %v443_v13 = vcombine.high %v27_v12, %v27_v12  ;;  %519 = vmatpush3.bf16.msra.mxu1 %v578_v14  ;;  %v579_v17 = vld [vmem:[%s767_s3 + $0x30] sm:$0xff]   ;;  %v573_v18 = vld [vmem:[%s765_s1 + $0x8] sm:$0xff]   ;;  %v574_v19 = vld [vmem:[%s765_s1 + $0x40] sm:$0xff]   ;;  %v442_v23 = vcombine.low %v27_v12, %v27_v12 }
   0x7   :  { %481 = vmatpush3.bf16.msra.mxu0 %v563_v4  ;;  %520 = vmatprep.subr.bf16.mxu1 %v594_v1  ;;  %v580_v20 = vld [vmem:[%s767_s3 + $0x28] sm:$0xff]   ;;  %v575_v21 = vld [vmem:[%s765_s1] sm:$0xff]   ;;  %v582_v24 = vld [vmem:[%s767_s3 + $0x18] sm:$0xff]  }
   0x8   :  { %482 = vmatprep.subr.bf16.mxu0 %v564_v5  ;;  %202 = vmatprep.mubr.bf16.mxu0 %v443_v13  ;;  %v581_v22 = vld [vmem:[%s767_s3 + $0x20] sm:$0xff]   ;;  %v583_v25 = vld [vmem:[%s767_s3 + $0x10] sm:$0xff]   ;;  %v584_v26 = vld [vmem:[%s767_s3 + $0x8] sm:$0xff]  }
   0x9   :  { %v585_v27 = vld [vmem:[%s767_s3] sm:$0xff]   ;;  %v586_v28 = vld [vmem:[%s768_s5 + $0x38] sm:$0xff]   ;;  %v587_v29 = vld [vmem:[%s768_s5 + $0x30] sm:$0xff]  }
   0xa   :  { %521 = vmatpush3.bf16.msra.mxu1 %v579_v17  ;;  %v588_v30 = vld [vmem:[%s768_s5 + $0x28] sm:$0xff]   ;;  %v589_v31 = vld [vmem:[%s768_s5 + $0x20] sm:$0xff]   ;;  %v590_v32 = vld [vmem:[%s768_s5 + $0x18] sm:$0xff]  }
   0xb   :  { %483 = vmatpush3.bf16.msra.mxu0 %v565_v6  ;;  %522 = vmatprep.subr.bf16.mxu1 %v594_v1  ;;  %v591_v33 = vld [vmem:[%s768_s5 + $0x10] sm:$0xff]   ;;  %v441_v35 = vld [vmem:[%s769_s2] ss:$0 sm:$0xff]  ;;  %v592_v43 = vld [vmem:[%s768_s5 + $0x8] sm:$0xff]  }
   0xc   :  { %484 = vmatprep.subr.bf16.mxu0 %v566_v7  ;;  %v593_v44 = vld [vmem:[%s768_s5] sm:$0xff]  }
   0xd   :  { %v460_v45 = vld [vmem:[%s770_s4] ss:$0 sm:$0xff] }
   0xe   :  { %523 = vmatpush3.bf16.msra.mxu1 %v580_v20  ;;  %v469_v53 = vld [vmem:[%s771_s6] ss:$0 sm:$0xff] }
   0xf   :  { %485 = vmatpush3.bf16.msra.mxu0 %v567_v8  ;;  %524 = vmatprep.subr.bf16.mxu1 %v594_v1 }
  0x10   :  { %486 = vmatprep.subr.bf16.mxu0 %v568_v9 }
  0x12   :  { %525 = vmatpush3.bf16.msra.mxu1 %v581_v22 }
  0x13   :  { %487 = vmatpush3.bf16.msra.mxu0 %v569_v10  ;;  %526 = vmatprep.subr.bf16.mxu1 %v594_v1 }
  0x14   :  { %488 = vmatprep.subr.bf16.mxu0 %v570_v11 }
  0x16   :  { %527 = vmatpush3.bf16.msra.mxu1 %v582_v24 }
  0x17   :  { %489 = vmatpush3.bf16.msra.mxu0 %v571_v15  ;;  %528 = vmatprep.subr.bf16.mxu1 %v594_v1 }
  0x18   :  { %490 = vmatprep.subr.bf16.mxu0 %v572_v16 }
  0x1a   :  { %529 = vmatpush3.bf16.msra.mxu1 %v583_v25 }
  0x1b   :  { %491 = vmatpush3.bf16.msra.mxu0 %v573_v18  ;;  %530 = vmatprep.subr.bf16.mxu1 %v594_v1 }
  0x1c   :  { %492 = vmatprep.subr.bf16.mxu0 %v574_v19 }
  0x1e   :  { %531 = vmatpush3.bf16.msra.mxu1 %v584_v26 }
  0x1f   :  { %493 = vmatpush3.bf16.msra.mxu0 %v575_v21  ;;  %532 = vmatprep.subr.bf16.mxu1 %v594_v1 }
  0x20   :  { %538 = vmatprep.subr.bf16.mxu0 %v594_v1 }
  0x22   :  { %203 = vmatmul.mubr.bf16.vlgmr.msra.gmra.mxu0 %v442_v23  ;;  %533 = vmatpush3.bf16.msra.mxu1 %v585_v27 }
  0x23   :  { %554 = vmatprep.mubr.msk.bf16.mxu0 %vm595_vm0, %v594_v1  ;;  %539 = vmatpush3.bf16.msra.mxu0 %v586_v28 }
  0x24   :  { %540 = vmatprep.subr.bf16.mxu0 %v594_v1 }
  0x27   :  { %541 = vmatpush3.bf16.msra.mxu0 %v587_v29 }
  0x28   :  { %542 = vmatprep.subr.bf16.mxu0 %v594_v1 }
  0x2b   :  { %543 = vmatpush3.bf16.msra.mxu0 %v588_v30 }
  0x2c   :  { %544 = vmatprep.subr.bf16.mxu0 %v594_v1 }
  0x2f   :  { %545 = vmatpush3.bf16.msra.mxu0 %v589_v31 }
  0x30   :  { %546 = vmatprep.subr.bf16.mxu0 %v594_v1 }
  0x33   :  { %547 = vmatpush3.bf16.msra.mxu0 %v590_v32 }
  0x34   :  { %548 = vmatprep.subr.bf16.mxu0 %v594_v1 }
  0x37   :  { %549 = vmatpush3.bf16.msra.mxu0 %v591_v33 }
  0x38   :  { %550 = vmatprep.subr.bf16.mxu0 %v594_v1 }
  0x3b   :  { %551 = vmatpush3.bf16.msra.mxu0 %v592_v43 }
  0x3c   :  { %552 = vmatprep.subr.bf16.mxu0 %v594_v1 }
  0x3f   :  { %553 = vmatpush3.bf16.msra.mxu0 %v593_v44 }
  0xe2   :  { %v494_v34 = vpop.f32.mrf.mxu0 }
  0xe4   :  { %v495_v36 = vpop.f32.mrf.mxu0 }
  0xe5   :  { %v496_v37 = vadd.f32 %v495_v36, %v494_v34 }
  0xe6   :  { %v497_v38 = vpop.f32.mrf.mxu0 }
  0xe7   :  { %v205_v39 = vadd.f32 %v496_v37, %v441_v35 }
  0xe8   :  { %v498_v40 = vpop.f32.mrf.mxu0 }
  0xe9   :  { %v210_v41 = vmax.f32 %v205_v39, 0.0 }
  0xeb   :  { %v211_v42 = vpack.c.bf16 %v210_v41, %v210_v41 }
  0xed   :  { %535 = vmatmul.mubr.bf16.vlgmr.msra.gmra.mxu1 %v211_v42 }
 0x1ad   :  { %v317_v46 = vpop.f32.mrf.mxu1 }
 0x1ae   :  { %v318_v47 = vadd.f32 %v460_v45, %v317_v46 }
 0x1af   :  { %v536_v48 = vpop.f32.mrf.mxu1 }
 0x1b0   :  { %v323_v49 = vmax.f32 %v318_v47, 0.0 }
 0x1b1   :  { %v320_v50 = vpop.f32.mrf.mxu1 }
 0x1b2   :  { %v324_v51 = vpack.c.bf16 %v323_v49, %v323_v49 }
 0x1b3   :  { %v537_v52 = vpop.f32.mrf.mxu1 }
 0x1b4   :  { %555 = vmatmul.mubr.bf16.vlgmr.msra.gmra.mxu0 %v324_v51 }
 0x274   :  { %v430_v54 = vpop.f32.mrf.mxu0 }
 0x275   :  { %v431_v55 = vadd.f32 %v469_v53, %v430_v54 }
 0x276   :  { %v556_v56 = vpop.f32.mrf.mxu0 }
 0x277   :  { %436 = vst [vmem:[%s772_s7] sm:$0xff] %v431_v55 }
 0x278   :  { %v433_v57 = vpop.f32.mrf.mxu0 }
 0x27a   :  { %v557_v58 = vpop.f32.mrf.mxu0 }

</bundles_post_ra>
